<compile_context>
chip_gen: v7x
topology: tpu7x:2x2x1
jax: 0.10.0
libtpu: 0.0.40
codegen_flags: <defaults>
</compile_context>

<pallas_src>
import numpy as np
import jax
import jax.numpy as jnp
from jax.experimental import pallas as pl
from jax.experimental.pallas import tpu as pltpu

# ----------------------------- configuration --------------------------------
B, T = 2, 16              # batch, time steps
IN_CH = 4                 # input channels (features)
NF = 8                    # n_filters per inception path  -> 4*NF = 32 channels
DEPTH = 6
KS_BASE = 8               # base kernel size (constructor arg of the module)
EPS = 1e-5


def _kernel_sizes(base):
    ks = [base // (2 ** i) for i in range(3)]
    return [k if k % 2 != 0 else k - 1 for k in ks]


KS = _kernel_sizes(KS_BASE)            # [7, 3, 1]
KW = max(KS)                           # im2col window width (7 taps)
PAD_MAX = (KW - 1) // 2                # 3
PADW = 8                               # in-kernel halo width (sublane aligned, >= PAD_MAX, >= 1)
C4 = 4 * NF                            # 32 channels out of every module
KTOT = (KW + 1) * C4                   # 256 : MXU-aligned contraction dim of the fused matmul

_VMEM = pl.BlockSpec(memory_space=pltpu.MemorySpace.VMEM)


# ------------------------------ Pallas kernel --------------------------------
def _inception_block_kernel(x_ref, wbig_ref, shift_ref, wsc_ref, shsc_ref, o_ref):
    """Whole InceptionBlock (DEPTH modules + residual shortcuts) in one kernel.

    x_ref     : (B, T, C4)              input, channel-padded to C4, channels-last
    wbig_ref  : (DEPTH, KTOT, C4)       fused im2col weights: bottleneck folded into
                                        the 3 conv paths + maxpool path, BN scale
                                        folded into the columns
    shift_ref : (DEPTH, 1, C4)          folded BN shift (bias)
    wsc_ref   : (DEPTH//3, C4, C4)      shortcut 1x1-conv / identity, BN scale folded
    shsc_ref  : (DEPTH//3, 1, C4)       shortcut BN shift
    o_ref     : (B, T, C4)
    """
    B_, T_, _ = x_ref.shape

    h = x_ref[...]                                       # activation lives in vregs
    residual = h

    zpad = jnp.zeros((B_, PADW, C4), jnp.float32)        # aligned zero halo (conv 'same')
    npad = jnp.full((B_, PADW, C4), -jnp.inf, jnp.float32)  # -inf halo (maxpool pad=1)

    for d in range(DEPTH):                               # static unroll over depth
        # ---- im2col taps of the module input (bottleneck folded into weights) ----
        hz = jnp.concatenate([zpad, h, zpad], axis=1)    # (B, T + 2*PADW, C4)
        base = PADW - PAD_MAX
        taps = [hz[:, base + j: base + j + T_, :] for j in range(KW)]

        # ---- maxpool(3, stride 1, pad 1) on the module input ----
        hn = jnp.concatenate([npad, h, npad], axis=1)    # (B, T + 2*PADW, C4)
        mp = jnp.maximum(jnp.maximum(hn[:, PADW - 1:PADW - 1 + T_, :],
                                     hn[:, PADW:PADW + T_, :]),
                         hn[:, PADW + 1:PADW + 1 + T_, :])

        # ---- ONE fused matmul: bottleneck + 3 conv paths + maxpool path + BN scale ----
        lhs = jnp.concatenate(taps + [mp], axis=-1)      # (B, T, KTOT) -- KTOT = 256
        y = jnp.dot(lhs.reshape(B_ * T_, KTOT), wbig_ref[d],
                    preferred_element_type=jnp.float32)  # (B*T, C4)
        h = jnp.maximum(y + shift_ref[d], 0.0).reshape(B_, T_, C4)

        # ---- residual shortcut every 3rd module ----
        if d % 3 == 2:
            s = d // 3
            r = jnp.dot(residual.reshape(B_ * T_, C4), wsc_ref[s],
                        preferred_element_type=jnp.float32) + shsc_ref[s]
            h = jnp.maximum(h + r.reshape(B_, T_, C4), 0.0)
            residual = h

    o_ref[...] = h                                       # single full-block store


@jax.jit
def inception_block_pallas(x_ncl, fused):
    """PyTorch layout (B, C, T) in -> (B, 4*NF, T) out."""
    B_, Cin, T_ = x_ncl.shape
    h = jnp.transpose(x_ncl, (0, 2, 1))                  # (B, T, Cin)
    h = jnp.pad(h, ((0, 0), (0, 0), (0, C4 - Cin)))      # channel-pad to C4 (zeros)

    out = pl.pallas_call(
        _inception_block_kernel,
        out_shape=jax.ShapeDtypeStruct((B_, T_, C4), jnp.float32),
        in_specs=[_VMEM] * 5,
        out_specs=_VMEM,
    )(h, fused["wbig"], fused["shift"], fused["wsc"], fused["shsc"])
    return jnp.transpose(out, (0, 2, 1))                 # back to PyTorch NCL


# -------------------- one-time host-side weight packing ----------------------
def prepare_fused_params(modules, shortcuts):
    """Build the block-sparse im2col weights for the fused per-module matmul:
    the bottleneck 1x1 conv is folded into each conv tap (Wb @ Wconv_tap), the
    maxpool 1x1 conv occupies the trailing C4 rows, and eval-mode BatchNorm is
    folded (scale into columns, shift as bias).  Input channels are zero-padded
    to C4 so the kernel works on a uniform channels-last layout."""
    F = NF
    wbig_all = np.zeros((DEPTH, KTOT, C4), np.float32)
    shift_all = np.zeros((DEPTH, 1, C4), np.float32)

    for d, m in enumerate(modules):
        cin = m["wb"].shape[1]
        wb = np.zeros((C4, F), np.float32)
        wb[:cin, :] = np.asarray(m["wb"])[:, :, 0].T                 # (C4, F), padded

        for i, k in enumerate(KS):                                   # conv paths
            w = np.asarray(m["wconvs"][i])                           # (F, F, k) OIH
            pad = (k - 1) // 2
            for mt in range(k):
                j = mt + (PAD_MAX - pad)                             # tap row-block
                # fold bottleneck:  tap_j(h) @ (Wb @ Wconv_tap)
                wbig_all[d, j * C4:(j + 1) * C4, i * F:(i + 1) * F] = wb @ w[:, :, mt].T

        # maxpool path 1x1 conv occupies the trailing C4 rows
        wmp = np.zeros((C4, F), np.float32)
        wmp[:cin, :] = np.asarray(m["wmp"])[:, :, 0].T
        wbig_all[d, KW * C4:(KW + 1) * C4, 3 * F:4 * F] = wmp

        wbig_all[d] *= np.asarray(m["scale"])[None, :]               # fold BN scale
        shift_all[d, 0, :] = np.asarray(m["shift"])

    ns = DEPTH // 3
    wsc_all = np.zeros((ns, C4, C4), np.float32)
    shsc_all = np.zeros((ns, 1, C4), np.float32)
    for s, sc in enumerate(shortcuts):
        cin = sc["wsc"].shape[1]
        wsc_all[s, :cin, :] = np.asarray(sc["wsc"])[:, :, 0].T
        wsc_all[s] *= np.asarray(sc["scale"])[None, :]               # fold BN scale
        shsc_all[s, 0, :] = np.asarray(sc["shift"])

    return dict(wbig=jnp.asarray(wbig_all), shift=jnp.asarray(shift_all),
                wsc=jnp.asarray(wsc_all), shsc=jnp.asarray(shsc_all))


# --------------------------- pure-JAX reference ------------------------------
def _conv1d_same(x, w):
    return jax.lax.conv_general_dilated(x, w, (1,), "SAME",
                                        dimension_numbers=("NCH", "OIH", "NCH"))


def _ref_module(x, m):
    xb = _conv1d_same(x, m["wb"])
    convs = [_conv1d_same(xb, w) for w in m["wconvs"]]
    mp = jax.lax.reduce_window(x, -jnp.inf, jax.lax.max, (1, 1, 3), (1, 1, 1),
                               ((0, 0), (0, 0), (1, 1)))
    mpc = _conv1d_same(mp, m["wmp"])
    y = jnp.concatenate(convs + [mpc], axis=1)
    y = y * m["scale"][None, :, None] + m["shift"][None, :, None]
    return jnp.maximum(y, 0.0)


def ref_forward(x, modules, shortcuts):
    residual, h = x, x
    for d in range(DEPTH):
        h = _ref_module(h, modules[d])
        if d % 3 == 2:
            s = shortcuts[d // 3]
            r = _conv1d_same(residual, s["wsc"])
            r = r * s["scale"][None, :, None] + s["shift"][None, :, None]
            h = jnp.maximum(h + r, 0.0)
            residual = h
    return h


# --------------------------- parameter creation ------------------------------
def _bn_scale_shift(k2, k3, k4, k5, c):
    gamma = jax.random.uniform(k2, (c,), minval=0.5, maxval=1.5)
    beta = jax.random.normal(k3, (c,)) * 0.1
    rmean = jax.random.normal(k4, (c,)) * 0.1
    rvar = jax.random.uniform(k5, (c,), minval=0.5, maxval=1.5)
    scale = gamma / jnp.sqrt(rvar + EPS)
    shift = beta - rmean * scale
    return scale, shift


def init_params(key):
    modules = []
    for d in range(DEPTH):
        cin = IN_CH if d == 0 else C4
        key, *ks = jax.random.split(key, 10)
        wb = jax.random.normal(ks[0], (NF, cin, 1)) / np.sqrt(cin)
        wconvs = [jax.random.normal(ks[1 + i], (NF, NF, k)) / np.sqrt(NF * k)
                  for i, k in enumerate(KS)]
        wmp = jax.random.normal(ks[4], (NF, cin, 1)) / np.sqrt(cin)
        scale, shift = _bn_scale_shift(ks[5], ks[6], ks[7], ks[8], C4)
        modules.append(dict(wb=wb, wconvs=wconvs, wmp=wmp, scale=scale, shift=shift))

    shortcuts = []
    for d in range(DEPTH // 3):
        n_in = IN_CH if d == 0 else C4
        key, k1, k2, k3, k4, k5 = jax.random.split(key, 6)
        if n_in != C4:
            wsc = jax.random.normal(k1, (C4, n_in, 1)) / np.sqrt(n_in)
        else:
            # BN-only shortcut in PyTorch: identity 1x1 conv is mathematically identical
            wsc = jnp.eye(C4, dtype=jnp.float32)[:, :, None]
        scale, shift = _bn_scale_shift(k2, k3, k4, k5, C4)
        shortcuts.append(dict(wsc=wsc, scale=scale, shift=shift))

    return modules, shortcuts


# ----------------------------------- main ------------------------------------
if __name__ == "__main__":
    key = jax.random.PRNGKey(0)
    key, xk = jax.random.split(key)
    x = jax.random.normal(xk, (B, IN_CH, T), dtype=jnp.float32)   # PyTorch NCL layout

    modules, shortcuts = init_params(key)
    fused = prepare_fused_params(modules, shortcuts)              # one-time packing

    out = inception_block_pallas(x, fused)
    out = jax.block_until_ready(out)

    ref = ref_forward(x, modules, shortcuts)
    np.testing.assert_allclose(np.asarray(out), np.asarray(ref), rtol=5e-4, atol=5e-4)

    print("KERNEL_OK")
</pallas_src>

<mosaic_0001>
module attributes {stable_mosaic.version = 11 : i64} {
  func.func @_inception_block_kernel(%arg0: memref<2x16x32xf32, #tpu.memory_space<vmem>>, %arg1: memref<6x256x32xf32, #tpu.memory_space<vmem>>, %arg2: memref<6x1x32xf32, #tpu.memory_space<vmem>>, %arg3: memref<2x32x32xf32, #tpu.memory_space<vmem>>, %arg4: memref<2x1x32xf32, #tpu.memory_space<vmem>>, %arg5: memref<2x16x32xf32, #tpu.memory_space<vmem>>) attributes {dimension_semantics = [], scalar_prefetch = 0 : i64, scratch_operands = 0 : i64, tpu.core_type = #tpu.core_type<tc>} {
    %c0 = arith.constant 0 : index
    %c0_0 = arith.constant 0 : index
    %c0_1 = arith.constant 0 : index
    %0 = vector.load %arg0[%c0, %c0_0, %c0_1] : memref<2x16x32xf32, #tpu.memory_space<vmem>>, vector<2x16x32xf32>
    %cst = arith.constant 0.000000e+00 : f32
    %1 = vector.broadcast %cst : f32 to vector<2x8x32xf32>
    %cst_2 = arith.constant 0xFF800000 : f32
    %2 = vector.broadcast %cst_2 : f32 to vector<2x8x32xf32>
    %3 = tpu.concatenate %1, %0, %1 in 1 : vector<2x8x32xf32>, vector<2x16x32xf32>, vector<2x8x32xf32> -> vector<2x32x32xf32>
    %4 = vector.extract_strided_slice %3 {offsets = [0, 5, 0], sizes = [2, 16, 32], strides = [1, 1, 1]} : vector<2x32x32xf32> to vector<2x16x32xf32>
    %5 = vector.extract_strided_slice %3 {offsets = [0, 6, 0], sizes = [2, 16, 32], strides = [1, 1, 1]} : vector<2x32x32xf32> to vector<2x16x32xf32>
    %6 = vector.extract_strided_slice %3 {offsets = [0, 7, 0], sizes = [2, 16, 32], strides = [1, 1, 1]} : vector<2x32x32xf32> to vector<2x16x32xf32>
    %7 = vector.extract_strided_slice %3 {offsets = [0, 8, 0], sizes = [2, 16, 32], strides = [1, 1, 1]} : vector<2x32x32xf32> to vector<2x16x32xf32>
    %8 = vector.extract_strided_slice %3 {offsets = [0, 9, 0], sizes = [2, 16, 32], strides = [1, 1, 1]} : vector<2x32x32xf32> to vector<2x16x32xf32>
    %9 = vector.extract_strided_slice %3 {offsets = [0, 10, 0], sizes = [2, 16, 32], strides = [1, 1, 1]} : vector<2x32x32xf32> to vector<2x16x32xf32>
    %10 = vector.extract_strided_slice %3 {offsets = [0, 11, 0], sizes = [2, 16, 32], strides = [1, 1, 1]} : vector<2x32x32xf32> to vector<2x16x32xf32>
    %11 = tpu.concatenate %2, %0, %2 in 1 : vector<2x8x32xf32>, vector<2x16x32xf32>, vector<2x8x32xf32> -> vector<2x32x32xf32>
    %12 = vector.extract_strided_slice %11 {offsets = [0, 7, 0], sizes = [2, 16, 32], strides = [1, 1, 1]} : vector<2x32x32xf32> to vector<2x16x32xf32>
    %13 = vector.extract_strided_slice %11 {offsets = [0, 8, 0], sizes = [2, 16, 32], strides = [1, 1, 1]} : vector<2x32x32xf32> to vector<2x16x32xf32>
    %14 = arith.maximumf %12, %13 : vector<2x16x32xf32>
    %15 = vector.extract_strided_slice %11 {offsets = [0, 9, 0], sizes = [2, 16, 32], strides = [1, 1, 1]} : vector<2x32x32xf32> to vector<2x16x32xf32>
    %16 = arith.maximumf %14, %15 : vector<2x16x32xf32>
    %17 = tpu.concatenate %4, %5, %6, %7, %8, %9, %10, %16 in 2 : vector<2x16x32xf32>, vector<2x16x32xf32>, vector<2x16x32xf32>, vector<2x16x32xf32>, vector<2x16x32xf32>, vector<2x16x32xf32>, vector<2x16x32xf32>, vector<2x16x32xf32> -> vector<2x16x256xf32>
    %18 = vector.shape_cast %17 : vector<2x16x256xf32> to vector<32x256xf32>
    %c0_3 = arith.constant 0 : index
    %c0_4 = arith.constant 0 : index
    %c0_5 = arith.constant 0 : index
    %19 = vector.load %arg1[%c0_3, %c0_4, %c0_5] : memref<6x256x32xf32, #tpu.memory_space<vmem>>, vector<1x256x32xf32>
    %20 = vector.shape_cast %19 : vector<1x256x32xf32> to vector<256x32xf32>
    %cst_6 = arith.constant dense<0.000000e+00> : vector<32x32xf32>
    %21 = tpu.matmul %18, %20, %cst_6 {dimension_numbers = #tpu.dot_dimension_numbers<[1], [0], [0], [1], [0, 0, 1, 1], [], []>} : vector<32x256xf32>, vector<256x32xf32>, vector<32x32xf32> -> vector<32x32xf32>
    %c0_7 = arith.constant 0 : index
    %c0_8 = arith.constant 0 : index
    %c0_9 = arith.constant 0 : index
    %22 = vector.load %arg2[%c0_7, %c0_8, %c0_9] : memref<6x1x32xf32, #tpu.memory_space<vmem>>, vector<1x1x32xf32>
    %23 = vector.shape_cast %22 : vector<1x1x32xf32> to vector<1x32xf32>
    %24 = vector.broadcast %23 : vector<1x32xf32> to vector<32x32xf32>
    %25 = arith.addf %21, %24 : vector<32x32xf32>
    %cst_10 = arith.constant 0.000000e+00 : f32
    %26 = vector.broadcast %cst_10 : f32 to vector<32x32xf32>
    %27 = arith.maximumf %25, %26 : vector<32x32xf32>
    %28 = vector.shape_cast %27 : vector<32x32xf32> to vector<2x16x32xf32>
    %29 = tpu.concatenate %1, %28, %1 in 1 : vector<2x8x32xf32>, vector<2x16x32xf32>, vector<2x8x32xf32> -> vector<2x32x32xf32>
    %30 = vector.extract_strided_slice %29 {offsets = [0, 5, 0], sizes = [2, 16, 32], strides = [1, 1, 1]} : vector<2x32x32xf32> to vector<2x16x32xf32>
    %31 = vector.extract_strided_slice %29 {offsets = [0, 6, 0], sizes = [2, 16, 32], strides = [1, 1, 1]} : vector<2x32x32xf32> to vector<2x16x32xf32>
    %32 = vector.extract_strided_slice %29 {offsets = [0, 7, 0], sizes = [2, 16, 32], strides = [1, 1, 1]} : vector<2x32x32xf32> to vector<2x16x32xf32>
    %33 = vector.extract_strided_slice %29 {offsets = [0, 8, 0], sizes = [2, 16, 32], strides = [1, 1, 1]} : vector<2x32x32xf32> to vector<2x16x32xf32>
    %34 = vector.extract_strided_slice %29 {offsets = [0, 9, 0], sizes = [2, 16, 32], strides = [1, 1, 1]} : vector<2x32x32xf32> to vector<2x16x32xf32>
    %35 = vector.extract_strided_slice %29 {offsets = [0, 10, 0], sizes = [2, 16, 32], strides = [1, 1, 1]} : vector<2x32x32xf32> to vector<2x16x32xf32>
    %36 = vector.extract_strided_slice %29 {offsets = [0, 11, 0], sizes = [2, 16, 32], strides = [1, 1, 1]} : vector<2x32x32xf32> to vector<2x16x32xf32>
    %37 = tpu.concatenate %2, %28, %2 in 1 : vector<2x8x32xf32>, vector<2x16x32xf32>, vector<2x8x32xf32> -> vector<2x32x32xf32>
    %38 = vector.extract_strided_slice %37 {offsets = [0, 7, 0], sizes = [2, 16, 32], strides = [1, 1, 1]} : vector<2x32x32xf32> to vector<2x16x32xf32>
    %39 = vector.extract_strided_slice %37 {offsets = [0, 8, 0], sizes = [2, 16, 32], strides = [1, 1, 1]} : vector<2x32x32xf32> to vector<2x16x32xf32>
    %40 = arith.maximumf %38, %39 : vector<2x16x32xf32>
    %41 = vector.extract_strided_slice %37 {offsets = [0, 9, 0], sizes = [2, 16, 32], strides = [1, 1, 1]} : vector<2x32x32xf32> to vector<2x16x32xf32>
    %42 = arith.maximumf %40, %41 : vector<2x16x32xf32>
    %43 = tpu.concatenate %30, %31, %32, %33, %34, %35, %36, %42 in 2 : vector<2x16x32xf32>, vector<2x16x32xf32>, vector<2x16x32xf32>, vector<2x16x32xf32>, vector<2x16x32xf32>, vector<2x16x32xf32>, vector<2x16x32xf32>, vector<2x16x32xf32> -> vector<2x16x256xf32>
    %44 = vector.shape_cast %43 : vector<2x16x256xf32> to vector<32x256xf32>
    %c1 = arith.constant 1 : index
    %c0_11 = arith.constant 0 : index
    %c0_12 = arith.constant 0 : index
    %45 = vector.load %arg1[%c1, %c0_11, %c0_12] : memref<6x256x32xf32, #tpu.memory_space<vmem>>, vector<1x256x32xf32>
    %46 = vector.shape_cast %45 : vector<1x256x32xf32> to vector<256x32xf32>
    %cst_13 = arith.constant dense<0.000000e+00> : vector<32x32xf32>
    %47 = tpu.matmul %44, %46, %cst_13 {dimension_numbers = #tpu.dot_dimension_numbers<[1], [0], [0], [1], [0, 0, 1, 1], [], []>} : vector<32x256xf32>, vector<256x32xf32>, vector<32x32xf32> -> vector<32x32xf32>
    %c1_14 = arith.constant 1 : index
    %c0_15 = arith.constant 0 : index
    %c0_16 = arith.constant 0 : index
    %48 = vector.load %arg2[%c1_14, %c0_15, %c0_16] : memref<6x1x32xf32, #tpu.memory_space<vmem>>, vector<1x1x32xf32>
    %49 = vector.shape_cast %48 : vector<1x1x32xf32> to vector<1x32xf32>
    %50 = vector.broadcast %49 : vector<1x32xf32> to vector<32x32xf32>
    %51 = arith.addf %47, %50 : vector<32x32xf32>
    %cst_17 = arith.constant 0.000000e+00 : f32
    %52 = vector.broadcast %cst_17 : f32 to vector<32x32xf32>
    %53 = arith.maximumf %51, %52 : vector<32x32xf32>
    %54 = vector.shape_cast %53 : vector<32x32xf32> to vector<2x16x32xf32>
    %55 = tpu.concatenate %1, %54, %1 in 1 : vector<2x8x32xf32>, vector<2x16x32xf32>, vector<2x8x32xf32> -> vector<2x32x32xf32>
    %56 = vector.extract_strided_slice %55 {offsets = [0, 5, 0], sizes = [2, 16, 32], strides = [1, 1, 1]} : vector<2x32x32xf32> to vector<2x16x32xf32>
    %57 = vector.extract_strided_slice %55 {offsets = [0, 6, 0], sizes = [2, 16, 32], strides = [1, 1, 1]} : vector<2x32x32xf32> to vector<2x16x32xf32>
    %58 = vector.extract_strided_slice %55 {offsets = [0, 7, 0], sizes = [2, 16, 32], strides = [1, 1, 1]} : vector<2x32x32xf32> to vector<2x16x32xf32>
    %59 = vector.extract_strided_slice %55 {offsets = [0, 8, 0], sizes = [2, 16, 32], strides = [1, 1, 1]} : vector<2x32x32xf32> to vector<2x16x32xf32>
    %60 = vector.extract_strided_slice %55 {offsets = [0, 9, 0], sizes = [2, 16, 32], strides = [1, 1, 1]} : vector<2x32x32xf32> to vector<2x16x32xf32>
    %61 = vector.extract_strided_slice %55 {offsets = [0, 10, 0], sizes = [2, 16, 32], strides = [1, 1, 1]} : vector<2x32x32xf32> to vector<2x16x32xf32>
    %62 = vector.extract_strided_slice %55 {offsets = [0, 11, 0], sizes = [2, 16, 32], strides = [1, 1, 1]} : vector<2x32x32xf32> to vector<2x16x32xf32>
    %63 = tpu.concatenate %2, %54, %2 in 1 : vector<2x8x32xf32>, vector<2x16x32xf32>, vector<2x8x32xf32> -> vector<2x32x32xf32>
    %64 = vector.extract_strided_slice %63 {offsets = [0, 7, 0], sizes = [2, 16, 32], strides = [1, 1, 1]} : vector<2x32x32xf32> to vector<2x16x32xf32>
    %65 = vector.extract_strided_slice %63 {offsets = [0, 8, 0], sizes = [2, 16, 32], strides = [1, 1, 1]} : vector<2x32x32xf32> to vector<2x16x32xf32>
    %66 = arith.maximumf %64, %65 : vector<2x16x32xf32>
    %67 = vector.extract_strided_slice %63 {offsets = [0, 9, 0], sizes = [2, 16, 32], strides = [1, 1, 1]} : vector<2x32x32xf32> to vector<2x16x32xf32>
    %68 = arith.maximumf %66, %67 : vector<2x16x32xf32>
    %69 = tpu.concatenate %56, %57, %58, %59, %60, %61, %62, %68 in 2 : vector<2x16x32xf32>, vector<2x16x32xf32>, vector<2x16x32xf32>, vector<2x16x32xf32>, vector<2x16x32xf32>, vector<2x16x32xf32>, vector<2x16x32xf32>, vector<2x16x32xf32> -> vector<2x16x256xf32>
    %70 = vector.shape_cast %69 : vector<2x16x256xf32> to vector<32x256xf32>
    %c2 = arith.constant 2 : index
    %c0_18 = arith.constant 0 : index
    %c0_19 = arith.constant 0 : index
    %71 = vector.load %arg1[%c2, %c0_18, %c0_19] : memref<6x256x32xf32, #tpu.memory_space<vmem>>, vector<1x256x32xf32>
    %72 = vector.shape_cast %71 : vector<1x256x32xf32> to vector<256x32xf32>
    %cst_20 = arith.constant dense<0.000000e+00> : vector<32x32xf32>
    %73 = tpu.matmul %70, %72, %cst_20 {dimension_numbers = #tpu.dot_dimension_numbers<[1], [0], [0], [1], [0, 0, 1, 1], [], []>} : vector<32x256xf32>, vector<256x32xf32>, vector<32x32xf32> -> vector<32x32xf32>
    %c2_21 = arith.constant 2 : index
    %c0_22 = arith.constant 0 : index
    %c0_23 = arith.constant 0 : index
    %74 = vector.load %arg2[%c2_21, %c0_22, %c0_23] : memref<6x1x32xf32, #tpu.memory_space<vmem>>, vector<1x1x32xf32>
    %75 = vector.shape_cast %74 : vector<1x1x32xf32> to vector<1x32xf32>
    %76 = vector.broadcast %75 : vector<1x32xf32> to vector<32x32xf32>
    %77 = arith.addf %73, %76 : vector<32x32xf32>
    %cst_24 = arith.constant 0.000000e+00 : f32
    %78 = vector.broadcast %cst_24 : f32 to vector<32x32xf32>
    %79 = arith.maximumf %77, %78 : vector<32x32xf32>
    %80 = vector.shape_cast %79 : vector<32x32xf32> to vector<2x16x32xf32>
    %81 = vector.shape_cast %0 : vector<2x16x32xf32> to vector<32x32xf32>
    %c0_25 = arith.constant 0 : index
    %c0_26 = arith.constant 0 : index
    %c0_27 = arith.constant 0 : index
    %82 = vector.load %arg3[%c0_25, %c0_26, %c0_27] : memref<2x32x32xf32, #tpu.memory_space<vmem>>, vector<1x32x32xf32>
    %83 = vector.shape_cast %82 : vector<1x32x32xf32> to vector<32x32xf32>
    %cst_28 = arith.constant dense<0.000000e+00> : vector<32x32xf32>
    %84 = tpu.matmul %81, %83, %cst_28 {dimension_numbers = #tpu.dot_dimension_numbers<[1], [0], [0], [1], [0, 0, 1, 1], [], []>} : vector<32x32xf32>, vector<32x32xf32>, vector<32x32xf32> -> vector<32x32xf32>
    %c0_29 = arith.constant 0 : index
    %c0_30 = arith.constant 0 : index
    %c0_31 = arith.constant 0 : index
    %85 = vector.load %arg4[%c0_29, %c0_30, %c0_31] : memref<2x1x32xf32, #tpu.memory_space<vmem>>, vector<1x1x32xf32>
    %86 = vector.shape_cast %85 : vector<1x1x32xf32> to vector<1x32xf32>
    %87 = vector.broadcast %86 : vector<1x32xf32> to vector<32x32xf32>
    %88 = arith.addf %84, %87 : vector<32x32xf32>
    %89 = vector.shape_cast %88 : vector<32x32xf32> to vector<2x16x32xf32>
    %90 = arith.addf %80, %89 : vector<2x16x32xf32>
    %cst_32 = arith.constant 0.000000e+00 : f32
    %91 = vector.broadcast %cst_32 : f32 to vector<2x16x32xf32>
    %92 = arith.maximumf %90, %91 : vector<2x16x32xf32>
    %93 = tpu.concatenate %1, %92, %1 in 1 : vector<2x8x32xf32>, vector<2x16x32xf32>, vector<2x8x32xf32> -> vector<2x32x32xf32>
    %94 = vector.extract_strided_slice %93 {offsets = [0, 5, 0], sizes = [2, 16, 32], strides = [1, 1, 1]} : vector<2x32x32xf32> to vector<2x16x32xf32>
    %95 = vector.extract_strided_slice %93 {offsets = [0, 6, 0], sizes = [2, 16, 32], strides = [1, 1, 1]} : vector<2x32x32xf32> to vector<2x16x32xf32>
    %96 = vector.extract_strided_slice %93 {offsets = [0, 7, 0], sizes = [2, 16, 32], strides = [1, 1, 1]} : vector<2x32x32xf32> to vector<2x16x32xf32>
    %97 = vector.extract_strided_slice %93 {offsets = [0, 8, 0], sizes = [2, 16, 32], strides = [1, 1, 1]} : vector<2x32x32xf32> to vector<2x16x32xf32>
    %98 = vector.extract_strided_slice %93 {offsets = [0, 9, 0], sizes = [2, 16, 32], strides = [1, 1, 1]} : vector<2x32x32xf32> to vector<2x16x32xf32>
    %99 = vector.extract_strided_slice %93 {offsets = [0, 10, 0], sizes = [2, 16, 32], strides = [1, 1, 1]} : vector<2x32x32xf32> to vector<2x16x32xf32>
    %100 = vector.extract_strided_slice %93 {offsets = [0, 11, 0], sizes = [2, 16, 32], strides = [1, 1, 1]} : vector<2x32x32xf32> to vector<2x16x32xf32>
    %101 = tpu.concatenate %2, %92, %2 in 1 : vector<2x8x32xf32>, vector<2x16x32xf32>, vector<2x8x32xf32> -> vector<2x32x32xf32>
    %102 = vector.extract_strided_slice %101 {offsets = [0, 7, 0], sizes = [2, 16, 32], strides = [1, 1, 1]} : vector<2x32x32xf32> to vector<2x16x32xf32>
    %103 = vector.extract_strided_slice %101 {offsets = [0, 8, 0], sizes = [2, 16, 32], strides = [1, 1, 1]} : vector<2x32x32xf32> to vector<2x16x32xf32>
    %104 = arith.maximumf %102, %103 : vector<2x16x32xf32>
    %105 = vector.extract_strided_slice %101 {offsets = [0, 9, 0], sizes = [2, 16, 32], strides = [1, 1, 1]} : vector<2x32x32xf32> to vector<2x16x32xf32>
    %106 = arith.maximumf %104, %105 : vector<2x16x32xf32>
    %107 = tpu.concatenate %94, %95, %96, %97, %98, %99, %100, %106 in 2 : vector<2x16x32xf32>, vector<2x16x32xf32>, vector<2x16x32xf32>, vector<2x16x32xf32>, vector<2x16x32xf32>, vector<2x16x32xf32>, vector<2x16x32xf32>, vector<2x16x32xf32> -> vector<2x16x256xf32>
    %108 = vector.shape_cast %107 : vector<2x16x256xf32> to vector<32x256xf32>
    %c3 = arith.constant 3 : index
    %c0_33 = arith.constant 0 : index
    %c0_34 = arith.constant 0 : index
    %109 = vector.load %arg1[%c3, %c0_33, %c0_34] : memref<6x256x32xf32, #tpu.memory_space<vmem>>, vector<1x256x32xf32>
    %110 = vector.shape_cast %109 : vector<1x256x32xf32> to vector<256x32xf32>
    %cst_35 = arith.constant dense<0.000000e+00> : vector<32x32xf32>
    %111 = tpu.matmul %108, %110, %cst_35 {dimension_numbers = #tpu.dot_dimension_numbers<[1], [0], [0], [1], [0, 0, 1, 1], [], []>} : vector<32x256xf32>, vector<256x32xf32>, vector<32x32xf32> -> vector<32x32xf32>
    %c3_36 = arith.constant 3 : index
    %c0_37 = arith.constant 0 : index
    %c0_38 = arith.constant 0 : index
    %112 = vector.load %arg2[%c3_36, %c0_37, %c0_38] : memref<6x1x32xf32, #tpu.memory_space<vmem>>, vector<1x1x32xf32>
    %113 = vector.shape_cast %112 : vector<1x1x32xf32> to vector<1x32xf32>
    %114 = vector.broadcast %113 : vector<1x32xf32> to vector<32x32xf32>
    %115 = arith.addf %111, %114 : vector<32x32xf32>
    %cst_39 = arith.constant 0.000000e+00 : f32
    %116 = vector.broadcast %cst_39 : f32 to vector<32x32xf32>
    %117 = arith.maximumf %115, %116 : vector<32x32xf32>
    %118 = vector.shape_cast %117 : vector<32x32xf32> to vector<2x16x32xf32>
    %119 = tpu.concatenate %1, %118, %1 in 1 : vector<2x8x32xf32>, vector<2x16x32xf32>, vector<2x8x32xf32> -> vector<2x32x32xf32>
    %120 = vector.extract_strided_slice %119 {offsets = [0, 5, 0], sizes = [2, 16, 32], strides = [1, 1, 1]} : vector<2x32x32xf32> to vector<2x16x32xf32>
    %121 = vector.extract_strided_slice %119 {offsets = [0, 6, 0], sizes = [2, 16, 32], strides = [1, 1, 1]} : vector<2x32x32xf32> to vector<2x16x32xf32>
    %122 = vector.extract_strided_slice %119 {offsets = [0, 7, 0], sizes = [2, 16, 32], strides = [1, 1, 1]} : vector<2x32x32xf32> to vector<2x16x32xf32>
    %123 = vector.extract_strided_slice %119 {offsets = [0, 8, 0], sizes = [2, 16, 32], strides = [1, 1, 1]} : vector<2x32x32xf32> to vector<2x16x32xf32>
    %124 = vector.extract_strided_slice %119 {offsets = [0, 9, 0], sizes = [2, 16, 32], strides = [1, 1, 1]} : vector<2x32x32xf32> to vector<2x16x32xf32>
    %125 = vector.extract_strided_slice %119 {offsets = [0, 10, 0], sizes = [2, 16, 32], strides = [1, 1, 1]} : vector<2x32x32xf32> to vector<2x16x32xf32>
    %126 = vector.extract_strided_slice %119 {offsets = [0, 11, 0], sizes = [2, 16, 32], strides = [1, 1, 1]} : vector<2x32x32xf32> to vector<2x16x32xf32>
    %127 = tpu.concatenate %2, %118, %2 in 1 : vector<2x8x32xf32>, vector<2x16x32xf32>, vector<2x8x32xf32> -> vector<2x32x32xf32>
    %128 = vector.extract_strided_slice %127 {offsets = [0, 7, 0], sizes = [2, 16, 32], strides = [1, 1, 1]} : vector<2x32x32xf32> to vector<2x16x32xf32>
    %129 = vector.extract_strided_slice %127 {offsets = [0, 8, 0], sizes = [2, 16, 32], strides = [1, 1, 1]} : vector<2x32x32xf32> to vector<2x16x32xf32>
    %130 = arith.maximumf %128, %129 : vector<2x16x32xf32>
    %131 = vector.extract_strided_slice %127 {offsets = [0, 9, 0], sizes = [2, 16, 32], strides = [1, 1, 1]} : vector<2x32x32xf32> to vector<2x16x32xf32>
    %132 = arith.maximumf %130, %131 : vector<2x16x32xf32>
    %133 = tpu.concatenate %120, %121, %122, %123, %124, %125, %126, %132 in 2 : vector<2x16x32xf32>, vector<2x16x32xf32>, vector<2x16x32xf32>, vector<2x16x32xf32>, vector<2x16x32xf32>, vector<2x16x32xf32>, vector<2x16x32xf32>, vector<2x16x32xf32> -> vector<2x16x256xf32>
    %134 = vector.shape_cast %133 : vector<2x16x256xf32> to vector<32x256xf32>
    %c4 = arith.constant 4 : index
    %c0_40 = arith.constant 0 : index
    %c0_41 = arith.constant 0 : index
    %135 = vector.load %arg1[%c4, %c0_40, %c0_41] : memref<6x256x32xf32, #tpu.memory_space<vmem>>, vector<1x256x32xf32>
    %136 = vector.shape_cast %135 : vector<1x256x32xf32> to vector<256x32xf32>
    %cst_42 = arith.constant dense<0.000000e+00> : vector<32x32xf32>
    %137 = tpu.matmul %134, %136, %cst_42 {dimension_numbers = #tpu.dot_dimension_numbers<[1], [0], [0], [1], [0, 0, 1, 1], [], []>} : vector<32x256xf32>, vector<256x32xf32>, vector<32x32xf32> -> vector<32x32xf32>
    %c4_43 = arith.constant 4 : index
    %c0_44 = arith.constant 0 : index
    %c0_45 = arith.constant 0 : index
    %138 = vector.load %arg2[%c4_43, %c0_44, %c0_45] : memref<6x1x32xf32, #tpu.memory_space<vmem>>, vector<1x1x32xf32>
    %139 = vector.shape_cast %138 : vector<1x1x32xf32> to vector<1x32xf32>
    %140 = vector.broadcast %139 : vector<1x32xf32> to vector<32x32xf32>
    %141 = arith.addf %137, %140 : vector<32x32xf32>
    %cst_46 = arith.constant 0.000000e+00 : f32
    %142 = vector.broadcast %cst_46 : f32 to vector<32x32xf32>
    %143 = arith.maximumf %141, %142 : vector<32x32xf32>
    %144 = vector.shape_cast %143 : vector<32x32xf32> to vector<2x16x32xf32>
    %145 = tpu.concatenate %1, %144, %1 in 1 : vector<2x8x32xf32>, vector<2x16x32xf32>, vector<2x8x32xf32> -> vector<2x32x32xf32>
    %146 = vector.extract_strided_slice %145 {offsets = [0, 5, 0], sizes = [2, 16, 32], strides = [1, 1, 1]} : vector<2x32x32xf32> to vector<2x16x32xf32>
    %147 = vector.extract_strided_slice %145 {offsets = [0, 6, 0], sizes = [2, 16, 32], strides = [1, 1, 1]} : vector<2x32x32xf32> to vector<2x16x32xf32>
    %148 = vector.extract_strided_slice %145 {offsets = [0, 7, 0], sizes = [2, 16, 32], strides = [1, 1, 1]} : vector<2x32x32xf32> to vector<2x16x32xf32>
    %149 = vector.extract_strided_slice %145 {offsets = [0, 8, 0], sizes = [2, 16, 32], strides = [1, 1, 1]} : vector<2x32x32xf32> to vector<2x16x32xf32>
    %150 = vector.extract_strided_slice %145 {offsets = [0, 9, 0], sizes = [2, 16, 32], strides = [1, 1, 1]} : vector<2x32x32xf32> to vector<2x16x32xf32>
    %151 = vector.extract_strided_slice %145 {offsets = [0, 10, 0], sizes = [2, 16, 32], strides = [1, 1, 1]} : vector<2x32x32xf32> to vector<2x16x32xf32>
    %152 = vector.extract_strided_slice %145 {offsets = [0, 11, 0], sizes = [2, 16, 32], strides = [1, 1, 1]} : vector<2x32x32xf32> to vector<2x16x32xf32>
    %153 = tpu.concatenate %2, %144, %2 in 1 : vector<2x8x32xf32>, vector<2x16x32xf32>, vector<2x8x32xf32> -> vector<2x32x32xf32>
    %154 = vector.extract_strided_slice %153 {offsets = [0, 7, 0], sizes = [2, 16, 32], strides = [1, 1, 1]} : vector<2x32x32xf32> to vector<2x16x32xf32>
    %155 = vector.extract_strided_slice %153 {offsets = [0, 8, 0], sizes = [2, 16, 32], strides = [1, 1, 1]} : vector<2x32x32xf32> to vector<2x16x32xf32>
    %156 = arith.maximumf %154, %155 : vector<2x16x32xf32>
    %157 = vector.extract_strided_slice %153 {offsets = [0, 9, 0], sizes = [2, 16, 32], strides = [1, 1, 1]} : vector<2x32x32xf32> to vector<2x16x32xf32>
    %158 = arith.maximumf %156, %157 : vector<2x16x32xf32>
    %159 = tpu.concatenate %146, %147, %148, %149, %150, %151, %152, %158 in 2 : vector<2x16x32xf32>, vector<2x16x32xf32>, vector<2x16x32xf32>, vector<2x16x32xf32>, vector<2x16x32xf32>, vector<2x16x32xf32>, vector<2x16x32xf32>, vector<2x16x32xf32> -> vector<2x16x256xf32>
    %160 = vector.shape_cast %159 : vector<2x16x256xf32> to vector<32x256xf32>
    %c5 = arith.constant 5 : index
    %c0_47 = arith.constant 0 : index
    %c0_48 = arith.constant 0 : index
    %161 = vector.load %arg1[%c5, %c0_47, %c0_48] : memref<6x256x32xf32, #tpu.memory_space<vmem>>, vector<1x256x32xf32>
    %162 = vector.shape_cast %161 : vector<1x256x32xf32> to vector<256x32xf32>
    %cst_49 = arith.constant dense<0.000000e+00> : vector<32x32xf32>
    %163 = tpu.matmul %160, %162, %cst_49 {dimension_numbers = #tpu.dot_dimension_numbers<[1], [0], [0], [1], [0, 0, 1, 1], [], []>} : vector<32x256xf32>, vector<256x32xf32>, vector<32x32xf32> -> vector<32x32xf32>
    %c5_50 = arith.constant 5 : index
    %c0_51 = arith.constant 0 : index
    %c0_52 = arith.constant 0 : index
    %164 = vector.load %arg2[%c5_50, %c0_51, %c0_52] : memref<6x1x32xf32, #tpu.memory_space<vmem>>, vector<1x1x32xf32>
    %165 = vector.shape_cast %164 : vector<1x1x32xf32> to vector<1x32xf32>
    %166 = vector.broadcast %165 : vector<1x32xf32> to vector<32x32xf32>
    %167 = arith.addf %163, %166 : vector<32x32xf32>
    %cst_53 = arith.constant 0.000000e+00 : f32
    %168 = vector.broadcast %cst_53 : f32 to vector<32x32xf32>
    %169 = arith.maximumf %167, %168 : vector<32x32xf32>
    %170 = vector.shape_cast %169 : vector<32x32xf32> to vector<2x16x32xf32>
    %171 = vector.shape_cast %92 : vector<2x16x32xf32> to vector<32x32xf32>
    %c1_54 = arith.constant 1 : index
    %c0_55 = arith.constant 0 : index
    %c0_56 = arith.constant 0 : index
    %172 = vector.load %arg3[%c1_54, %c0_55, %c0_56] : memref<2x32x32xf32, #tpu.memory_space<vmem>>, vector<1x32x32xf32>
    %173 = vector.shape_cast %172 : vector<1x32x32xf32> to vector<32x32xf32>
    %cst_57 = arith.constant dense<0.000000e+00> : vector<32x32xf32>
    %174 = tpu.matmul %171, %173, %cst_57 {dimension_numbers = #tpu.dot_dimension_numbers<[1], [0], [0], [1], [0, 0, 1, 1], [], []>} : vector<32x32xf32>, vector<32x32xf32>, vector<32x32xf32> -> vector<32x32xf32>
    %c1_58 = arith.constant 1 : index
    %c0_59 = arith.constant 0 : index
    %c0_60 = arith.constant 0 : index
    %175 = vector.load %arg4[%c1_58, %c0_59, %c0_60] : memref<2x1x32xf32, #tpu.memory_space<vmem>>, vector<1x1x32xf32>
    %176 = vector.shape_cast %175 : vector<1x1x32xf32> to vector<1x32xf32>
    %177 = vector.broadcast %176 : vector<1x32xf32> to vector<32x32xf32>
    %178 = arith.addf %174, %177 : vector<32x32xf32>
    %179 = vector.shape_cast %178 : vector<32x32xf32> to vector<2x16x32xf32>
    %180 = arith.addf %170, %179 : vector<2x16x32xf32>
    %cst_61 = arith.constant 0.000000e+00 : f32
    %181 = vector.broadcast %cst_61 : f32 to vector<2x16x32xf32>
    %182 = arith.maximumf %180, %181 : vector<2x16x32xf32>
    %c0_62 = arith.constant 0 : index
    %c0_63 = arith.constant 0 : index
    %c0_64 = arith.constant 0 : index
    %183 = vector.load %arg5[%c0_62, %c0_63, %c0_64] : memref<2x16x32xf32, #tpu.memory_space<vmem>>, vector<2x16x32xf32>
    tpu.vector_store %arg5[%c0_62, %c0_63, %c0_64], %182 {strides = array<i32>} : memref<2x16x32xf32, #tpu.memory_space<vmem>>, vector<2x16x32xf32>,
    return
  }
}

</mosaic_0001>

<bundles_post_ra>
// kernel: inception_block_pallas.1
= control target key start
LH: loop header
LB: loop body
LE: loop exit
PB: predicated region body
PF: predicated region fallthrough
CT: control target
= control target key end

     0   :  { %vm181_vm0 = vcmask 1041408   ;;  %vm153_vm1 = vcmask 1042432   ;;  %vm47_vm2 = vcmask 1045504   ;;  %v4024_v10 = vmov 0.0   ;;  %s4025_s22 = smov 64   ;;  %s4026_s23 = smov 32   ;;  %s5784_s0 = inlined_call_operand.vmem [shape: f32[2,16,32], index: 0, kind: input, shape index: {}]   ;;  %s5785_s1 = inlined_call_operand.vmem [shape: f32[6,256,32], index: 1, kind: input, shape index: {}]   ;;  %s5786_s2 = inlined_call_operand.vmem [shape: f32[6,1,32], index: 2, kind: input, shape index: {}]   ;;  %s5787_s3 = inlined_call_operand.vmem [shape: f32[2,32,32], index: 3, kind: input, shape index: {}]   ;;  %s5788_s4 = inlined_call_operand.vmem [shape: f32[2,1,32], index: 4, kind: input, shape index: {}]   ;;  %s5789_s5 = inlined_call_operand.hbm [shape: f32[2,16,32], index: 5, kind: output, shape index: {}]  }
   0x1   :  { %v4065_v0 = vld [vmem:[%s5784_s0] sm:$0xff]  ;;  %v4070_v1 = vld [vmem:[%s5784_s0 + $0x8] sm:$0xff]  ;;  %v4083_v11 = vrot.slane %v4024_v10, 2  ;;  %vm29_vm3 = vcmask 1046528   ;;  %v4094_v18 = vrot.slane %v4024_v10, 1  ;;  %vm112_vm4 = vcmask 1044480  }
   0x2   :  { %v182_v2 = vrot.slane %v4065_v0, 6  ;;  %v183_v3 = vrot.slane %v4070_v1, 6  ;;  %v154_v4 = vrot.slane %v4065_v0, 5  ;;  %v155_v5 = vrot.slane %v4070_v1, 5  ;;  %v4111_v27 = vld [vmem:[%s5784_s0 + $0x10] sm:$0xff]  ;;  %v4120_v32 = vld [vmem:[%s5784_s0 + $0x18] sm:$0xff] }
   0x3   :  { %v48_v6 = vrot.slane %v4065_v0, 2  ;;  %v4078_v7 = vrot.slane %v4070_v1, 2  ;;  %v30_v15 = vrot.slane %v4065_v0, 1  ;;  %v4091_v17 = vrot.slane %v4070_v1, 1  ;;  %s4028_s28 = smov 96  }
   0x4   :  { %v184_v8 = vsel %vm181_vm0, %v182_v2, %v183_v3  ;;  %v156_v9 = vsel %vm153_vm1, %v154_v4, %v155_v5  ;;  %v113_v20 = vrot.slane %v4065_v0, 3  ;;  %v114_v21 = vrot.slane %v4070_v1, 3 }
   0x5   :  { %v3466_v12 = vpack.i.bf16 %v184_v8, %v182_v2  ;;  %v3456_v13 = vpack.i.bf16 %v156_v9, %v154_v4  ;;  %v50_v14 = vsel %vm47_vm2, %v48_v6, %v4078_v7  ;;  %v92_v16 = vsel %vm47_vm2, %v4083_v11, %v48_v6 }
   0x6   :  { %v3471_v19 = vpack.i.bf16 %v50_v14, %v92_v16  ;;  %v32_v22 = vsel %vm29_vm3, %v30_v15, %v4091_v17  ;;  %v71_v23 = vsel %vm29_vm3, %v4094_v18, %v30_v15  ;;  %v43_v24 = vmax.f32 %v4070_v1, %v4091_v17 }
   0x7   :  { %3467 = vrot.lane.b32.xlu1 %v3466_v12, %s4025_s22  ;;  %3457 = vrot.lane.b32.xlu0 %v3456_v13, %s4026_s23  ;;  %v4027_v25 = vmov -inf   ;;  %v3461_v28 = vpack.i.bf16 %v32_v22, %v71_v23  ;;  %v42_v29 = vmax.f32 %v4065_v0, %v32_v22  ;;  %v115_v30 = vsel %vm112_vm4, %v113_v20, %v114_v21 }
   0x8   :  { %v4106_v26 = vrot.slane %v4027_v25, 2  ;;  %v63_v31 = vmax.f32 %v30_v15, %v48_v6  ;;  %v3476_v33 = vpack.i.bf16 %v115_v30, %v113_v20  ;;  %v4126_v35 = vrot.slane %v4024_v10, 5 }
   0x9   :  { %v4129_v36 = vrot.slane %v4024_v10, 6  ;;  %v64_v37 = vmax.f32 %v42_v29, %v50_v14  ;;  %v159_v40 = vrot.slane %v4111_v27, 5  ;;  %v160_v42 = vrot.slane %v4120_v32, 5 }
   0xa   :  { %v52_v34 = vsel %vm47_vm2, %v4078_v7, %v4106_v26  ;;  %v215_v39 = vrot.slane %v63_v31, 2  ;;  %v33_v43 = vrot.slane %v4111_v27, 1  ;;  %v158_v46 = vsel %vm153_vm1, %v155_v5, %v4126_v35 }
   0xb   :  { %3472 = vrot.lane.b32.xlu1 %v3471_v19, %s4025_s22  ;;  %3462 = vrot.lane.b32.xlu0 %v3461_v28, %s4026_s23  ;;  %v65_v38 = vmax.f32 %v43_v24, %v52_v34  ;;  %v186_v41 = vsel %vm181_vm0, %v183_v3, %v4129_v36  ;;  %v216_v44 = vrot.slane %v64_v37, 2  ;;  %v4142_v48 = vrot.slane %v4120_v32, 1 }
   0xc   :  { %v3491_v47 = vpack.i.bf16 %v4078_v7, %v186_v41  ;;  %v161_v51 = vsel %vm153_vm1, %v159_v40, %v160_v42  ;;  %v187_v52 = vrot.slane %v4111_v27, 6 }
   0xd   :  { %v218_v45 = vrot.slane %v65_v38, 2  ;;  %v217_v49 = vsel %vm47_vm2, %v215_v39, %v216_v44 }
   0xf   :  { %3477 = vrot.lane.b32.xlu1 %v3476_v33, %s4028_s28  ;;  %v219_v50 = vsel %vm47_vm2, %v216_v44, %v218_v45 }
  0x10   :  { %10 = vsyncpa [#allocation3], 0  ;;  %v3481_v53 = vpack.i.bf16 %v219_v50, %v217_v49  ;;  %v35_v54 = vsel %vm29_vm3, %v33_v43, %v4142_v48  ;;  %v188_v55 = vrot.slane %v4120_v32, 6  ;;  %v53_v56 = vrot.slane %v4111_v27, 2  ;;  %v338_v62 = vld [vmem:[%s5785_s1 + $0x80] sm:$0xff]  ;;  %v339_v63 = vld [vmem:[%s5785_s1 + $0x88] sm:$0xff] }
  0x11   :  { %v44_v57 = vmax.f32 %v4111_v27, %v35_v54  ;;  %v4157_v58 = vrot.slane %v4120_v32, 2  ;;  %v45_v59 = vmax.f32 %v4120_v32, %v4142_v48  ;;  %v3486_v60 = vpack.i.bf16 %v4091_v17, %v158_v46  ;;  %v322_v5 = vld [vmem:[%s5785_s1] sm:$0xff]  ;;  %v323_v12 = vld [vmem:[%s5785_s1 + $0x8] sm:$0xff]  ;;  %v340_v13 = vld [vmem:[%s5785_s1 + $0x90] sm:$0xff] }
  0x12   :  { %3482 = vrot.lane.b32.xlu0 %v3481_v53, %s4028_s28  ;;  %v66_v61 = vmax.f32 %v33_v43, %v53_v56  ;;  %v3501_v2 = vpack.i.bf16 %v161_v51, %v159_v40  ;;  %v189_v6 = vsel %vm181_vm0, %v187_v52, %v188_v55  ;;  %v341_v14 = vld [vmem:[%s5785_s1 + $0x98] sm:$0xff]  ;;  %v3240_v15 = vpack.c.bf16 %v339_v63, %v338_v62  ;;  %v324_v22 = vld [vmem:[%s5785_s1 + $0x10] sm:$0xff]  ;;  %v343_v29 = vld [vmem:[%s5785_s1 + $0xa8] sm:$0xff] }
  0x13   :  { %3492 = vrot.lane.b32.xlu1 %v3491_v47, %s4025_s22  ;;  %v55_v3 = vsel %vm47_vm2, %v53_v56, %v4157_v58  ;;  %v56_v4 = vsel %vm47_vm2, %v4157_v58, %v4106_v26  ;;  %v3496_v16 = vpack.i.bf16 %v114_v21, %v218_v45  ;;  %v72_v17 = vsel %vm29_vm3, %v4094_v18, %v33_v43  ;;  %v325_v23 = vld [vmem:[%s5785_s1 + $0x18] sm:$0xff]  ;;  %v342_v21 = vld [vmem:[%s5785_s1 + $0xa0] sm:$0xff]  ;;  %v327_v39 = vld [vmem:[%s5785_s1 + $0x28] sm:$0xff] }
  0x14   :  { %v67_v7 = vmax.f32 %v44_v57, %v55_v3  ;;  %v68_v8 = vmax.f32 %v45_v59, %v56_v4  ;;  %v220_v9 = vrot.slane %v66_v61, 2  ;;  %v3511_v24 = vpack.i.bf16 %v189_v6, %v187_v52  ;;  %3241 = vmatprep.subr.bf16.mxu0 %v3240_v15  ;;  %v326_v38 = vld [vmem:[%s5785_s1 + $0x20] sm:$0xff]  ;;  %v344_v45 = vld [vmem:[%s5785_s1 + $0xb0] sm:$0xff]  ;;  %v345_v46 = vld [vmem:[%s5785_s1 + $0xb8] sm:$0xff] }
  0x15   :  { %v3242_v25 = vpack.c.bf16 %v323_v12, %v322_v5  ;;  %v3244_v28 = vpack.c.bf16 %v341_v14, %v340_v13  ;;  %v3246_v33 = vpack.c.bf16 %v325_v23, %v324_v22  ;;  %v3506_v34 = vpack.i.bf16 %v35_v54, %v72_v17  ;;  %v328_v52 = vld [vmem:[%s5785_s1 + $0x30] sm:$0xff]  ;;  %v329_v53 = vld [vmem:[%s5785_s1 + $0x38] sm:$0xff]  ;;  %v347_v57 = vld [vmem:[%s5785_s1 + $0xc8] sm:$0xff] }
  0x16   :  { %3487 = vrot.lane.b32.xlu0 %v3486_v60, %s4026_s23  ;;  %v221_v19 = vrot.slane %v67_v7, 2  ;;  %v223_v20 = vrot.slane %v68_v8, 2  ;;  %v3248_v37 = vpack.c.bf16 %v343_v29, %v342_v21  ;;  %v93_v40 = vsel %vm47_vm2, %v4083_v11, %v53_v56  ;;  %v346_v56 = vld [vmem:[%s5785_s1 + $0xc0] sm:$0xff]  ;;  %v349_v4 = vld [vmem:[%s5785_s1 + $0xd8] sm:$0xff]  ;;  %v335_v15 = vld [vmem:[%s5785_s1 + $0x68] sm:$0xff] }
  0x17   :  { %3502 = vrot.lane.b32.xlu1 %v3501_v2, %s4026_s23  ;;  %3243 = vmatpush3.bf16.msra.mxu0 %v3242_v25  ;;  %v116_v43 = vrot.slane %v4111_v27, 3  ;;  %v117_v44 = vrot.slane %v4120_v32, 3  ;;  %v162_v47 = vsel %vm153_vm1, %v160_v42, %v4126_v35  ;;  %v3250_v49 = vpack.c.bf16 %v327_v39, %v326_v38  ;;  %v330_v62 = vld [vmem:[%s5785_s1 + $0x40] sm:$0xff]  ;;  %v333_v8 = vld [vmem:[%s5785_s1 + $0x58] sm:$0xff]  ;;  %v336_v22 = vld [vmem:[%s5785_s1 + $0x70] sm:$0xff] }
  0x18   :  { %v222_v30 = vsel %vm47_vm2, %v220_v9, %v221_v19  ;;  %v224_v31 = vsel %vm47_vm2, %v221_v19, %v223_v20  ;;  %3245 = vmatprep.subr.bf16.mxu0 %v3244_v28  ;;  %v3516_v50 = vpack.i.bf16 %v55_v3, %v93_v40  ;;  %v3252_v51 = vpack.c.bf16 %v345_v46, %v344_v45  ;;  %v348_v3 = vld [vmem:[%s5785_s1 + $0xd0] sm:$0xff]  ;;  %v350_v9 = vld [vmem:[%s5785_s1 + $0xe0] sm:$0xff]  ;;  %v353_v17 = vld [vmem:[%s5785_s1 + $0xf8] sm:$0xff] }
  0x19   :  { %v3521_v41 = vpack.i.bf16 %v224_v31, %v222_v30  ;;  %v118_v54 = vsel %vm112_vm4, %v116_v43, %v117_v44  ;;  %v3531_v42 = vpack.i.bf16 %v4142_v48, %v162_v47  ;;  %v3254_v59 = vpack.c.bf16 %v329_v53, %v328_v52  ;;  %v331_v48 = vld [vmem:[%s5785_s1 + $0x48] sm:$0xff]  ;;  %v334_v14 = vld [vmem:[%s5785_s1 + $0x60] sm:$0xff]  ;;  %v337_v23 = vld [vmem:[%s5785_s1 + $0x78] sm:$0xff] }
  0x1a   :  { %3497 = vrot.lane.b32.xlu0 %v3496_v16, %s4028_s28  ;;  %v3526_v60 = vpack.i.bf16 %v118_v54, %v116_v43  ;;  %v3256_v61 = vpack.c.bf16 %v347_v57, %v346_v56  ;;  %v190_v63 = vsel %vm181_vm0, %v188_v55, %v4129_v36  ;;  %v3541_v2 = vpack.i.bf16 %v117_v44, %v223_v20  ;;  %v332_v55 = vld [vmem:[%s5785_s1 + $0x50] sm:$0xff] }
  0x1b   :  { %3512 = vrot.lane.b32.xlu1 %v3511_v24, %s4025_s22  ;;  %3247 = vmatpush3.bf16.msra.mxu0 %v3246_v33  ;;  %v3258_v5 = vpack.c.bf16 %v331_v48, %v330_v62  ;;  %v3536_v6 = vpack.i.bf16 %v4157_v58, %v190_v63  ;;  %v3260_v7 = vpack.c.bf16 %v349_v4, %v348_v3  ;;  %v351_v58 = vld [vmem:[%s5785_s1 + $0xe8] sm:$0xff]  ;;  %v352_v16 = vld [vmem:[%s5785_s1 + $0xf0] sm:$0xff]  ;;  %v139_v21 = vrot.slane %v4070_v1, 4 }
  0x1c   :  { %3249 = vmatprep.subr.bf16.mxu0 %v3248_v37  ;;  %v3262_v12 = vpack.c.bf16 %v333_v8, %v332_v55  ;;  %v3264_v13 = vpack.c.bf16 %v351_v58, %v350_v9  ;;  %v3266_v19 = vpack.c.bf16 %v335_v15, %v334_v14  ;;  %v3268_v20 = vpack.c.bf16 %v353_v17, %v352_v16 }
  0x1d   :  { %v3270_v24 = vpack.c.bf16 %v337_v23, %v336_v22  ;;  %v138_v29 = vrot.slane %v4065_v0, 4  ;;  %vm137_vm5 = vcmask 1043456   ;;  %vm243_vm6 = vcmask 261120  }
  0x1e   :  { %3507 = vrot.lane.b32.xlu0 %v3506_v34, %s4026_s23  ;;  %vm250_vm7 = vcmask 523264   ;;  %vm257_vm8 = vcmask 785408  }
  0x1f   :  { %3522 = vrot.lane.b32.xlu1 %v3521_v41, %s4028_s28  ;;  %3251 = vmatpush3.bf16.msra.mxu0 %v3250_v49  ;;  %v140_v41 = vsel %vm137_vm5, %v138_v29, %v139_v21 }
  0x20   :  { %3253 = vmatprep.subr.bf16.mxu0 %v3252_v51 }
  0x22   :  { %3517 = vrot.lane.b32.xlu0 %v3516_v50, %s4025_s22 }
  0x23   :  { %3532 = vrot.lane.b32.xlu1 %v3531_v42, %s4026_s23  ;;  %3255 = vmatpush3.bf16.msra.mxu0 %v3254_v59 }
  0x24   :  { %3257 = vmatprep.subr.bf16.mxu0 %v3256_v61 }
  0x26   :  { %3527 = vrot.lane.b32.xlu0 %v3526_v60, %s4028_s28 }
  0x27   :  { %3542 = vrot.lane.b32.xlu1 %v3541_v2, %s4028_s28  ;;  %3259 = vmatpush3.bf16.msra.mxu0 %v3258_v5  ;;  %v144_v5 = vrot.slane %v4120_v32, 4 }
  0x28   :  { %3261 = vmatprep.subr.bf16.mxu0 %v3260_v7 }
  0x2a   :  { %3537 = vrot.lane.b32.xlu0 %v3536_v6, %s4025_s22 }
  0x2b   :  { %3263 = vmatpush3.bf16.msra.mxu0 %v3262_v12 }
  0x2c   :  { %3265 = vmatprep.subr.bf16.mxu0 %v3264_v13 }
  0x2f   :  { %3267 = vmatpush3.bf16.msra.mxu0 %v3266_v19 }
  0x30   :  { %3269 = vmatprep.subr.bf16.mxu0 %v3268_v20 }
  0x33   :  { %3271 = vmatpush3.bf16.msra.mxu0 %v3270_v24 }
  0x79   :  { %v3468_v25 = vpop.permute.xlu1 %3467  ;;  %v3458_v28 = vpop.permute.xlu0 %3457 }
  0x7a   :  { %v3460_v37 = vunpack.i.h.bf16 %v3458_v28  ;;  %v3459_v38 = vunpack.i.l.bf16 %v3458_v28  ;;  %v3470_v46 = vunpack.i.h.bf16 %v3468_v25  ;;  %v3469_v47 = vunpack.i.l.bf16 %v3468_v25 }
  0x7c   :  { %v264_v51 = vsel %vm243_vm6, %v138_v29, %v3459_v38  ;;  %v265_v52 = vsel %vm243_vm6, %v140_v41, %v3460_v37 }
  0x7d   :  { %v3473_v30 = vpop.permute.xlu1 %3472  ;;  %v3463_v31 = vpop.permute.xlu0 %3462  ;;  %v270_v63 = vsel %vm250_vm7, %v264_v51, %v3469_v47  ;;  %v271_v2 = vsel %vm250_vm7, %v265_v52, %v3470_v46 }
  0x7e   :  { %v3465_v33 = vunpack.i.h.bf16 %v3463_v31  ;;  %v3464_v34 = vunpack.i.l.bf16 %v3463_v31  ;;  %v3475_v39 = vunpack.i.h.bf16 %v3473_v30  ;;  %v3474_v40 = vunpack.i.l.bf16 %v3473_v30 }
  0x80   :  { %v245_v43 = vsel %vm243_vm6, %v4065_v0, %v3465_v33  ;;  %v244_v44 = vsel %vm243_vm6, 0.0, %v3464_v34  ;;  %v4311_v0 = vrot.slane %v4024_v10, 4  ;;  %v143_v10 = vrot.slane %v4111_v27, 4 }
  0x81   :  { %v3478_v45 = vpop.permute.xlu1 %3477  ;;  %v251_v53 = vsel %vm250_vm7, %v244_v44, %v3474_v40  ;;  %v252_v54 = vsel %vm250_vm7, %v245_v43, %v3475_v39 }
  0x82   :  { %v3480_v49 = vunpack.i.h.bf16 %v3478_v45  ;;  %v3479_v50 = vunpack.i.l.bf16 %v3478_v45  ;;  %v142_v6 = vsel %vm137_vm5, %v139_v21, %v4311_v0  ;;  %v145_v23 = vsel %vm137_vm5, %v143_v10, %v144_v5 }
  0x84   :  { %v3483_v42 = vpop.permute.xlu0 %3482  ;;  %v258_v56 = vsel %vm257_vm8, %v251_v53, %v3479_v50  ;;  %v259_v57 = vsel %vm257_vm8, %v252_v54, %v3480_v49 }
  0x85   :  { %v3485_v59 = vunpack.i.h.bf16 %v3483_v42  ;;  %v3484_v60 = vunpack.i.l.bf16 %v3483_v42  ;;  %v3493_v61 = vpop.permute.xlu1 %3492  ;;  %v294_v62 = vrot.slane %v258_v56, 5  ;;  %v295_v48 = vrot.slane %v259_v57, 5 }
  0x86   :  { %v3495_v55 = vunpack.i.h.bf16 %v3493_v61  ;;  %v3494_v13 = vunpack.i.l.bf16 %v3493_v61 }
  0x87   :  { %v276_v3 = vsel %vm257_vm8, %v270_v63, %v3484_v60  ;;  %v277_v4 = vsel %vm257_vm8, %v271_v2, %v3485_v59  ;;  %v296_v14 = vsel %vm153_vm1, %v294_v62, %v295_v48 }
  0x88   :  { %v3488_v7 = vpop.permute.xlu0 %3487  ;;  %v297_v8 = vrot.slane %v276_v3, 5  ;;  %v298_v9 = vrot.slane %v277_v4, 5 }
  0x89   :  { %v3490_v58 = vunpack.i.h.bf16 %v3488_v7  ;;  %v3489_v12 = vunpack.i.l.bf16 %v3488_v7  ;;  %v3503_v15 = vpop.permute.xlu1 %3502 }
  0x8a   :  { %v299_v16 = vsel %vm153_vm1, %v297_v8, %v298_v9  ;;  %v3505_v17 = vunpack.i.h.bf16 %v3503_v15  ;;  %v3504_v19 = vunpack.i.l.bf16 %v3503_v15 }
  0x8b   :  { %v246_v20 = vsel %vm243_vm6, %v4070_v1, %v3490_v58  ;;  %v266_v22 = vsel %vm243_vm6, %v142_v6, %v3489_v12  ;;  %425 = vmatprep.mubr.f32.mxu0 %v299_v16  ;;  %v146_v6 = vsel %vm137_vm5, %v144_v5, %v4311_v0 }
  0x8c   :  { %v3498_v24 = vpop.permute.xlu0 %3497  ;;  %426 = vmatmul.mubr.f32.vlgmr.msra.gmra.mrb[0].mxu0 %v296_v14  ;;  %v253_v25 = vsel %vm250_vm7, %v246_v20, %v3495_v55  ;;  %v272_v28 = vsel %vm250_vm7, %v266_v22, %v3494_v13  ;;  %v268_v31 = vsel %vm243_vm6, %v145_v23, %v3505_v17  ;;  %v267_v33 = vsel %vm243_vm6, %v143_v10, %v3504_v19 }
  0x8d   :  { %v3500_v21 = vunpack.i.h.bf16 %v3498_v24  ;;  %v3499_v29 = vunpack.i.l.bf16 %v3498_v24  ;;  %v3513_v30 = vpop.permute.xlu1 %3512 }
  0x8e   :  { %v3515_v34 = vunpack.i.h.bf16 %v3513_v30  ;;  %v3514_v1 = vunpack.i.l.bf16 %v3513_v30 }
  0x8f   :  { %v278_v37 = vsel %vm257_vm8, %v272_v28, %v3499_v29  ;;  %v260_v38 = vsel %vm257_vm8, %v253_v25, %v3500_v21 }
  0x90   :  { %v3508_v39 = vpop.permute.xlu0 %3507  ;;  %v302_v40 = vrot.slane %v278_v37, 5  ;;  %v300_v41 = vrot.slane %v260_v38, 5  ;;  %v273_v45 = vsel %vm250_vm7, %v267_v33, %v3514_v1  ;;  %v274_v46 = vsel %vm250_vm7, %v268_v31, %v3515_v34  ;;  %v2763_v31 = vld [vmem:[%s5785_s1 + $0x180] sm:$0xff]  ;;  %v2764_v33 = vld [vmem:[%s5785_s1 + $0x188] sm:$0xff]  ;;  %v2765_v38 = vld [vmem:[%s5785_s1 + $0x190] sm:$0xff] }
  0x91   :  { %v3510_v43 = vunpack.i.h.bf16 %v3508_v39  ;;  %v3509_v44 = vunpack.i.l.bf16 %v3508_v39  ;;  %v3523_v47 = vpop.permute.xlu1 %3522  ;;  %v2747_v34 = vld [vmem:[%s5785_s1 + $0x100] sm:$0xff]  ;;  %v3272_v1 = vpack.c.bf16 %v2764_v33, %v2763_v31  ;;  %v2748_v37 = vld [vmem:[%s5785_s1 + $0x108] sm:$0xff]  ;;  %v2766_v39 = vld [vmem:[%s5785_s1 + $0x198] sm:$0xff] }
  0x92   :  { %v303_v49 = vsel %vm153_vm1, %v298_v9, %v302_v40  ;;  %v301_v50 = vsel %vm153_vm1, %v295_v48, %v300_v41  ;;  %v3525_v51 = vunpack.i.h.bf16 %v3523_v47  ;;  %v3524_v52 = vunpack.i.l.bf16 %v3523_v47  ;;  %v2755_v31 = vld [vmem:[%s5785_s1 + $0x140] sm:$0xff]  ;;  %v2756_v33 = vld [vmem:[%s5785_s1 + $0x148] sm:$0xff] }
  0x93   :  { %430 = vmatprep.mubr.f32.mxu0 %v303_v49  ;;  %v248_v53 = vsel %vm243_vm6, %v4111_v27, %v3510_v43  ;;  %v247_v54 = vsel %vm243_vm6, 0.0, %v3509_v44  ;;  %v3274_v40 = vpack.c.bf16 %v2748_v37, %v2747_v34  ;;  %v3276_v41 = vpack.c.bf16 %v2766_v39, %v2765_v38  ;;  %v2749_v43 = vld [vmem:[%s5785_s1 + $0x110] sm:$0xff]  ;;  %v2750_v44 = vld [vmem:[%s5785_s1 + $0x118] sm:$0xff]  ;;  %3273 = vmatprep.subr.bf16.mxu1 %v3272_v1 }
  0x94   :  { %v3518_v42 = vpop.permute.xlu0 %3517  ;;  %431 = vmatmul.mubr.f32.gmra.mrb[2].mxu0 %v301_v50  ;;  %v279_v56 = vsel %vm257_vm8, %v273_v45, %v3524_v52  ;;  %v280_v57 = vsel %vm257_vm8, %v274_v46, %v3525_v51  ;;  %v2767_v45 = vld [vmem:[%s5785_s1 + $0x1a0] sm:$0xff]  ;;  %v2768_v46 = vld [vmem:[%s5785_s1 + $0x1a8] sm:$0xff]  ;;  %v3278_v47 = vpack.c.bf16 %v2750_v44, %v2749_v43  ;;  %v2773_v38 = vld [vmem:[%s5785_s1 + $0x1d0] sm:$0xff] }
  0x95   :  { %v3520_v59 = vunpack.i.h.bf16 %v3518_v42  ;;  %v3519_v60 = vunpack.i.l.bf16 %v3518_v42  ;;  %v3533_v61 = vpop.permute.xlu1 %3532  ;;  %v307_v62 = vrot.slane %v279_v56, 5  ;;  %v308_v63 = vrot.slane %v280_v57, 5  ;;  %3275 = vmatpush3.bf16.msra.mxu1 %v3274_v40  ;;  %v2751_v57 = vld [vmem:[%s5785_s1 + $0x120] sm:$0xff]  ;;  %v2774_v39 = vld [vmem:[%s5785_s1 + $0x1d8] sm:$0xff] }
  0x96   :  { %v3535_v48 = vunpack.i.h.bf16 %v3533_v61  ;;  %v3534_v2 = vunpack.i.l.bf16 %v3533_v61  ;;  %3277 = vmatprep.subr.bf16.mxu1 %v3276_v41  ;;  %v3280_v49 = vpack.c.bf16 %v2768_v46, %v2767_v45 }
  0x97   :  { %v309_v3 = vsel %vm153_vm1, %v307_v62, %v308_v63  ;;  %v254_v4 = vsel %vm250_vm7, %v247_v54, %v3519_v60  ;;  %v255_v27 = vsel %vm250_vm7, %v248_v53, %v3520_v59  ;;  %v4394_v53 = vld [vmem:[%s5786_s2] ss:$0 sm:$0xff]  ;;  %v2752_v59 = vld [vmem:[%s5785_s1 + $0x128] sm:$0xff]  ;;  %v2769_v62 = vld [vmem:[%s5785_s1 + $0x1b0] sm:$0xff] }
  0x98   :  { %v3528_v10 = vpop.permute.xlu0 %3527  ;;  %435 = vmatprep.mubr.f32.mxu0 %v309_v3  ;;  %v249_v12 = vsel %vm243_vm6, %v4120_v32, %v3535_v48  ;;  %v269_v13 = vsel %vm243_vm6, %v146_v6, %v3534_v2  ;;  %v3282_v48 = vpack.c.bf16 %v2752_v59, %v2751_v57  ;;  %v2776_v57 = vld [vmem:[%s5785_s1 + $0x1e8] sm:$0xff] }
  0x99   :  { %v3530_v7 = vunpack.i.h.bf16 %v3528_v10  ;;  %v3529_v55 = vunpack.i.l.bf16 %v3528_v10  ;;  %v3543_v8 = vpop.permute.xlu1 %3542  ;;  %3279 = vmatpush3.bf16.msra.mxu1 %v3278_v47 }
  0x9a   :  { %v3545_v15 = vunpack.i.h.bf16 %v3543_v8  ;;  %v3544_v16 = vunpack.i.l.bf16 %v3543_v8  ;;  %3281 = vmatprep.subr.bf16.mxu1 %v3280_v49  ;;  %v2772_v8 = vld [vmem:[%s5785_s1 + $0x1c8] sm:$0xff]  ;;  %v2757_v49 = vld [vmem:[%s5785_s1 + $0x150] sm:$0xff] }
  0x9b   :  { %v261_v9 = vsel %vm257_vm8, %v254_v4, %v3529_v55  ;;  %v262_v58 = vsel %vm257_vm8, %v255_v27, %v3530_v7  ;;  %v2753_v4 = vld [vmem:[%s5785_s1 + $0x130] sm:$0xff]  ;;  %v2754_v27 = vld [vmem:[%s5785_s1 + $0x138] sm:$0xff]  ;;  %v2771_v55 = vld [vmem:[%s5785_s1 + $0x1c0] sm:$0xff] }
  0x9c   :  { %v3538_v14 = vpop.permute.xlu0 %3537  ;;  %v304_v17 = vrot.slane %v261_v9, 5  ;;  %v305_v19 = vrot.slane %v262_v58, 5  ;;  %v3286_v7 = vpack.c.bf16 %v2754_v27, %v2753_v4  ;;  %v3288_v58 = vpack.c.bf16 %v2772_v8, %v2771_v55  ;;  %v2759_v8 = vld [vmem:[%s5785_s1 + $0x160] sm:$0xff] }
  0x9d   :  { %v3540_v20 = vunpack.i.h.bf16 %v3538_v14  ;;  %v3539_v5 = vunpack.i.l.bf16 %v3538_v14  ;;  %3283 = vmatpush3.bf16.msra.mxu1 %v3282_v48 }
  0x9e   :  { %v306_v22 = vsel %vm153_vm1, %v304_v17, %v305_v19 }
  0x9f   :  { %v256_v23 = vsel %vm250_vm7, %v249_v12, %v3540_v20  ;;  %v275_v24 = vsel %vm250_vm7, %v269_v13, %v3539_v5  ;;  %436 = vmatmul.mubr.f32.gmra.mrb[4].mxu0 %v306_v22 }
  0xa0   :  { %v263_v25 = vsel %vm257_vm8, %v256_v23, %v3545_v15  ;;  %v281_v32 = vsel %vm257_vm8, %v275_v24, %v3544_v16 }
  0xa1   :  { %v312_v28 = vrot.slane %v281_v32, 5  ;;  %v310_v21 = vrot.slane %v263_v25, 5 }
  0xa3   :  { %v313_v29 = vsel %vm153_vm1, %v308_v63, %v312_v28  ;;  %v311_v30 = vsel %vm153_vm1, %v305_v19, %v310_v21  ;;  %v2770_v63 = vld [vmem:[%s5785_s1 + $0x1b8] sm:$0xff] }
  0xa4   :  { %440 = vmatprep.mubr.f32.mxu0 %v313_v29  ;;  %v3284_v2 = vpack.c.bf16 %v2770_v63, %v2769_v62 }
  0xa5   :  { %441 = vmatmul.mubr.f32.gmra.mrb[6].mxu0 %v311_v30 }
  0xa6   :  { %3285 = vmatprep.subr.bf16.mxu1 %v3284_v2 }
  0xa7   :  { %3287 = vmatpush3.bf16.msra.mxu1 %v3286_v7 }
  0xa8   :  { %3289 = vmatprep.subr.bf16.mxu1 %v3288_v58  ;;  %v2777_v58 = vld [vmem:[%s5785_s1 + $0x1f0] sm:$0xff] }
 0x15f   :  { %v2964_v50 = vpop.f32.mrb[0].mxu0 }
 0x160   :  { %v2965_v51 = vpop.f32.mrb[1].mxu0 }
 0x161   :  { %v2966_v52 = vadd.f32 %v2965_v51, %v2964_v50  ;;  %v2758_v50 = vld [vmem:[%s5785_s1 + $0x158] sm:$0xff] }
 0x162   :  { %v3294_v4 = vpack.c.bf16 %v2758_v50, %v2757_v49 }
 0x163   :  { %v428_v54 = vadd.f32 %v2966_v52, %v4394_v53 }
 0x165   :  { %v4403_v60 = vmax.f32 %v428_v54, 0.0  ;;  %v3290_v54 = vpack.c.bf16 %v2756_v33, %v2755_v31 }
 0x167   :  { %v2967_v42 = vpop.f32.mrb[2].mxu0  ;;  %v454_v6 = vrot.slane %v4403_v60, 1  ;;  %v568_v9 = vrot.slane %v4403_v60, 5  ;;  %v470_v16 = vrot.slane %v4403_v60, 2  ;;  %v594_v5 = vrot.slane %v4403_v60, 6  ;;  %3291 = vmatpush3.bf16.msra.mxu1 %v3290_v54 }
 0x168   :  { %v2968_v56 = vpop.f32.mrb[3].mxu0  ;;  %v530_v41 = vrot.slane %v4403_v60, 3 }
 0x169   :  { %v2969_v61 = vadd.f32 %v2968_v56, %v2967_v42  ;;  %v490_v20 = vsel %vm29_vm3, %v4094_v18, %v454_v6  ;;  %v484_v37 = vmax.f32 %v454_v6, %v470_v16  ;;  %v510_v40 = vsel %vm47_vm2, %v4083_v11, %v470_v16  ;;  %v2775_v56 = vld [vmem:[%s5785_s1 + $0x1e0] sm:$0xff] }
 0x16a   :  { %v3292_v42 = vpack.c.bf16 %v2774_v39, %v2773_v38  ;;  %v3296_v55 = vpack.c.bf16 %v2776_v57, %v2775_v56 }
 0x16b   :  { %v433_v3 = vadd.f32 %v2969_v61, %v4394_v53  ;;  %v626_v62 = vrot.slane %v484_v37, 2 }
 0x16c   :  { %3293 = vmatprep.subr.bf16.mxu1 %v3292_v42 }
 0x16d   :  { %v4418_v10 = vmax.f32 %v433_v3, 0.0  ;;  %3295 = vmatpush3.bf16.msra.mxu1 %v3294_v4 }
 0x16e   :  { %3297 = vmatprep.subr.bf16.mxu1 %v3296_v55 }
 0x16f   :  { %v569_v12 = vrot.slane %v4418_v10, 5  ;;  %v4430_v13 = vrot.slane %v4418_v10, 1  ;;  %v595_v14 = vrot.slane %v4418_v10, 6  ;;  %v4434_v15 = vrot.slane %v4418_v10, 2 }
 0x170   :  { %v531_v29 = vrot.slane %v4418_v10, 3 }
 0x171   :  { %v570_v17 = vsel %vm153_vm1, %v568_v9, %v569_v12  ;;  %v456_v19 = vsel %vm29_vm3, %v454_v6, %v4430_v13  ;;  %v596_v28 = vsel %vm181_vm0, %v594_v5, %v595_v14  ;;  %v472_v21 = vsel %vm47_vm2, %v470_v16, %v4434_v15 }
 0x172   :  { %v3546_v22 = vpack.i.bf16 %v570_v17, %v568_v9  ;;  %v3551_v23 = vpack.i.bf16 %v456_v19, %v490_v20  ;;  %v466_v24 = vmax.f32 %v4403_v60, %v456_v19  ;;  %v2970_v25 = vpop.f32.mrb[4].mxu0  ;;  %v467_v30 = vmax.f32 %v4418_v10, %v4430_v13  ;;  %v2760_v9 = vld [vmem:[%s5785_s1 + $0x168] sm:$0xff] }
 0x173   :  { %v2971_v32 = vpop.f32.mrb[5].mxu0  ;;  %v473_v43 = vsel %vm47_vm2, %v4434_v15, %v4106_v26  ;;  %v3556_v45 = vpack.i.bf16 %v596_v28, %v594_v5  ;;  %v3561_v46 = vpack.i.bf16 %v472_v21, %v510_v40  ;;  %v571_v51 = vsel %vm153_vm1, %v569_v12, %v4126_v35  ;;  %v2778_v12 = vld [vmem:[%s5785_s1 + $0x1f8] sm:$0xff] }
 0x174   :  { %3547 = vrot.lane.b32.xlu0 %v3546_v22, %s4026_s23  ;;  %3552 = vrot.lane.b32.xlu1 %v3551_v23, %s4026_s23  ;;  %v2972_v34 = vadd.f32 %v2971_v32, %v2970_v25  ;;  %v485_v1 = vmax.f32 %v466_v24, %v472_v21  ;;  %v486_v47 = vmax.f32 %v467_v30, %v473_v43  ;;  %v2762_v32 = vld [vmem:[%s5785_s1 + $0x178] sm:$0xff] }
 0x175   :  { %v532_v52 = vsel %vm112_vm4, %v530_v41, %v531_v29  ;;  %v597_v3 = vsel %vm181_vm0, %v595_v14, %v4129_v36  ;;  %v3571_v6 = vpack.i.bf16 %v4430_v13, %v571_v51  ;;  %v3298_v5 = vpack.c.bf16 %v2760_v9, %v2759_v8 }
 0x176   :  { %v438_v44 = vadd.f32 %v2972_v34, %v4394_v53  ;;  %v627_v61 = vrot.slane %v485_v1, 2  ;;  %v629_v2 = vrot.slane %v486_v47, 2  ;;  %v3566_v7 = vpack.i.bf16 %v532_v52, %v530_v41 }
 0x177   :  { %v3576_v14 = vpack.i.bf16 %v4434_v15, %v597_v3  ;;  %v3300_v24 = vpack.c.bf16 %v2778_v12, %v2777_v58  ;;  %v2761_v15 = vld [vmem:[%s5785_s1 + $0x170] sm:$0xff]  ;;  %3299 = vmatpush3.bf16.msra.mxu1 %v3298_v5 }
 0x178   :  { %v2973_v59 = vpop.f32.mrb[6].mxu0  ;;  %3557 = vrot.lane.b32.xlu0 %v3556_v45, %s4025_s22  ;;  %3562 = vrot.lane.b32.xlu1 %v3561_v46, %s4025_s22  ;;  %v4488_v63 = vmax.f32 %v438_v44, 0.0  ;;  %v628_v16 = vsel %vm47_vm2, %v626_v62, %v627_v61  ;;  %v3581_v17 = vpack.i.bf16 %v531_v29, %v629_v2  ;;  %v630_v19 = vsel %vm47_vm2, %v627_v61, %v629_v2 }
 0x179   :  { %v2974_v48 = vpop.f32.mrb[7].mxu0  ;;  %v3586_v31 = vpack.i.bf16 %v630_v19, %v628_v16  ;;  %3301 = vmatprep.subr.bf16.mxu1 %v3300_v24  ;;  %v3302_v38 = vpack.c.bf16 %v2762_v32, %v2761_v15  ;;  %v554_v19 = vrot.slane %v4403_v60, 4 }
 0x17a   :  { %v2975_v27 = vadd.f32 %v2974_v48, %v2973_v59  ;;  %v572_v20 = vrot.slane %v4488_v63, 5  ;;  %v457_v23 = vrot.slane %v4488_v63, 1  ;;  %v598_v25 = vrot.slane %v4488_v63, 6 }
 0x17b   :  { %3303 = vmatpush3.bf16.msra.mxu1 %v3302_v38  ;;  %v533_v52 = vrot.slane %v4488_v63, 3 }
 0x17c   :  { %v443_v13 = vadd.f32 %v2975_v27, %v4394_v53  ;;  %3572 = vrot.lane.b32.xlu0 %v3571_v6, %s4026_s23  ;;  %3567 = vrot.lane.b32.xlu1 %v3566_v7, %s4028_s28  ;;  %v474_v53 = vrot.slane %v4488_v63, 2  ;;  %v491_v33 = vsel %vm29_vm3, %v4094_v18, %v457_v23 }
 0x17e   :  { %v4512_v22 = vmax.f32 %v443_v13, 0.0  ;;  %v487_v45 = vmax.f32 %v457_v23, %v474_v53  ;;  %v511_v51 = vsel %vm47_vm2, %v4083_v11, %v474_v53  ;;  %v555_v13 = vrot.slane %v4418_v10, 4 }
 0x180   :  { %3582 = vrot.lane.b32.xlu0 %v3581_v17, %s4028_s28  ;;  %3577 = vrot.lane.b32.xlu1 %v3576_v14, %s4025_s22  ;;  %v573_v28 = vrot.slane %v4512_v22, 5  ;;  %v458_v21 = vrot.slane %v4512_v22, 1  ;;  %v599_v29 = vrot.slane %v4512_v22, 6  ;;  %v475_v30 = vrot.slane %v4512_v22, 2 }
 0x181   :  { %v534_v54 = vrot.slane %v4512_v22, 3  ;;  %v631_v57 = vrot.slane %v487_v45, 2 }
 0x182   :  { %v574_v34 = vsel %vm153_vm1, %v572_v20, %v573_v28  ;;  %v459_v1 = vsel %vm29_vm3, %v457_v23, %v458_v21  ;;  %v476_v37 = vsel %vm47_vm2, %v474_v53, %v475_v30  ;;  %v600_v43 = vsel %vm181_vm0, %v598_v25, %v599_v29 }
 0x183   :  { %v3591_v39 = vpack.i.bf16 %v574_v34, %v572_v20  ;;  %v468_v40 = vmax.f32 %v4488_v63, %v459_v1  ;;  %v3596_v41 = vpack.i.bf16 %v459_v1, %v491_v33  ;;  %v469_v44 = vmax.f32 %v4512_v22, %v458_v21 }
 0x184   :  { %3587 = vrot.lane.b32.xlu0 %v3586_v31, %s4028_s28  ;;  %v477_v47 = vsel %vm47_vm2, %v475_v30, %v4106_v26  ;;  %v3601_v50 = vpack.i.bf16 %v600_v43, %v598_v25  ;;  %v575_v56 = vsel %vm153_vm1, %v573_v28, %v4126_v35  ;;  %v3606_v61 = vpack.i.bf16 %v476_v37, %v511_v51 }
 0x185   :  { %3592 = vrot.lane.b32.xlu1 %v3591_v39, %s4026_s23  ;;  %v488_v46 = vmax.f32 %v468_v40, %v476_v37  ;;  %v489_v49 = vmax.f32 %v469_v44, %v477_v47  ;;  %v3616_v62 = vpack.i.bf16 %v458_v21, %v575_v56  ;;  %v535_v48 = vsel %vm112_vm4, %v533_v52, %v534_v54 }
 0x186   :  { %v3611_v4 = vpack.i.bf16 %v535_v48, %v533_v52  ;;  %v601_v6 = vsel %vm181_vm0, %v599_v29, %v4129_v36  ;;  %v556_v53 = vsel %vm137_vm5, %v554_v19, %v555_v13  ;;  %v557_v28 = vsel %vm137_vm5, %v555_v13, %v4311_v0 }
 0x187   :  { %v632_v42 = vrot.slane %v488_v46, 2  ;;  %v634_v59 = vrot.slane %v489_v49, 2  ;;  %v3621_v7 = vpack.i.bf16 %v475_v30, %v601_v6 }
 0x188   :  { %3597 = vrot.lane.b32.xlu0 %v3596_v41, %s4026_s23 }
 0x189   :  { %3602 = vrot.lane.b32.xlu1 %v3601_v50, %s4025_s22  ;;  %v633_v2 = vsel %vm47_vm2, %v631_v57, %v632_v42  ;;  %v635_v3 = vsel %vm47_vm2, %v632_v42, %v634_v59  ;;  %v3631_v55 = vpack.i.bf16 %v534_v54, %v634_v59 }
 0x18a   :  { %v3626_v27 = vpack.i.bf16 %v635_v3, %v633_v2 }
 0x18c   :  { %3607 = vrot.lane.b32.xlu0 %v3606_v61, %s4025_s22 }
 0x18d   :  { %3617 = vrot.lane.b32.xlu1 %v3616_v62, %s4026_s23 }
 0x190   :  { %3612 = vrot.lane.b32.xlu0 %v3611_v4, %s4028_s28 }
 0x191   :  { %3627 = vrot.lane.b32.xlu1 %v3626_v27, %s4028_s28 }
 0x194   :  { %3622 = vrot.lane.b32.xlu0 %v3621_v7, %s4025_s22 }
 0x195   :  { %3632 = vrot.lane.b32.xlu1 %v3631_v55, %s4028_s28 }
 0x1e6   :  { %v3548_v8 = vpop.permute.xlu0 %3547  ;;  %v3553_v9 = vpop.permute.xlu1 %3552 }
 0x1e7   :  { %v3549_v17 = vunpack.i.l.bf16 %v3548_v8  ;;  %v3554_v20 = vunpack.i.l.bf16 %v3553_v9  ;;  %v3555_v5 = vunpack.i.h.bf16 %v3553_v9  ;;  %v3550_v32 = vunpack.i.h.bf16 %v3548_v8 }
 0x1e8   :  { %v558_v8 = vrot.slane %v4488_v63, 4  ;;  %v559_v9 = vrot.slane %v4512_v22, 4 }
 0x1e9   :  { %v672_v33 = vsel %vm243_vm6, %v554_v19, %v3549_v17  ;;  %v654_v34 = vsel %vm243_vm6, 0.0, %v3554_v20  ;;  %v655_v38 = vsel %vm243_vm6, %v4403_v60, %v3555_v5  ;;  %v673_v52 = vsel %vm243_vm6, %v556_v53, %v3550_v32 }
 0x1ea   :  { %v3558_v58 = vpop.permute.xlu0 %3557  ;;  %v3563_v12 = vpop.permute.xlu1 %3562 }
 0x1eb   :  { %v3564_v23 = vunpack.i.l.bf16 %v3563_v12  ;;  %v3565_v24 = vunpack.i.h.bf16 %v3563_v12  ;;  %v3560_v39 = vunpack.i.h.bf16 %v3558_v58  ;;  %v3559_v40 = vunpack.i.l.bf16 %v3558_v58 }
 0x1ed   :  { %v660_v41 = vsel %vm250_vm7, %v654_v34, %v3564_v23  ;;  %v661_v43 = vsel %vm250_vm7, %v655_v38, %v3565_v24  ;;  %v678_v59 = vsel %vm250_vm7, %v672_v33, %v3559_v40  ;;  %v679_v61 = vsel %vm250_vm7, %v673_v52, %v3560_v39 }
 0x1ee   :  { %v3573_v14 = vpop.permute.xlu0 %3572  ;;  %v3568_v16 = vpop.permute.xlu1 %3567  ;;  %v560_v24 = vsel %vm137_vm5, %v558_v8, %v559_v9 }
 0x1ef   :  { %v3574_v25 = vunpack.i.l.bf16 %v3573_v14  ;;  %v3569_v15 = vunpack.i.l.bf16 %v3568_v16  ;;  %v3575_v21 = vunpack.i.h.bf16 %v3573_v14  ;;  %v3570_v29 = vunpack.i.h.bf16 %v3568_v16 }
 0x1f1   :  { %v674_v44 = vsel %vm243_vm6, %v557_v28, %v3574_v25  ;;  %v666_v45 = vsel %vm257_vm8, %v660_v41, %v3569_v15  ;;  %v656_v47 = vsel %vm243_vm6, %v4418_v10, %v3575_v21  ;;  %v667_v49 = vsel %vm257_vm8, %v661_v43, %v3570_v29 }
 0x1f2   :  { %v3583_v30 = vpop.permute.xlu0 %3582  ;;  %v3578_v31 = vpop.permute.xlu1 %3577  ;;  %v702_v62 = vrot.slane %v666_v45, 5  ;;  %v703_v2 = vrot.slane %v667_v49, 5  ;;  %v561_v21 = vsel %vm137_vm5, %v559_v9, %v4311_v0 }
 0x1f3   :  { %v3580_v1 = vunpack.i.h.bf16 %v3578_v31  ;;  %v3579_v37 = vunpack.i.l.bf16 %v3578_v31  ;;  %v3584_v46 = vunpack.i.l.bf16 %v3583_v30  ;;  %v3585_v50 = vunpack.i.h.bf16 %v3583_v30 }
 0x1f4   :  { %v704_v14 = vsel %vm153_vm1, %v702_v62, %v703_v2 }
 0x1f5   :  { %v680_v51 = vsel %vm250_vm7, %v674_v44, %v3579_v37  ;;  %v662_v54 = vsel %vm250_vm7, %v656_v47, %v3580_v1 }
 0x1f6   :  { %v3588_v60 = vpop.permute.xlu0 %3587  ;;  %v686_v3 = vsel %vm257_vm8, %v680_v51, %v3584_v46  ;;  %v668_v7 = vsel %vm257_vm8, %v662_v54, %v3585_v50 }
 0x1f7   :  { %v3590_v42 = vunpack.i.h.bf16 %v3588_v60  ;;  %v3589_v56 = vunpack.i.l.bf16 %v3588_v60  ;;  %v3593_v57 = vpop.permute.xlu1 %3592  ;;  %v710_v12 = vrot.slane %v686_v3, 5  ;;  %v708_v16 = vrot.slane %v668_v7, 5 }
 0x1f8   :  { %v3595_v13 = vunpack.i.h.bf16 %v3593_v57  ;;  %v3594_v17 = vunpack.i.l.bf16 %v3593_v57 }
 0x1f9   :  { %v684_v10 = vsel %vm257_vm8, %v678_v59, %v3589_v56  ;;  %v685_v48 = vsel %vm257_vm8, %v679_v61, %v3590_v42  ;;  %v709_v29 = vsel %vm153_vm1, %v703_v2, %v708_v16  ;;  %v2798_v16 = vld [vmem:[%s5785_s1 + $0x288] sm:$0xff] }
 0x1fa   :  { %v3598_v4 = vpop.permute.xlu0 %3597  ;;  %v705_v27 = vrot.slane %v684_v10, 5  ;;  %v706_v6 = vrot.slane %v685_v48, 5  ;;  %v676_v30 = vsel %vm243_vm6, %v560_v24, %v3595_v13  ;;  %v675_v31 = vsel %vm243_vm6, %v558_v8, %v3594_v17  ;;  %v3996_v13 = vld [vmem:[%s5784_s0] sm:$0xff] }
 0x1fb   :  { %v3603_v55 = vpop.permute.xlu1 %3602  ;;  %v3600_v19 = vunpack.i.h.bf16 %v3598_v4  ;;  %v3599_v20 = vunpack.i.l.bf16 %v3598_v4  ;;  %v2781_v17 = vld [vmem:[%s5785_s1 + $0x200] sm:$0xff] }
 0x1fc   :  { %v707_v58 = vsel %vm153_vm1, %v705_v27, %v706_v6  ;;  %v711_v23 = vsel %vm153_vm1, %v706_v6, %v710_v12  ;;  %v3605_v32 = vunpack.i.h.bf16 %v3603_v55  ;;  %v3604_v28 = vunpack.i.l.bf16 %v3603_v55 }
 0x1fd   :  { %835 = vmatprep.mubr.f32.mxu1 %v707_v58  ;;  %v658_v33 = vsel %vm243_vm6, %v4488_v63, %v3600_v19  ;;  %v657_v34 = vsel %vm243_vm6, 0.0, %v3599_v20  ;;  %v2782_v20 = vld [vmem:[%s5785_s1 + $0x208] sm:$0xff] }
 0x1fe   :  { %v3608_v5 = vpop.permute.xlu0 %3607  ;;  %836 = vmatmul.mubr.f32.vlgmr.msra.gmra.mrb[0].mxu1 %v704_v14  ;;  %v681_v47 = vsel %vm250_vm7, %v675_v31, %v3604_v28  ;;  %v682_v49 = vsel %vm250_vm7, %v676_v30, %v3605_v32  ;;  %v2797_v14 = vld [vmem:[%s5785_s1 + $0x280] sm:$0xff]  ;;  %v2802_v28 = vld [vmem:[%s5785_s1 + $0x2a8] sm:$0xff] }
 0x1ff   :  { %v3618_v53 = vpop.permute.xlu1 %3617  ;;  %840 = vmatprep.mubr.f32.mxu1 %v711_v23  ;;  %v3610_v25 = vunpack.i.h.bf16 %v3608_v5  ;;  %v3609_v15 = vunpack.i.l.bf16 %v3608_v5  ;;  %v3304_v19 = vpack.c.bf16 %v2798_v16, %v2797_v14  ;;  %v2799_v5 = vld [vmem:[%s5785_s1 + $0x290] sm:$0xff]  ;;  %v2800_v23 = vld [vmem:[%s5785_s1 + $0x298] sm:$0xff]  ;;  %v2801_v32 = vld [vmem:[%s5785_s1 + $0x2a0] sm:$0xff] }
 0x200   :  { %v3620_v37 = vunpack.i.h.bf16 %v3618_v53  ;;  %v3619_v38 = vunpack.i.l.bf16 %v3618_v53  ;;  %v3306_v53 = vpack.c.bf16 %v2782_v20, %v2781_v17  ;;  %v3308_v24 = vpack.c.bf16 %v2800_v23, %v2799_v5  ;;  %v4655_v31 = vld [vmem:[%s5786_s2 + $0x1] ss:$0 sm:$0xff]  ;;  %v2790_v5 = vld [vmem:[%s5785_s1 + $0x248] sm:$0xff] }
 0x201   :  { %v663_v43 = vsel %vm250_vm7, %v657_v34, %v3609_v15  ;;  %v664_v44 = vsel %vm250_vm7, %v658_v33, %v3610_v25  ;;  %v2783_v25 = vld [vmem:[%s5785_s1 + $0x210] sm:$0xff]  ;;  %v2784_v15 = vld [vmem:[%s5785_s1 + $0x218] sm:$0xff]  ;;  %3305 = vmatprep.subr.bf16.mxu0 %v3304_v19  ;;  %v2789_v20 = vld [vmem:[%s5785_s1 + $0x240] sm:$0xff] }
 0x202   :  { %v3613_v1 = vpop.permute.xlu0 %3612  ;;  %841 = vmatmul.mubr.f32.gmra.mrb[2].mxu1 %v709_v29  ;;  %v659_v10 = vsel %vm243_vm6, %v4512_v22, %v3620_v37  ;;  %v677_v48 = vsel %vm243_vm6, %v561_v21, %v3619_v38  ;;  %3307 = vmatpush3.bf16.msra.mxu0 %v3306_v53  ;;  %v3310_v21 = vpack.c.bf16 %v2784_v15, %v2783_v25 }
 0x203   :  { %v3615_v39 = vunpack.i.h.bf16 %v3613_v1  ;;  %v3614_v40 = vunpack.i.l.bf16 %v3613_v1  ;;  %v3628_v41 = vpop.permute.xlu1 %3627  ;;  %3309 = vmatprep.subr.bf16.mxu0 %v3308_v24  ;;  %v3312_v29 = vpack.c.bf16 %v2802_v28, %v2801_v32 }
 0x204   :  { %v3630_v45 = vunpack.i.h.bf16 %v3628_v41  ;;  %v3629_v46 = vunpack.i.l.bf16 %v3628_v41  ;;  %v2785_v41 = vld [vmem:[%s5785_s1 + $0x220] sm:$0xff] }
 0x205   :  { %v669_v63 = vsel %vm257_vm8, %v663_v43, %v3614_v40  ;;  %v670_v50 = vsel %vm257_vm8, %v664_v44, %v3615_v39  ;;  %v2786_v43 = vld [vmem:[%s5785_s1 + $0x228] sm:$0xff]  ;;  %v2803_v44 = vld [vmem:[%s5785_s1 + $0x2b0] sm:$0xff] }
 0x206   :  { %v687_v51 = vsel %vm257_vm8, %v681_v47, %v3629_v46  ;;  %v688_v60 = vsel %vm257_vm8, %v682_v49, %v3630_v45  ;;  %v3623_v52 = vpop.permute.xlu0 %3622  ;;  %v712_v54 = vrot.slane %v669_v63, 5  ;;  %v713_v42 = vrot.slane %v670_v50, 5  ;;  %3311 = vmatpush3.bf16.msra.mxu0 %v3310_v21  ;;  %v2804_v46 = vld [vmem:[%s5785_s1 + $0x2b8] sm:$0xff] }
 0x207   :  { %v3625_v56 = vunpack.i.h.bf16 %v3623_v52  ;;  %v3624_v57 = vunpack.i.l.bf16 %v3623_v52  ;;  %v3633_v59 = vpop.permute.xlu1 %3632  ;;  %v715_v61 = vrot.slane %v687_v51, 5  ;;  %v716_v62 = vrot.slane %v688_v60, 5  ;;  %3313 = vmatprep.subr.bf16.mxu0 %v3312_v29  ;;  %v2787_v51 = vld [vmem:[%s5785_s1 + $0x230] sm:$0xff]  ;;  %v2788_v60 = vld [vmem:[%s5785_s1 + $0x238] sm:$0xff]  ;;  %v2805_v52 = vld [vmem:[%s5785_s1 + $0x2c0] sm:$0xff] }
 0x208   :  { %v3635_v2 = vunpack.i.h.bf16 %v3633_v59  ;;  %v3634_v3 = vunpack.i.l.bf16 %v3633_v59  ;;  %v714_v8 = vsel %vm153_vm1, %v712_v54, %v713_v42  ;;  %v3314_v45 = vpack.c.bf16 %v2786_v43, %v2785_v41  ;;  %v1271_v41 = vld [vmem:[%s5787_s3 + $0x8] sm:$0xff] }
 0x209   :  { %v665_v4 = vsel %vm250_vm7, %v659_v10, %v3625_v56  ;;  %v683_v27 = vsel %vm250_vm7, %v677_v48, %v3624_v57  ;;  %v717_v6 = vsel %vm153_vm1, %v715_v61, %v716_v62  ;;  %v3316_v63 = vpack.c.bf16 %v2804_v46, %v2803_v44  ;;  %v2806_v57 = vld [vmem:[%s5785_s1 + $0x2c8] sm:$0xff] }
 0x20a   :  { %v671_v7 = vsel %vm257_vm8, %v665_v4, %v3635_v2  ;;  %v689_v55 = vsel %vm257_vm8, %v683_v27, %v3634_v3  ;;  %845 = vmatprep.mubr.f32.mxu1 %v717_v6  ;;  %3315 = vmatpush3.bf16.msra.mxu0 %v3314_v45  ;;  %v3318_v56 = vpack.c.bf16 %v2788_v60, %v2787_v51 }
 0x20b   :  { %846 = vmatmul.mubr.f32.gmra.mrb[4].mxu1 %v714_v8  ;;  %v720_v9 = vrot.slane %v689_v55, 5  ;;  %v718_v22 = vrot.slane %v671_v7, 5  ;;  %3317 = vmatprep.subr.bf16.mxu0 %v3316_v63  ;;  %v3320_v4 = vpack.c.bf16 %v2806_v57, %v2805_v52 }
 0x20d   :  { %v721_v58 = vsel %vm153_vm1, %v716_v62, %v720_v9  ;;  %v719_v12 = vsel %vm153_vm1, %v713_v42, %v718_v22 }
 0x20e   :  { %850 = vmatprep.mubr.f32.mxu1 %v721_v58  ;;  %3319 = vmatpush3.bf16.msra.mxu0 %v3318_v56  ;;  %v2810_v56 = vld [vmem:[%s5785_s1 + $0x2e8] sm:$0xff] }
 0x20f   :  { %851 = vmatmul.mubr.f32.gmra.mrb[6].mxu1 %v719_v12  ;;  %3321 = vmatprep.subr.bf16.mxu0 %v3320_v4 }
 0x210   :  { %3220 = vmatprep.mubr.msk.f32.mxu1 %vm243_vm6, %v3996_v13 }
 0x2d1   :  { %v3008_v30 = vpop.f32.mrb[0].mxu1 }
 0x2d2   :  { %v3009_v33 = vpop.f32.mrb[1].mxu1 }
 0x2d3   :  { %v3010_v34 = vadd.f32 %v3009_v33, %v3008_v30  ;;  %v2807_v30 = vld [vmem:[%s5785_s1 + $0x2d0] sm:$0xff]  ;;  %v2808_v33 = vld [vmem:[%s5785_s1 + $0x2d8] sm:$0xff] }
 0x2d4   :  { %v3324_v52 = vpack.c.bf16 %v2808_v33, %v2807_v30 }
 0x2d5   :  { %v838_v1 = vadd.f32 %v3010_v34, %v4655_v31  ;;  %v3011_v37 = vpop.f32.mrb[2].mxu1  ;;  %v2791_v34 = vld [vmem:[%s5785_s1 + $0x250] sm:$0xff] }
 0x2d6   :  { %v3012_v38 = vpop.f32.mrb[3].mxu1 }
 0x2d7   :  { %v4658_v39 = vmax.f32 %v838_v1, 0.0  ;;  %v3013_v40 = vadd.f32 %v3012_v38, %v3011_v37  ;;  %v3322_v37 = vpack.c.bf16 %v2790_v5, %v2789_v20  ;;  %v2792_v38 = vld [vmem:[%s5785_s1 + $0x258] sm:$0xff]  ;;  %v1272_v20 = vld [vmem:[%s5787_s3 + $0x10] sm:$0xff] }
 0x2d8   :  { %v1273_v5 = vld [vmem:[%s5787_s3 + $0x18] sm:$0xff] }
 0x2d9   :  { %v843_v47 = vadd.f32 %v3013_v40, %v4655_v31  ;;  %v4674_v49 = vrot.slane %v4658_v39, 1  ;;  %v978_v54 = vrot.slane %v4658_v39, 5  ;;  %v1004_v42 = vrot.slane %v4658_v39, 6  ;;  %v1270_v40 = vld [vmem:[%s5787_s3] sm:$0xff]  ;;  %3323 = vmatpush3.bf16.msra.mxu0 %v3322_v37 }
 0x2da   :  { %v880_v3 = vrot.slane %v4658_v39, 2  ;;  %v940_v19 = vrot.slane %v4658_v39, 3  ;;  %3325 = vmatprep.subr.bf16.mxu0 %v3324_v52  ;;  %v3340_v33 = vpack.c.bf16 %v1273_v5, %v1272_v20 }
 0x2db   :  { %v4676_v50 = vmax.f32 %v843_v47, 0.0  ;;  %v900_v2 = vsel %vm29_vm3, %v4094_v18, %v4674_v49 }
 0x2dc   :  { %v920_v17 = vsel %vm47_vm2, %v4083_v11, %v880_v3  ;;  %v894_v45 = vmax.f32 %v4674_v49, %v880_v3 }
 0x2dd   :  { %v979_v59 = vrot.slane %v4676_v50, 5  ;;  %v865_v61 = vrot.slane %v4676_v50, 1  ;;  %v1005_v62 = vrot.slane %v4676_v50, 6  ;;  %v4696_v10 = vrot.slane %v4676_v50, 2 }
 0x2de   :  { %v3014_v48 = vpop.f32.mrb[4].mxu1  ;;  %v941_v8 = vrot.slane %v4676_v50, 3 }
 0x2df   :  { %v3015_v27 = vpop.f32.mrb[5].mxu1  ;;  %v980_v6 = vsel %vm153_vm1, %v978_v54, %v979_v59  ;;  %v866_v7 = vsel %vm29_vm3, %v4674_v49, %v865_v61  ;;  %v1006_v55 = vsel %vm181_vm0, %v1004_v42, %v1005_v62  ;;  %v882_v13 = vsel %vm47_vm2, %v880_v3, %v4696_v10 }
 0x2e0   :  { %v3016_v9 = vadd.f32 %v3015_v27, %v3014_v48  ;;  %v3636_v22 = vpack.i.bf16 %v980_v6, %v978_v54  ;;  %v3641_v58 = vpack.i.bf16 %v866_v7, %v900_v2  ;;  %v876_v12 = vmax.f32 %v4658_v39, %v866_v7 }
 0x2e1   :  { %v3646_v53 = vpack.i.bf16 %v1006_v55, %v1004_v42  ;;  %v877_v25 = vmax.f32 %v4676_v50, %v865_v61  ;;  %v883_v15 = vsel %vm47_vm2, %v4696_v10, %v4106_v26  ;;  %v3651_v28 = vpack.i.bf16 %v882_v13, %v920_v17 }
 0x2e2   :  { %v848_v14 = vadd.f32 %v3016_v9, %v4655_v31  ;;  %v3017_v16 = vpop.f32.mrb[6].mxu1  ;;  %3637 = vrot.lane.b32.xlu0 %v3636_v22, %s4026_s23  ;;  %3642 = vrot.lane.b32.xlu1 %v3641_v58, %s4026_s23  ;;  %v895_v24 = vmax.f32 %v876_v12, %v882_v13  ;;  %v981_v21 = vsel %vm153_vm1, %v979_v59, %v4126_v35  ;;  %v1036_v59 = vrot.slane %v894_v45, 2  ;;  %v2794_v13 = vld [vmem:[%s5785_s1 + $0x268] sm:$0xff] }
 0x2e3   :  { %v3018_v23 = vpop.f32.mrb[7].mxu1  ;;  %v942_v29 = vsel %vm112_vm4, %v940_v19, %v941_v8  ;;  %v896_v1 = vmax.f32 %v877_v25, %v883_v15  ;;  %v3661_v47 = vpack.i.bf16 %v865_v61, %v981_v21  ;;  %v3326_v54 = vpack.c.bf16 %v2792_v38, %v2791_v34  ;;  %v2795_v25 = vld [vmem:[%s5785_s1 + $0x270] sm:$0xff]  ;;  %v2796_v15 = vld [vmem:[%s5785_s1 + $0x278] sm:$0xff] }
 0x2e4   :  { %v3019_v32 = vadd.f32 %v3018_v23, %v3017_v16  ;;  %v4747_v43 = vmax.f32 %v848_v14, 0.0  ;;  %v1037_v46 = vrot.slane %v895_v24, 2  ;;  %v3656_v63 = vpack.i.bf16 %v942_v29, %v940_v19  ;;  %v2811_v14 = vld [vmem:[%s5785_s1 + $0x2f0] sm:$0xff]  ;;  %v2812_v19 = vld [vmem:[%s5785_s1 + $0x2f8] sm:$0xff] }
 0x2e5   :  { %v1039_v51 = vrot.slane %v896_v1, 2  ;;  %v3336_v42 = vpack.c.bf16 %v1271_v41, %v1270_v40  ;;  %v1007_v49 = vsel %vm181_vm0, %v1005_v62, %v4129_v36  ;;  %3327 = vmatpush3.bf16.msra.mxu0 %v3326_v54  ;;  %v3332_v30 = vpack.c.bf16 %v2812_v19, %v2811_v14 }
 0x2e6   :  { %v853_v44 = vadd.f32 %v3019_v32, %v4655_v31  ;;  %3647 = vrot.lane.b32.xlu0 %v3646_v53, %s4025_s22  ;;  %3652 = vrot.lane.b32.xlu1 %v3651_v28, %s4025_s22  ;;  %v2809_v31 = vld [vmem:[%s5785_s1 + $0x2e0] sm:$0xff]  ;;  %v867_v61 = vrot.slane %v4747_v43, 1  ;;  %v982_v2 = vrot.slane %v4747_v43, 5  ;;  %v3666_v27 = vpack.i.bf16 %v4696_v10, %v1007_v49 }
 0x2e7   :  { %3337 = vmatprep.subr.bf16.mxu1 %v3336_v42  ;;  %v3328_v62 = vpack.c.bf16 %v2810_v56, %v2809_v31  ;;  %v3671_v4 = vpack.i.bf16 %v941_v8, %v1039_v51  ;;  %v1038_v6 = vsel %vm47_vm2, %v1036_v59, %v1037_v46  ;;  %v1040_v9 = vsel %vm47_vm2, %v1037_v46, %v1039_v51  ;;  %v2793_v8 = vld [vmem:[%s5785_s1 + $0x260] sm:$0xff] }
 0x2e8   :  { %v4753_v60 = vmax.f32 %v853_v44, 0.0  ;;  %v884_v10 = vrot.slane %v4747_v43, 2  ;;  %v1008_v16 = vrot.slane %v4747_v43, 6  ;;  %3339 = vmatpush3.bf16.msra.mxu1 %v3336_v42  ;;  %v3676_v53 = vpack.i.bf16 %v1040_v9, %v1038_v6  ;;  %v3997_v42 = vld [vmem:[%s5784_s0 + $0x8] sm:$0xff] }
 0x2e9   :  { %3329 = vmatprep.subr.bf16.mxu0 %v3328_v62  ;;  %v3330_v29 = vpack.c.bf16 %v2794_v13, %v2793_v8  ;;  %v901_v34 = vsel %vm29_vm3, %v4094_v18, %v867_v61  ;;  %v3334_v37 = vpack.c.bf16 %v2796_v15, %v2795_v25  ;;  %3341 = vmatprep.subr.bf16.mxu1 %v3340_v33  ;;  %v943_v51 = vrot.slane %v4747_v43, 3 }
 0x2ea   :  { %3662 = vrot.lane.b32.xlu0 %v3661_v47, %s4026_s23  ;;  %3657 = vrot.lane.b32.xlu1 %v3656_v63, %s4028_s28  ;;  %v983_v57 = vrot.slane %v4753_v60, 5  ;;  %v4768_v48 = vrot.slane %v4753_v60, 1  ;;  %v4772_v3 = vrot.slane %v4753_v60, 2  ;;  %v1009_v22 = vrot.slane %v4753_v60, 6 }
 0x2eb   :  { %v897_v1 = vmax.f32 %v867_v61, %v884_v10  ;;  %3331 = vmatpush3.bf16.msra.mxu0 %v3330_v29  ;;  %v944_v46 = vrot.slane %v4753_v60, 3  ;;  %v921_v47 = vsel %vm47_vm2, %v4083_v11, %v884_v10  ;;  %v965_v9 = vrot.slane %v4676_v50, 4 }
 0x2ec   :  { %v869_v7 = vsel %vm29_vm3, %v867_v61, %v4768_v48  ;;  %v984_v55 = vsel %vm153_vm1, %v982_v2, %v983_v57  ;;  %v879_v12 = vmax.f32 %v4753_v60, %v4768_v48  ;;  %v887_v17 = vsel %vm47_vm2, %v4772_v3, %v4106_v26  ;;  %3333 = vmatprep.subr.bf16.mxu0 %v3332_v30 }
 0x2ed   :  { %v878_v58 = vmax.f32 %v4747_v43, %v869_v7  ;;  %v3681_v23 = vpack.i.bf16 %v984_v55, %v982_v2  ;;  %v886_v24 = vsel %vm47_vm2, %v884_v10, %v4772_v3  ;;  %v1010_v32 = vsel %vm181_vm0, %v1008_v16, %v1009_v22  ;;  %3343 = vmatpush3.bf16.msra.mxu1 %v3340_v33 }
 0x2ee   :  { %3672 = vrot.lane.b32.xlu0 %v3671_v4, %s4028_s28  ;;  %3667 = vrot.lane.b32.xlu1 %v3666_v27, %s4025_s22  ;;  %v899_v21 = vmax.f32 %v879_v12, %v887_v17  ;;  %v3691_v38 = vpack.i.bf16 %v1010_v32, %v1008_v16  ;;  %v3686_v40 = vpack.i.bf16 %v869_v7, %v901_v34  ;;  %v1041_v63 = vrot.slane %v897_v1, 2 }
 0x2ef   :  { %v898_v28 = vmax.f32 %v878_v58, %v886_v24  ;;  %v985_v41 = vsel %vm153_vm1, %v983_v57, %v4126_v35  ;;  %3335 = vmatpush3.bf16.msra.mxu0 %v3334_v37  ;;  %v3696_v54 = vpack.i.bf16 %v886_v24, %v921_v47  ;;  %v945_v49 = vsel %vm112_vm4, %v943_v51, %v944_v46  ;;  %v3998_v57 = vld [vmem:[%s5784_s0 + $0x10] sm:$0xff] }
 0x2f0   :  { %v1044_v45 = vrot.slane %v899_v21, 2  ;;  %v3706_v52 = vpack.i.bf16 %v4768_v48, %v985_v41  ;;  %3221 = vmatmul.mubr.msk.f32.vlgmr.msra.gmra.mrb[8].mxu1 %vm243_vm6, %v3997_v42  ;;  %v3701_v61 = vpack.i.bf16 %v945_v49, %v943_v51  ;;  %v3999_v48 = vld [vmem:[%s5784_s0 + $0x18] sm:$0xff]  ;;  %v1011_v2 = vsel %vm181_vm0, %v1009_v22, %v4129_v36 }
 0x2f1   :  { %v1042_v44 = vrot.slane %v898_v28, 2  ;;  %3223 = vmatprep.mubr.msk.f32.mxu1 %vm243_vm6, %v3998_v57  ;;  %v3711_v4 = vpack.i.bf16 %v4772_v3, %v1011_v2  ;;  %v964_v22 = vrot.slane %v4658_v39, 4 }
 0x2f2   :  { %3682 = vrot.lane.b32.xlu1 %v3681_v23, %s4026_s23  ;;  %3677 = vrot.lane.b32.xlu0 %v3676_v53, %s4028_s28  ;;  %v3721_v62 = vpack.i.bf16 %v944_v46, %v1044_v45  ;;  %v967_v23 = vsel %vm137_vm5, %v965_v9, %v4311_v0 }
 0x2f3   :  { %v1043_v31 = vsel %vm47_vm2, %v1041_v63, %v1042_v44  ;;  %v1045_v56 = vsel %vm47_vm2, %v1042_v44, %v1044_v45  ;;  %v966_v3 = vsel %vm137_vm5, %v964_v22, %v965_v9 }
 0x2f4   :  { %v3716_v59 = vpack.i.bf16 %v1045_v56, %v1043_v31  ;;  %3224 = vmatmul.mubr.msk.f32.gmra.mrb[10].mxu1 %vm243_vm6, %v3999_v48 }
 0x2f6   :  { %3692 = vrot.lane.b32.xlu1 %v3691_v38, %s4025_s22  ;;  %3687 = vrot.lane.b32.xlu0 %v3686_v40, %s4026_s23 }
 0x2fa   :  { %3707 = vrot.lane.b32.xlu1 %v3706_v52, %s4026_s23  ;;  %3697 = vrot.lane.b32.xlu0 %v3696_v54, %s4025_s22 }
 0x2fe   :  { %3717 = vrot.lane.b32.xlu1 %v3716_v59, %s4028_s28  ;;  %3702 = vrot.lane.b32.xlu0 %v3701_v61, %s4028_s28 }
 0x302   :  { %3722 = vrot.lane.b32.xlu1 %v3721_v62, %s4028_s28  ;;  %3712 = vrot.lane.b32.xlu0 %v3711_v4, %s4025_s22 }
 0x354   :  { %v3638_v27 = vpop.permute.xlu0 %3637  ;;  %v3643_v6 = vpop.permute.xlu1 %3642 }
 0x355   :  { %v3645_v10 = vunpack.i.h.bf16 %v3643_v6  ;;  %v3644_v12 = vunpack.i.l.bf16 %v3643_v6  ;;  %v3640_v20 = vunpack.i.h.bf16 %v3638_v27  ;;  %v3639_v5 = vunpack.i.l.bf16 %v3638_v27 }
 0x356   :  { %v968_v27 = vrot.slane %v4747_v43, 4  ;;  %v969_v6 = vrot.slane %v4753_v60, 4 }
 0x357   :  { %v1065_v15 = vsel %vm243_vm6, %v4658_v39, %v3645_v10  ;;  %v1064_v32 = vsel %vm243_vm6, 0.0, %v3644_v12  ;;  %v1082_v41 = vsel %vm243_vm6, %v964_v22, %v3639_v5  ;;  %v1083_v63 = vsel %vm243_vm6, %v966_v3, %v3640_v20 }
 0x358   :  { %v3648_v7 = vpop.permute.xlu0 %3647  ;;  %v3653_v55 = vpop.permute.xlu1 %3652 }
 0x359   :  { %v3655_v13 = vunpack.i.h.bf16 %v3653_v55  ;;  %v3654_v14 = vunpack.i.l.bf16 %v3653_v55  ;;  %v3650_v29 = vunpack.i.h.bf16 %v3648_v7  ;;  %v3649_v30 = vunpack.i.l.bf16 %v3648_v7 }
 0x35b   :  { %v1070_v33 = vsel %vm250_vm7, %v1064_v32, %v3654_v14  ;;  %v1071_v34 = vsel %vm250_vm7, %v1065_v15, %v3655_v13  ;;  %v1088_v42 = vsel %vm250_vm7, %v1082_v41, %v3649_v30  ;;  %v1089_v31 = vsel %vm250_vm7, %v1083_v63, %v3650_v29 }
 0x35c   :  { %v3663_v58 = vpop.permute.xlu0 %3662  ;;  %v3658_v8 = vpop.permute.xlu1 %3657 }
 0x35d   :  { %v3664_v16 = vunpack.i.l.bf16 %v3663_v58  ;;  %v3660_v17 = vunpack.i.h.bf16 %v3658_v8  ;;  %v3659_v19 = vunpack.i.l.bf16 %v3658_v8  ;;  %v3665_v53 = vunpack.i.h.bf16 %v3663_v58 }
 0x35f   :  { %v1084_v1 = vsel %vm243_vm6, %v967_v23, %v3664_v16  ;;  %v1076_v37 = vsel %vm257_vm8, %v1070_v33, %v3659_v19  ;;  %v1077_v38 = vsel %vm257_vm8, %v1071_v34, %v3660_v17  ;;  %v1066_v39 = vsel %vm243_vm6, %v4676_v50, %v3665_v53 }
 0x360   :  { %v3673_v24 = vpop.permute.xlu0 %3672  ;;  %v3668_v25 = vpop.permute.xlu1 %3667  ;;  %v1112_v56 = vrot.slane %v1076_v37, 5  ;;  %v1113_v49 = vrot.slane %v1077_v38, 5  ;;  %v970_v19 = vsel %vm137_vm5, %v968_v27, %v969_v6 }
 0x361   :  { %v3670_v28 = vunpack.i.h.bf16 %v3668_v25  ;;  %v3669_v21 = vunpack.i.l.bf16 %v3668_v25  ;;  %v3674_v40 = vunpack.i.l.bf16 %v3673_v24  ;;  %v3675_v44 = vunpack.i.h.bf16 %v3673_v24 }
 0x362   :  { %v1114_v55 = vsel %vm153_vm1, %v1112_v56, %v1113_v49  ;;  %v971_v24 = vsel %vm137_vm5, %v969_v6, %v4311_v0 }
 0x363   :  { %v1090_v45 = vsel %vm250_vm7, %v1084_v1, %v3669_v21  ;;  %v1072_v51 = vsel %vm250_vm7, %v1066_v39, %v3670_v28 }
 0x364   :  { %v3683_v46 = vpop.permute.xlu1 %3682  ;;  %v3678_v47 = vpop.permute.xlu0 %3677  ;;  %v1096_v59 = vsel %vm257_vm8, %v1090_v45, %v3674_v40  ;;  %v1078_v4 = vsel %vm257_vm8, %v1072_v51, %v3675_v44 }
 0x365   :  { %v3680_v52 = vunpack.i.h.bf16 %v3678_v47  ;;  %v3679_v54 = vunpack.i.l.bf16 %v3678_v47  ;;  %v1120_v9 = vrot.slane %v1096_v59, 5  ;;  %v3685_v58 = vunpack.i.h.bf16 %v3683_v46 }
 0x366   :  { %v3684_v8 = vunpack.i.l.bf16 %v3683_v46  ;;  %v1118_v10 = vrot.slane %v1078_v4, 5 }
 0x367   :  { %v1095_v57 = vsel %vm257_vm8, %v1089_v31, %v3680_v52  ;;  %v1094_v50 = vsel %vm257_vm8, %v1088_v42, %v3679_v54  ;;  %v1086_v23 = vsel %vm243_vm6, %v970_v19, %v3685_v58 }
 0x368   :  { %v3693_v61 = vpop.permute.xlu1 %3692  ;;  %v3688_v48 = vpop.permute.xlu0 %3687  ;;  %v1115_v2 = vrot.slane %v1094_v50, 5  ;;  %v1116_v62 = vrot.slane %v1095_v57, 5  ;;  %v1085_v53 = vsel %vm243_vm6, %v968_v27, %v3684_v8  ;;  %v1119_v25 = vsel %vm153_vm1, %v1113_v49, %v1118_v10  ;;  %v2836_v10 = vld [vmem:[%s5785_s1 + $0x380] sm:$0xff] }
 0x369   :  { %v3695_v22 = vunpack.i.h.bf16 %v3693_v61  ;;  %v3694_v12 = vunpack.i.l.bf16 %v3693_v61  ;;  %v3690_v13 = vunpack.i.h.bf16 %v3688_v48  ;;  %v3689_v14 = vunpack.i.l.bf16 %v3688_v48 }
 0x36a   :  { %v1117_v7 = vsel %vm153_vm1, %v1115_v2, %v1116_v62  ;;  %v1121_v17 = vsel %vm153_vm1, %v1116_v62, %v1120_v9 }
 0x36b   :  { %1245 = vmatprep.mubr.f32.mxu0 %v1117_v7  ;;  %v1091_v15 = vsel %vm250_vm7, %v1085_v53, %v3694_v12  ;;  %v1092_v32 = vsel %vm250_vm7, %v1086_v23, %v3695_v22  ;;  %v1068_v28 = vsel %vm243_vm6, %v4747_v43, %v3690_v13  ;;  %v1067_v21 = vsel %vm243_vm6, 0.0, %v3689_v14  ;;  %v2837_v12 = vld [vmem:[%s5785_s1 + $0x388] sm:$0xff]  ;;  %v2820_v13 = vld [vmem:[%s5785_s1 + $0x300] sm:$0xff]  ;;  %v2823_v23 = vld [vmem:[%s5785_s1 + $0x318] sm:$0xff] }
 0x36c   :  { %v3708_v3 = vpop.permute.xlu1 %3707  ;;  %v3698_v16 = vpop.permute.xlu0 %3697  ;;  %1246 = vmatmul.mubr.f32.vlgmr.msra.gmra.mrb[8].mxu0 %v1114_v55  ;;  %v3344_v14 = vpack.c.bf16 %v2837_v12, %v2836_v10  ;;  %v2840_v53 = vld [vmem:[%s5785_s1 + $0x3a0] sm:$0xff] }
 0x36d   :  { %1250 = vmatprep.mubr.f32.mxu0 %v1121_v17  ;;  %v3700_v20 = vunpack.i.h.bf16 %v3698_v16  ;;  %v3699_v5 = vunpack.i.l.bf16 %v3698_v16  ;;  %v3710_v38 = vunpack.i.h.bf16 %v3708_v3  ;;  %v3709_v40 = vunpack.i.l.bf16 %v3708_v3  ;;  %v2821_v3 = vld [vmem:[%s5785_s1 + $0x308] sm:$0xff]  ;;  %v2838_v16 = vld [vmem:[%s5785_s1 + $0x390] sm:$0xff]  ;;  %v2839_v17 = vld [vmem:[%s5785_s1 + $0x398] sm:$0xff] }
 0x36e   :  { %v3346_v19 = vpack.c.bf16 %v2821_v3, %v2820_v13  ;;  %3345 = vmatprep.subr.bf16.mxu1 %v3344_v14 }
 0x36f   :  { %v1073_v41 = vsel %vm250_vm7, %v1067_v21, %v3699_v5  ;;  %v1074_v39 = vsel %vm250_vm7, %v1068_v28, %v3700_v20  ;;  %v1069_v50 = vsel %vm243_vm6, %v4753_v60, %v3710_v38  ;;  %v1087_v59 = vsel %vm243_vm6, %v971_v24, %v3709_v40  ;;  %v2822_v5 = vld [vmem:[%s5785_s1 + $0x310] sm:$0xff]  ;;  %v2841_v24 = vld [vmem:[%s5785_s1 + $0x3a8] sm:$0xff]  ;;  %v2814_v28 = vld [vmem:[%s5786_s2 + $0x2] ss:$0 sm:$0xff] }
 0x370   :  { %v3718_v29 = vpop.permute.xlu1 %3717  ;;  %v3703_v30 = vpop.permute.xlu0 %3702  ;;  %1251 = vmatmul.mubr.f32.gmra.mrb[10].mxu0 %v1119_v25  ;;  %v3348_v20 = vpack.c.bf16 %v2839_v17, %v2838_v16  ;;  %3347 = vmatpush3.bf16.msra.mxu1 %v3346_v19  ;;  %v3350_v25 = vpack.c.bf16 %v2823_v23, %v2822_v5 }
 0x371   :  { %v3720_v33 = vunpack.i.h.bf16 %v3718_v29  ;;  %v3719_v34 = vunpack.i.l.bf16 %v3718_v29  ;;  %v3705_v1 = vunpack.i.h.bf16 %v3703_v30  ;;  %v3704_v37 = vunpack.i.l.bf16 %v3703_v30  ;;  %v2815_v29 = vld [vmem:[%s5788_s4] ss:$0 sm:$0xff] }
 0x372   :  { %3349 = vmatprep.subr.bf16.mxu1 %v3348_v20 }
 0x373   :  { %v1097_v44 = vsel %vm257_vm8, %v1091_v15, %v3719_v34  ;;  %v1098_v45 = vsel %vm257_vm8, %v1092_v32, %v3720_v33  ;;  %v1079_v43 = vsel %vm257_vm8, %v1073_v41, %v3704_v37  ;;  %v1080_v46 = vsel %vm257_vm8, %v1074_v39, %v3705_v1 }
 0x374   :  { %v3723_v47 = vpop.permute.xlu1 %3722  ;;  %v3713_v63 = vpop.permute.xlu0 %3712  ;;  %v1125_v51 = vrot.slane %v1097_v44, 5  ;;  %v1126_v52 = vrot.slane %v1098_v45, 5  ;;  %v1122_v54 = vrot.slane %v1079_v43, 5  ;;  %v1123_v42 = vrot.slane %v1080_v46, 5  ;;  %3351 = vmatpush3.bf16.msra.mxu1 %v3350_v25  ;;  %v2824_v46 = vld [vmem:[%s5785_s1 + $0x320] sm:$0xff] }
 0x375   :  { %v3725_v31 = vunpack.i.h.bf16 %v3723_v47  ;;  %v3724_v56 = vunpack.i.l.bf16 %v3723_v47  ;;  %v3715_v49 = vunpack.i.h.bf16 %v3713_v63  ;;  %v3714_v57 = vunpack.i.l.bf16 %v3713_v63  ;;  %v2825_v47 = vld [vmem:[%s5785_s1 + $0x328] sm:$0xff]  ;;  %v2842_v63 = vld [vmem:[%s5785_s1 + $0x3b0] sm:$0xff] }
 0x376   :  { %v1127_v61 = vsel %vm153_vm1, %v1125_v51, %v1126_v52  ;;  %v1124_v48 = vsel %vm153_vm1, %v1122_v54, %v1123_v42  ;;  %v3352_v15 = vpack.c.bf16 %v2841_v24, %v2840_v53  ;;  %v3354_v51 = vpack.c.bf16 %v2825_v47, %v2824_v46 }
 0x377   :  { %v1075_v2 = vsel %vm250_vm7, %v1069_v50, %v3715_v49  ;;  %v1093_v62 = vsel %vm250_vm7, %v1087_v59, %v3714_v57  ;;  %1255 = vmatprep.mubr.f32.mxu0 %v1127_v61  ;;  %v2826_v59 = vld [vmem:[%s5785_s1 + $0x330] sm:$0xff]  ;;  %v2827_v61 = vld [vmem:[%s5785_s1 + $0x338] sm:$0xff] }
 0x378   :  { %1256 = vmatmul.mubr.f32.gmra.mrb[12].mxu0 %v1124_v48  ;;  %v1099_v4 = vsel %vm257_vm8, %v1093_v62, %v3724_v56  ;;  %v1081_v27 = vsel %vm257_vm8, %v1075_v2, %v3725_v31  ;;  %3353 = vmatprep.subr.bf16.mxu1 %v3352_v15 }
 0x379   :  { %v1130_v6 = vrot.slane %v1099_v4, 5  ;;  %v1128_v7 = vrot.slane %v1081_v27, 5  ;;  %3355 = vmatpush3.bf16.msra.mxu1 %v3354_v51  ;;  %v3358_v4 = vpack.c.bf16 %v2827_v61, %v2826_v59 }
 0x37b   :  { %v1131_v60 = vsel %vm153_vm1, %v1126_v52, %v1130_v6  ;;  %v1129_v55 = vsel %vm153_vm1, %v1123_v42, %v1128_v7  ;;  %v2843_v52 = vld [vmem:[%s5785_s1 + $0x3b8] sm:$0xff] }
 0x37c   :  { %1260 = vmatprep.mubr.f32.mxu0 %v1131_v60  ;;  %v3356_v49 = vpack.c.bf16 %v2843_v52, %v2842_v63 }
 0x37d   :  { %1261 = vmatmul.mubr.f32.gmra.mrb[14].mxu0 %v1129_v55 }
 0x37e   :  { %3357 = vmatprep.subr.bf16.mxu1 %v3356_v49 }
 0x37f   :  { %3359 = vmatpush3.bf16.msra.mxu1 %v3358_v4 }
 0x3c3   :  { %v3222_v9 = vpop.f32.mrb[8].mxu1 }
 0x3c4   :  { %v1355_v58 = vpop.f32.mrb[9].mxu1  ;;  %v1361_v41 = vadd.f32 %v3222_v9, %v2815_v29 }
 0x3c5   :  { %v1356_v1 = vadd.f32 %v2815_v29, %v1355_v58 }
 0x3c7   :  { %v4917_v8 = vpop.f32.mrb[10].mxu1 }
 0x3c8   :  { %v1365_v22 = vpop.f32.mrb[11].mxu1  ;;  %v1371_v24 = vadd.f32 %v4917_v8, %v2815_v29 }
 0x3c9   :  { %v1366_v48 = vadd.f32 %v2815_v29, %v1365_v22 }
 0x43f   :  { %v3052_v32 = vpop.f32.mrb[8].mxu0 }
 0x440   :  { %v3053_v21 = vpop.f32.mrb[9].mxu0 }
 0x441   :  { %v3054_v30 = vadd.f32 %v3053_v21, %v3052_v32 }
 0x443   :  { %v1248_v33 = vadd.f32 %v3054_v30, %v2814_v28  ;;  %v3055_v34 = vpop.f32.mrb[10].mxu0 }
 0x444   :  { %v3056_v37 = vpop.f32.mrb[11].mxu0 }
 0x445   :  { %v1266_v38 = vmax.f32 %v1248_v33, 0.0  ;;  %v3057_v40 = vadd.f32 %v3056_v37, %v3055_v34 }
 0x447   :  { %v1253_v39 = vadd.f32 %v3057_v40, %v2814_v28  ;;  %v1374_v44 = vadd.f32 %v1356_v1, %v1266_v38  ;;  %v2844_v40 = vld [vmem:[%s5785_s1 + $0x3c0] sm:$0xff] }
 0x449   :  { %v1267_v45 = vmax.f32 %v1253_v39, 0.0  ;;  %v4955_v43 = vmax.f32 %v1374_v44, 0.0 }
 0x44b   :  { %v1375_v54 = vadd.f32 %v1361_v41, %v1267_v45  ;;  %v3058_v42 = vpop.f32.mrb[12].mxu0  ;;  %v4970_v56 = vrot.slane %v4955_v43, 1  ;;  %v1500_v2 = vrot.slane %v4955_v43, 5  ;;  %v1526_v62 = vrot.slane %v4955_v43, 6  ;;  %v2845_v41 = vld [vmem:[%s5785_s1 + $0x3c8] sm:$0xff] }
 0x44c   :  { %v3059_v31 = vpop.f32.mrb[13].mxu0  ;;  %v1402_v58 = vrot.slane %v4955_v43, 2  ;;  %v1462_v32 = vrot.slane %v4955_v43, 3 }
 0x44d   :  { %v4972_v57 = vmax.f32 %v1375_v54, 0.0  ;;  %v3060_v50 = vadd.f32 %v3059_v31, %v3058_v42  ;;  %v1422_v9 = vsel %vm29_vm3, %v4094_v18, %v4970_v56  ;;  %v3360_v54 = vpack.c.bf16 %v2845_v41, %v2844_v40  ;;  %v2828_v42 = vld [vmem:[%s5785_s1 + $0x340] sm:$0xff]  ;;  %v2829_v31 = vld [vmem:[%s5785_s1 + $0x348] sm:$0xff] }
 0x44e   :  { %v1442_v15 = vsel %vm47_vm2, %v4083_v11, %v1402_v58  ;;  %v1416_v38 = vmax.f32 %v4970_v56, %v1402_v58  ;;  %v3362_v4 = vpack.c.bf16 %v2829_v31, %v2828_v42 }
 0x44f   :  { %v1258_v27 = vadd.f32 %v3060_v50, %v2814_v28  ;;  %v1501_v6 = vrot.slane %v4972_v57, 5  ;;  %v1387_v7 = vrot.slane %v4972_v57, 1  ;;  %v1527_v60 = vrot.slane %v4972_v57, 6  ;;  %3361 = vmatprep.subr.bf16.mxu1 %v3360_v54 }
 0x450   :  { %v3061_v55 = vpop.f32.mrb[14].mxu0  ;;  %v4990_v22 = vrot.slane %v4972_v57, 2  ;;  %v1463_v10 = vrot.slane %v4972_v57, 3  ;;  %3363 = vmatpush3.bf16.msra.mxu1 %v3362_v4 }
 0x451   :  { %v1268_v12 = vmax.f32 %v1258_v27, 0.0  ;;  %v3062_v13 = vpop.f32.mrb[15].mxu0  ;;  %v1502_v14 = vsel %vm153_vm1, %v1500_v2, %v1501_v6  ;;  %v1388_v3 = vsel %vm29_vm3, %v4970_v56, %v1387_v7  ;;  %v1528_v16 = vsel %vm181_vm0, %v1526_v62, %v1527_v60 }
 0x452   :  { %v3063_v17 = vadd.f32 %v3062_v13, %v3061_v55  ;;  %v3726_v19 = vpack.i.bf16 %v1502_v14, %v1500_v2  ;;  %v3731_v20 = vpack.i.bf16 %v1388_v3, %v1422_v9  ;;  %v1398_v5 = vmax.f32 %v4955_v43, %v1388_v3  ;;  %v2846_v55 = vld [vmem:[%s5785_s1 + $0x3d0] sm:$0xff] }
 0x453   :  { %v1376_v23 = vadd.f32 %v1366_v48, %v1268_v12  ;;  %v1404_v53 = vsel %vm47_vm2, %v1402_v58, %v4990_v22  ;;  %v3736_v21 = vpack.i.bf16 %v1528_v16, %v1526_v62  ;;  %v1503_v33 = vsel %vm153_vm1, %v1501_v6, %v4126_v35  ;;  %v2831_v12 = vld [vmem:[%s5785_s1 + $0x358] sm:$0xff]  ;;  %v2848_v16 = vld [vmem:[%s5785_s1 + $0x3e0] sm:$0xff] }
 0x454   :  { %v1263_v25 = vadd.f32 %v3063_v17, %v2814_v28  ;;  %3727 = vrot.lane.b32.xlu0 %v3726_v19, %s4026_s23  ;;  %3732 = vrot.lane.b32.xlu1 %v3731_v20, %s4026_s23  ;;  %v1417_v30 = vmax.f32 %v1398_v5, %v1404_v53  ;;  %v1399_v34 = vmax.f32 %v4972_v57, %v1387_v7  ;;  %v1558_v56 = vrot.slane %v1416_v38, 2  ;;  %v2849_v17 = vld [vmem:[%s5785_s1 + $0x3e8] sm:$0xff] }
 0x455   :  { %v3741_v37 = vpack.i.bf16 %v1404_v53, %v1442_v15  ;;  %v1464_v8 = vsel %vm112_vm4, %v1462_v32, %v1463_v10  ;;  %v1405_v28 = vsel %vm47_vm2, %v4990_v22, %v4106_v26  ;;  %v5020_v39 = vmax.f32 %v1376_v23, 0.0 }
 0x456   :  { %v1269_v1 = vmax.f32 %v1263_v25, 0.0  ;;  %v1418_v29 = vmax.f32 %v1399_v34, %v1405_v28  ;;  %v1559_v45 = vrot.slane %v1417_v30, 2  ;;  %v3751_v46 = vpack.i.bf16 %v1387_v7, %v1503_v33  ;;  %v2832_v30 = vld [vmem:[%s5785_s1 + $0x360] sm:$0xff]  ;;  %v2833_v33 = vld [vmem:[%s5785_s1 + $0x368] sm:$0xff]  ;;  %v2850_v34 = vld [vmem:[%s5785_s1 + $0x3f0] sm:$0xff] }
 0x457   :  { %v3746_v47 = vpack.i.bf16 %v1464_v8, %v1462_v32  ;;  %v1529_v52 = vsel %vm181_vm0, %v1527_v60, %v4129_v36  ;;  %v1504_v49 = vrot.slane %v5020_v39, 5  ;;  %v1389_v59 = vrot.slane %v5020_v39, 1 }
 0x458   :  { %v1377_v44 = vadd.f32 %v1371_v24, %v1269_v1  ;;  %3737 = vrot.lane.b32.xlu0 %v3736_v21, %s4025_s22  ;;  %3742 = vrot.lane.b32.xlu1 %v3741_v37, %s4025_s22  ;;  %v1561_v51 = vrot.slane %v1418_v29, 2  ;;  %v3756_v48 = vpack.i.bf16 %v4990_v22, %v1529_v52  ;;  %v1560_v2 = vsel %vm47_vm2, %v1558_v56, %v1559_v45  ;;  %v2847_v22 = vld [vmem:[%s5785_s1 + $0x3d8] sm:$0xff] }
 0x459   :  { %v1530_v13 = vrot.slane %v5020_v39, 6  ;;  %v1406_v14 = vrot.slane %v5020_v39, 2  ;;  %v3364_v24 = vpack.c.bf16 %v2847_v22, %v2846_v55  ;;  %v3368_v21 = vpack.c.bf16 %v2849_v17, %v2848_v16  ;;  %v2851_v1 = vld [vmem:[%s5785_s1 + $0x3f8] sm:$0xff] }
 0x45a   :  { %v5024_v63 = vmax.f32 %v1377_v44, 0.0  ;;  %v3761_v27 = vpack.i.bf16 %v1463_v10, %v1561_v51  ;;  %v1562_v6 = vsel %vm47_vm2, %v1559_v45, %v1561_v51  ;;  %v2830_v10 = vld [vmem:[%s5785_s1 + $0x350] sm:$0xff]  ;;  %v1423_v37 = vsel %vm29_vm3, %v4094_v18, %v1389_v59  ;;  %v2835_v51 = vld [vmem:[%s5785_s1 + $0x378] sm:$0xff] }
 0x45b   :  { %v3766_v19 = vpack.i.bf16 %v1562_v6, %v1560_v2  ;;  %v3366_v32 = vpack.c.bf16 %v2831_v12, %v2830_v10  ;;  %v1419_v8 = vmax.f32 %v1389_v59, %v1406_v14  ;;  %3365 = vmatprep.subr.bf16.mxu1 %v3364_v24  ;;  %v3370_v40 = vpack.c.bf16 %v2833_v33, %v2832_v30 }
 0x45c   :  { %3752 = vrot.lane.b32.xlu0 %v3751_v46, %s4026_s23  ;;  %3747 = vrot.lane.b32.xlu1 %v3746_v47, %s4028_s28  ;;  %v1505_v50 = vrot.slane %v5024_v63, 5  ;;  %v5040_v61 = vrot.slane %v5024_v63, 1  ;;  %v5045_v62 = vrot.slane %v5024_v63, 2  ;;  %v1531_v7 = vrot.slane %v5024_v63, 6  ;;  %v2834_v47 = vld [vmem:[%s5785_s1 + $0x370] sm:$0xff] }
 0x45d   :  { %v1466_v38 = vrot.slane %v5024_v63, 3  ;;  %3367 = vmatpush3.bf16.msra.mxu1 %v3366_v32  ;;  %v3372_v46 = vpack.c.bf16 %v2851_v1, %v2850_v34  ;;  %v1443_v52 = vsel %vm47_vm2, %v4083_v11, %v1406_v14  ;;  %v1563_v54 = vrot.slane %v1419_v8, 2 }
 0x45e   :  { %v1391_v60 = vsel %vm29_vm3, %v1389_v59, %v5040_v61  ;;  %v1506_v9 = vsel %vm153_vm1, %v1504_v49, %v1505_v50  ;;  %v1401_v3 = vmax.f32 %v5024_v63, %v5040_v61  ;;  %v1409_v20 = vsel %vm47_vm2, %v5045_v62, %v4106_v26  ;;  %3369 = vmatprep.subr.bf16.mxu1 %v3368_v21 }
 0x45f   :  { %v1400_v58 = vmax.f32 %v5020_v39, %v1391_v60  ;;  %v3771_v5 = vpack.i.bf16 %v1506_v9, %v1504_v49  ;;  %v1532_v23 = vsel %vm181_vm0, %v1530_v13, %v1531_v7  ;;  %v1408_v53 = vsel %vm47_vm2, %v1406_v14, %v5045_v62 }
 0x460   :  { %3762 = vrot.lane.b32.xlu0 %v3761_v27, %s4028_s28  ;;  %3757 = vrot.lane.b32.xlu1 %v3756_v48, %s4025_s22  ;;  %v1421_v15 = vmax.f32 %v1401_v3, %v1409_v20  ;;  %v3781_v28 = vpack.i.bf16 %v1532_v23, %v1530_v13  ;;  %v3776_v29 = vpack.i.bf16 %v1391_v60, %v1423_v37  ;;  %v1465_v42 = vrot.slane %v5020_v39, 3 }
 0x461   :  { %v1420_v25 = vmax.f32 %v1400_v58, %v1408_v53  ;;  %v1507_v41 = vsel %vm153_vm1, %v1505_v50, %v4126_v35  ;;  %v3786_v56 = vpack.i.bf16 %v1408_v53, %v1443_v52  ;;  %3371 = vmatpush3.bf16.msra.mxu1 %v3370_v40  ;;  %v3374_v49 = vpack.c.bf16 %v2835_v51, %v2834_v47 }
 0x462   :  { %v1566_v45 = vrot.slane %v1421_v15, 2  ;;  %v3796_v31 = vpack.i.bf16 %v5040_v61, %v1507_v41  ;;  %v1467_v48 = vsel %vm112_vm4, %v1465_v42, %v1466_v38  ;;  %3373 = vmatprep.subr.bf16.mxu1 %v3372_v46  ;;  %v1533_v61 = vsel %vm181_vm0, %v1531_v7, %v4129_v36 }
 0x463   :  { %v1564_v44 = vrot.slane %v1420_v25, 2  ;;  %v3791_v4 = vpack.i.bf16 %v1467_v48, %v1465_v42  ;;  %v3801_v6 = vpack.i.bf16 %v5045_v62, %v1533_v61  ;;  %v1487_v22 = vrot.slane %v4972_v57, 4 }
 0x464   :  { %3772 = vrot.lane.b32.xlu1 %v3771_v5, %s4026_s23  ;;  %3767 = vrot.lane.b32.xlu0 %v3766_v19, %s4028_s28  ;;  %v3811_v27 = vpack.i.bf16 %v1466_v38, %v1566_v45  ;;  %v1486_v7 = vrot.slane %v4955_v43, 4 }
 0x465   :  { %v1565_v50 = vsel %vm47_vm2, %v1563_v54, %v1564_v44  ;;  %v1567_v59 = vsel %vm47_vm2, %v1564_v44, %v1566_v45  ;;  %3375 = vmatpush3.bf16.msra.mxu1 %v3374_v49  ;;  %v1489_v53 = vsel %vm137_vm5, %v1487_v22, %v4311_v0 }
 0x466   :  { %v3806_v2 = vpack.i.bf16 %v1567_v59, %v1565_v50  ;;  %v1488_v62 = vsel %vm137_vm5, %v1486_v7, %v1487_v22 }
 0x468   :  { %3782 = vrot.lane.b32.xlu1 %v3781_v28, %s4025_s22  ;;  %3777 = vrot.lane.b32.xlu0 %v3776_v29, %s4026_s23 }
 0x46c   :  { %3797 = vrot.lane.b32.xlu1 %v3796_v31, %s4026_s23  ;;  %3787 = vrot.lane.b32.xlu0 %v3786_v56, %s4025_s22 }
 0x470   :  { %3807 = vrot.lane.b32.xlu1 %v3806_v2, %s4028_s28  ;;  %3792 = vrot.lane.b32.xlu0 %v3791_v4, %s4028_s28 }
 0x474   :  { %3812 = vrot.lane.b32.xlu1 %v3811_v27, %s4028_s28  ;;  %3802 = vrot.lane.b32.xlu0 %v3801_v6, %s4025_s22 }
 0x4c6   :  { %v3728_v60 = vpop.permute.xlu0 %3727  ;;  %v3733_v55 = vpop.permute.xlu1 %3732 }
 0x4c7   :  { %v3735_v13 = vunpack.i.h.bf16 %v3733_v55  ;;  %v3734_v14 = vunpack.i.l.bf16 %v3733_v55  ;;  %v3730_v5 = vunpack.i.h.bf16 %v3728_v60  ;;  %v3729_v23 = vunpack.i.l.bf16 %v3728_v60 }
 0x4c9   :  { %v1587_v32 = vsel %vm243_vm6, %v4955_v43, %v3735_v13  ;;  %v1586_v21 = vsel %vm243_vm6, 0.0, %v3734_v14  ;;  %v1604_v41 = vsel %vm243_vm6, %v1486_v7, %v3729_v23  ;;  %v1605_v52 = vsel %vm243_vm6, %v1488_v62, %v3730_v5 }
 0x4ca   :  { %v3738_v9 = vpop.permute.xlu0 %3737  ;;  %v3743_v58 = vpop.permute.xlu1 %3742 }
 0x4cb   :  { %v3745_v3 = vunpack.i.h.bf16 %v3743_v58  ;;  %v3744_v16 = vunpack.i.l.bf16 %v3743_v58  ;;  %v3740_v34 = vunpack.i.h.bf16 %v3738_v9  ;;  %v3739_v1 = vunpack.i.l.bf16 %v3738_v9 }
 0x4cc   :  { %v1490_v9 = vrot.slane %v5020_v39, 4  ;;  %v1491_v58 = vrot.slane %v5024_v63, 4 }
 0x4cd   :  { %v1592_v37 = vsel %vm250_vm7, %v1586_v21, %v3744_v16  ;;  %v1593_v8 = vsel %vm250_vm7, %v1587_v32, %v3745_v3  ;;  %v1610_v56 = vsel %vm250_vm7, %v1604_v41, %v3739_v1  ;;  %v1611_v49 = vsel %vm250_vm7, %v1605_v52, %v3740_v34 }
 0x4ce   :  { %v3753_v10 = vpop.permute.xlu0 %3752  ;;  %v3748_v12 = vpop.permute.xlu1 %3747  ;;  %v1492_v23 = vsel %vm137_vm5, %v1490_v9, %v1491_v58  ;;  %v1493_v32 = vsel %vm137_vm5, %v1491_v58, %v4311_v0 }
 0x4cf   :  { %v3754_v17 = vunpack.i.l.bf16 %v3753_v10  ;;  %v3750_v19 = vunpack.i.h.bf16 %v3748_v12  ;;  %v3749_v20 = vunpack.i.l.bf16 %v3748_v12  ;;  %v3755_v24 = vunpack.i.h.bf16 %v3753_v10 }
 0x4d1   :  { %v1606_v28 = vsel %vm243_vm6, %v1489_v53, %v3754_v17  ;;  %v1598_v29 = vsel %vm257_vm8, %v1592_v37, %v3749_v20  ;;  %v1599_v38 = vsel %vm257_vm8, %v1593_v8, %v3750_v19  ;;  %v1588_v44 = vsel %vm243_vm6, %v4972_v57, %v3755_v24 }
 0x4d2   :  { %v3763_v25 = vpop.permute.xlu0 %3762  ;;  %v3758_v15 = vpop.permute.xlu1 %3757  ;;  %v1634_v50 = vrot.slane %v1598_v29, 5  ;;  %v1635_v59 = vrot.slane %v1599_v38, 5 }
 0x4d3   :  { %v3760_v30 = vunpack.i.h.bf16 %v3758_v15  ;;  %v3759_v33 = vunpack.i.l.bf16 %v3758_v15  ;;  %v3764_v40 = vunpack.i.l.bf16 %v3763_v25  ;;  %v3765_v45 = vunpack.i.h.bf16 %v3763_v25 }
 0x4d4   :  { %v1636_v10 = vsel %vm153_vm1, %v1634_v50, %v1635_v59 }
 0x4d5   :  { %v1612_v46 = vsel %vm250_vm7, %v1606_v28, %v3759_v33  ;;  %v1594_v54 = vsel %vm250_vm7, %v1588_v44, %v3760_v30 }
 0x4d6   :  { %v3773_v47 = vpop.permute.xlu1 %3772  ;;  %v3768_v51 = vpop.permute.xlu0 %3767  ;;  %v1618_v4 = vsel %vm257_vm8, %v1612_v46, %v3764_v40  ;;  %v1600_v55 = vsel %vm257_vm8, %v1594_v54, %v3765_v45 }
 0x4d7   :  { %v3770_v42 = vunpack.i.h.bf16 %v3768_v51  ;;  %v3769_v31 = vunpack.i.l.bf16 %v3768_v51  ;;  %v1642_v12 = vrot.slane %v1618_v4, 5  ;;  %v3775_v7 = vunpack.i.h.bf16 %v3773_v47 }
 0x4d8   :  { %v3774_v13 = vunpack.i.l.bf16 %v3773_v47  ;;  %v1640_v3 = vrot.slane %v1600_v55, 5 }
 0x4d9   :  { %v1617_v48 = vsel %vm257_vm8, %v1611_v49, %v3770_v42  ;;  %v1616_v2 = vsel %vm257_vm8, %v1610_v56, %v3769_v31  ;;  %v1608_v25 = vsel %vm243_vm6, %v1492_v23, %v3775_v7 }
 0x4da   :  { %v3783_v61 = vpop.permute.xlu1 %3782  ;;  %v3778_v27 = vpop.permute.xlu0 %3777  ;;  %v1637_v6 = vrot.slane %v1616_v2, 5  ;;  %v1638_v60 = vrot.slane %v1617_v48, 5  ;;  %v1607_v15 = vsel %vm243_vm6, %v1490_v9, %v3774_v13  ;;  %v1641_v21 = vsel %vm153_vm1, %v1635_v59, %v1640_v3  ;;  %v2870_v3 = vld [vmem:[%s5785_s1 + $0x480] sm:$0xff] }
 0x4db   :  { %v3785_v14 = vunpack.i.h.bf16 %v3783_v61  ;;  %v3784_v16 = vunpack.i.l.bf16 %v3783_v61  ;;  %v3780_v62 = vunpack.i.h.bf16 %v3778_v27  ;;  %v3779_v17 = vunpack.i.l.bf16 %v3778_v27 }
 0x4dc   :  { %v1639_v22 = vsel %vm153_vm1, %v1637_v6, %v1638_v60  ;;  %v1643_v5 = vsel %vm153_vm1, %v1638_v60, %v1642_v12 }
 0x4dd   :  { %1767 = vmatprep.mubr.f32.mxu1 %v1639_v22  ;;  %v1613_v30 = vsel %vm250_vm7, %v1607_v15, %v3784_v16  ;;  %v1614_v33 = vsel %vm250_vm7, %v1608_v25, %v3785_v14  ;;  %v1590_v34 = vsel %vm243_vm6, %v5020_v39, %v3780_v62  ;;  %v1589_v1 = vsel %vm243_vm6, 0.0, %v3779_v17  ;;  %v2871_v16 = vld [vmem:[%s5785_s1 + $0x488] sm:$0xff]  ;;  %v2854_v62 = vld [vmem:[%s5785_s1 + $0x400] sm:$0xff]  ;;  %v2857_v25 = vld [vmem:[%s5785_s1 + $0x418] sm:$0xff] }
 0x4de   :  { %v3798_v19 = vpop.permute.xlu1 %3797  ;;  %v3788_v20 = vpop.permute.xlu0 %3787  ;;  %1768 = vmatmul.mubr.f32.vlgmr.msra.gmra.mrb[12].mxu1 %v1636_v10  ;;  %v3376_v17 = vpack.c.bf16 %v2871_v16, %v2870_v3  ;;  %v2874_v15 = vld [vmem:[%s5785_s1 + $0x4a0] sm:$0xff] }
 0x4df   :  { %1772 = vmatprep.mubr.f32.mxu1 %v1643_v5  ;;  %v3790_v53 = vunpack.i.h.bf16 %v3788_v20  ;;  %v3789_v24 = vunpack.i.l.bf16 %v3788_v20  ;;  %v3800_v41 = vunpack.i.h.bf16 %v3798_v19  ;;  %v3799_v44 = vunpack.i.l.bf16 %v3798_v19  ;;  %v2855_v19 = vld [vmem:[%s5785_s1 + $0x408] sm:$0xff]  ;;  %v2872_v20 = vld [vmem:[%s5785_s1 + $0x490] sm:$0xff]  ;;  %v2873_v5 = vld [vmem:[%s5785_s1 + $0x498] sm:$0xff] }
 0x4e0   :  { %v3378_v23 = vpack.c.bf16 %v2855_v19, %v2854_v62  ;;  %3377 = vmatprep.subr.bf16.mxu0 %v3376_v17 }
 0x4e1   :  { %v1595_v45 = vsel %vm250_vm7, %v1589_v1, %v3789_v24  ;;  %v1596_v46 = vsel %vm250_vm7, %v1590_v34, %v3790_v53  ;;  %v1591_v27 = vsel %vm243_vm6, %v5024_v63, %v3800_v41  ;;  %v1609_v6 = vsel %vm243_vm6, %v1493_v32, %v3799_v44  ;;  %v2856_v24 = vld [vmem:[%s5785_s1 + $0x410] sm:$0xff]  ;;  %v2875_v32 = vld [vmem:[%s5785_s1 + $0x4a8] sm:$0xff]  ;;  %v5221_v34 = vld [vmem:[%s5786_s2 + $0x3] ss:$0 sm:$0xff] }
 0x4e2   :  { %v3808_v37 = vpop.permute.xlu1 %3807  ;;  %v3793_v8 = vpop.permute.xlu0 %3792  ;;  %1773 = vmatmul.mubr.f32.gmra.mrb[14].mxu1 %v1641_v21  ;;  %v3380_v53 = vpack.c.bf16 %v2873_v5, %v2872_v20  ;;  %3379 = vmatpush3.bf16.msra.mxu0 %v3378_v23  ;;  %v3382_v21 = vpack.c.bf16 %v2857_v25, %v2856_v24  ;;  %v2858_v41 = vld [vmem:[%s5785_s1 + $0x420] sm:$0xff]  ;;  %v2859_v44 = vld [vmem:[%s5785_s1 + $0x428] sm:$0xff] }
 0x4e3   :  { %v3810_v28 = vunpack.i.h.bf16 %v3808_v37  ;;  %v3809_v29 = vunpack.i.l.bf16 %v3808_v37  ;;  %v3795_v38 = vunpack.i.h.bf16 %v3793_v8  ;;  %v3794_v40 = vunpack.i.l.bf16 %v3793_v8 }
 0x4e4   :  { %3381 = vmatprep.subr.bf16.mxu0 %v3380_v53 }
 0x4e5   :  { %v1619_v47 = vsel %vm257_vm8, %v1613_v30, %v3809_v29  ;;  %v1620_v51 = vsel %vm257_vm8, %v1614_v33, %v3810_v28  ;;  %v1601_v52 = vsel %vm257_vm8, %v1595_v45, %v3794_v40  ;;  %v1602_v54 = vsel %vm257_vm8, %v1596_v46, %v3795_v38  ;;  %v2876_v45 = vld [vmem:[%s5785_s1 + $0x4b0] sm:$0xff] }
 0x4e6   :  { %v3813_v42 = vpop.permute.xlu1 %3812  ;;  %v3803_v31 = vpop.permute.xlu0 %3802  ;;  %v1647_v56 = vrot.slane %v1619_v47, 5  ;;  %v1648_v49 = vrot.slane %v1620_v51, 5  ;;  %v1644_v50 = vrot.slane %v1601_v52, 5  ;;  %v1645_v59 = vrot.slane %v1602_v54, 5  ;;  %3383 = vmatpush3.bf16.msra.mxu0 %v3382_v21  ;;  %v2877_v47 = vld [vmem:[%s5785_s1 + $0x4b8] sm:$0xff] }
 0x4e7   :  { %v3815_v48 = vunpack.i.h.bf16 %v3813_v42  ;;  %v3814_v2 = vunpack.i.l.bf16 %v3813_v42  ;;  %v3805_v4 = vunpack.i.h.bf16 %v3803_v31  ;;  %v3804_v61 = vunpack.i.l.bf16 %v3803_v31  ;;  %v2860_v31 = vld [vmem:[%s5785_s1 + $0x430] sm:$0xff] }
 0x4e8   :  { %v1649_v60 = vsel %vm153_vm1, %v1647_v56, %v1648_v49  ;;  %v1646_v55 = vsel %vm153_vm1, %v1644_v50, %v1645_v59  ;;  %v3384_v30 = vpack.c.bf16 %v2875_v32, %v2874_v15  ;;  %v3386_v46 = vpack.c.bf16 %v2859_v44, %v2858_v41  ;;  %v2861_v56 = vld [vmem:[%s5785_s1 + $0x438] sm:$0xff] }
 0x4e9   :  { %v1597_v9 = vsel %vm250_vm7, %v1591_v27, %v3805_v4  ;;  %v1615_v58 = vsel %vm250_vm7, %v1609_v6, %v3804_v61  ;;  %1777 = vmatprep.mubr.f32.mxu1 %v1649_v60  ;;  %v3388_v52 = vpack.c.bf16 %v2877_v47, %v2876_v45  ;;  %v2864_v45 = vld [vmem:[%s5785_s1 + $0x450] sm:$0xff] }
 0x4ea   :  { %1778 = vmatmul.mubr.f32.gmra.mrb[16].mxu1 %v1646_v55  ;;  %v1621_v22 = vsel %vm257_vm8, %v1615_v58, %v3814_v2  ;;  %v1603_v10 = vsel %vm257_vm8, %v1597_v9, %v3815_v48  ;;  %3385 = vmatprep.subr.bf16.mxu0 %v3384_v30  ;;  %v2879_v48 = vld [vmem:[%s5785_s1 + $0x4c8] sm:$0xff]  ;;  %v2862_v30 = vld [vmem:[%s5785_s1 + $0x440] sm:$0xff] }
 0x4eb   :  { %v1652_v12 = vrot.slane %v1621_v22, 5  ;;  %v1650_v7 = vrot.slane %v1603_v10, 5  ;;  %3387 = vmatpush3.bf16.msra.mxu0 %v3386_v46  ;;  %v2865_v46 = vld [vmem:[%s5785_s1 + $0x458] sm:$0xff] }
 0x4ec   :  { %3389 = vmatprep.subr.bf16.mxu0 %v3388_v52 }
 0x4ed   :  { %v1653_v13 = vsel %vm153_vm1, %v1648_v49, %v1652_v12  ;;  %v1651_v14 = vsel %vm153_vm1, %v1645_v59, %v1650_v7  ;;  %v2878_v49 = vld [vmem:[%s5785_s1 + $0x4c0] sm:$0xff]  ;;  %v3390_v59 = vpack.c.bf16 %v2861_v56, %v2860_v31 }
 0x4ee   :  { %1782 = vmatprep.mubr.f32.mxu1 %v1653_v13  ;;  %v3392_v58 = vpack.c.bf16 %v2879_v48, %v2878_v49  ;;  %v2882_v49 = vld [vmem:[%s5785_s1 + $0x4e0] sm:$0xff] }
 0x4ef   :  { %1783 = vmatmul.mubr.f32.gmra.mrb[18].mxu1 %v1651_v14  ;;  %3391 = vmatpush3.bf16.msra.mxu0 %v3390_v59 }
 0x4f0   :  { %3393 = vmatprep.subr.bf16.mxu0 %v3392_v58 }
 0x5b1   :  { %v3104_v33 = vpop.f32.mrb[12].mxu1 }
 0x5b2   :  { %v3105_v1 = vpop.f32.mrb[13].mxu1 }
 0x5b3   :  { %v3106_v37 = vadd.f32 %v3105_v1, %v3104_v33  ;;  %v2863_v33 = vld [vmem:[%s5785_s1 + $0x448] sm:$0xff] }
 0x5b5   :  { %v1770_v8 = vadd.f32 %v3106_v37, %v5221_v34  ;;  %v3107_v28 = vpop.f32.mrb[14].mxu1 }
 0x5b6   :  { %v3108_v29 = vpop.f32.mrb[15].mxu1 }
 0x5b7   :  { %v5224_v38 = vmax.f32 %v1770_v8, 0.0  ;;  %v3109_v40 = vadd.f32 %v3108_v29, %v3107_v28  ;;  %v2880_v29 = vld [vmem:[%s5785_s1 + $0x4d0] sm:$0xff] }
 0x5b9   :  { %v1775_v51 = vadd.f32 %v3109_v40, %v5221_v34  ;;  %v5242_v42 = vrot.slane %v5224_v38, 1  ;;  %v1910_v50 = vrot.slane %v5224_v38, 5  ;;  %v1936_v55 = vrot.slane %v5224_v38, 6  ;;  %v2881_v40 = vld [vmem:[%s5785_s1 + $0x4d8] sm:$0xff] }
 0x5ba   :  { %v1812_v9 = vrot.slane %v5224_v38, 2  ;;  %v1872_v53 = vrot.slane %v5224_v38, 3 }
 0x5bb   :  { %v5239_v54 = vmax.f32 %v1775_v51, 0.0  ;;  %v1832_v7 = vsel %vm29_vm3, %v4094_v18, %v5242_v42  ;;  %v3394_v51 = vpack.c.bf16 %v2863_v33, %v2862_v30  ;;  %v2869_v30 = vld [vmem:[%s5785_s1 + $0x478] sm:$0xff] }
 0x5bc   :  { %v1852_v23 = vsel %vm47_vm2, %v4083_v11, %v1812_v9  ;;  %v1826_v47 = vmax.f32 %v5242_v42, %v1812_v9 }
 0x5bd   :  { %v3110_v2 = vpop.f32.mrb[16].mxu1  ;;  %v1911_v4 = vrot.slane %v5239_v54, 5  ;;  %v1797_v61 = vrot.slane %v5239_v54, 1  ;;  %v1937_v27 = vrot.slane %v5239_v54, 6  ;;  %v5261_v6 = vrot.slane %v5239_v54, 2  ;;  %3395 = vmatpush3.bf16.msra.mxu0 %v3394_v51 }
 0x5be   :  { %v3111_v60 = vpop.f32.mrb[17].mxu1  ;;  %v1873_v17 = vrot.slane %v5239_v54, 3 }
 0x5bf   :  { %v3112_v22 = vadd.f32 %v3111_v60, %v3110_v2  ;;  %v1912_v10 = vsel %vm153_vm1, %v1910_v50, %v1911_v4  ;;  %v1798_v12 = vsel %vm29_vm3, %v5242_v42, %v1797_v61  ;;  %v1938_v16 = vsel %vm181_vm0, %v1936_v55, %v1937_v27 }
 0x5c0   :  { %v3816_v13 = vpack.i.bf16 %v1912_v10, %v1910_v50  ;;  %v3821_v14 = vpack.i.bf16 %v1798_v12, %v1832_v7  ;;  %v1808_v3 = vmax.f32 %v5224_v38, %v1798_v12  ;;  %v1814_v62 = vsel %vm47_vm2, %v1812_v9, %v5261_v6  ;;  %v2883_v50 = vld [vmem:[%s5785_s1 + $0x4e8] sm:$0xff] }
 0x5c1   :  { %v1780_v19 = vadd.f32 %v3112_v22, %v5221_v34  ;;  %v1809_v24 = vmax.f32 %v5239_v54, %v1797_v61  ;;  %v1815_v25 = vsel %vm47_vm2, %v5261_v6, %v4106_v26  ;;  %v3826_v32 = vpack.i.bf16 %v1938_v16, %v1936_v55 }
 0x5c2   :  { %v3113_v20 = vpop.f32.mrb[18].mxu1  ;;  %3817 = vrot.lane.b32.xlu0 %v3816_v13, %s4026_s23  ;;  %3822 = vrot.lane.b32.xlu1 %v3821_v14, %s4026_s23  ;;  %v3831_v21 = vpack.i.bf16 %v1814_v62, %v1852_v23  ;;  %v1827_v1 = vmax.f32 %v1808_v3, %v1814_v62  ;;  %v1913_v37 = vsel %vm153_vm1, %v1911_v4, %v4126_v35  ;;  %v1968_v9 = vrot.slane %v1826_v47, 2  ;;  %v2866_v62 = vld [vmem:[%s5785_s1 + $0x460] sm:$0xff]  ;;  %v2885_v23 = vld [vmem:[%s5785_s1 + $0x4f8] sm:$0xff] }
 0x5c3   :  { %v3114_v5 = vpop.f32.mrb[19].mxu1  ;;  %v1874_v8 = vsel %vm112_vm4, %v1872_v53, %v1873_v17  ;;  %v1828_v28 = vmax.f32 %v1809_v24, %v1815_v25  ;;  %v5301_v41 = vmax.f32 %v1780_v19, 0.0  ;;  %v3841_v31 = vpack.i.bf16 %v1797_v61, %v1913_v37 }
 0x5c4   :  { %v3115_v15 = vadd.f32 %v3114_v5, %v3113_v20  ;;  %v3836_v56 = vpack.i.bf16 %v1874_v8, %v1872_v53  ;;  %v1969_v59 = vrot.slane %v1827_v1, 2  ;;  %v1939_v48 = vsel %vm181_vm0, %v1937_v27, %v4129_v36  ;;  %v2884_v5 = vld [vmem:[%s5785_s1 + $0x4f0] sm:$0xff] }
 0x5c5   :  { %v3396_v42 = vpack.c.bf16 %v2881_v40, %v2880_v29  ;;  %v3398_v2 = vpack.c.bf16 %v2865_v46, %v2864_v45  ;;  %v1799_v61 = vrot.slane %v5301_v41, 1  ;;  %v1914_v55 = vrot.slane %v5301_v41, 5 }
 0x5c6   :  { %v1785_v44 = vadd.f32 %v3115_v15, %v5221_v34  ;;  %3827 = vrot.lane.b32.xlu0 %v3826_v32, %s4025_s22  ;;  %3832 = vrot.lane.b32.xlu1 %v3831_v21, %s4025_s22  ;;  %v1971_v34 = vrot.slane %v1828_v28, 2  ;;  %v3400_v27 = vpack.c.bf16 %v2883_v50, %v2882_v49  ;;  %v3846_v10 = vpack.i.bf16 %v5261_v6, %v1939_v48  ;;  %v2867_v6 = vld [vmem:[%s5785_s1 + $0x468] sm:$0xff]  ;;  %v2868_v21 = vld [vmem:[%s5785_s1 + $0x470] sm:$0xff] }
 0x5c7   :  { %3397 = vmatprep.subr.bf16.mxu0 %v3396_v42  ;;  %v1970_v14 = vsel %vm47_vm2, %v1968_v9, %v1969_v59  ;;  %v1816_v19 = vrot.slane %v5301_v41, 2  ;;  %v3402_v37 = vpack.c.bf16 %v2867_v6, %v2866_v62  ;;  %v3404_v8 = vpack.c.bf16 %v2885_v23, %v2884_v5  ;;  %v2922_v48 = vld [vmem:[%s5787_s3 + $0x20] sm:$0xff]  ;;  %v2923_v42 = vld [vmem:[%s5787_s3 + $0x28] sm:$0xff] }
 0x5c8   :  { %v5313_v52 = vmax.f32 %v1785_v44, 0.0  ;;  %v3851_v22 = vpack.i.bf16 %v1873_v17, %v1971_v34  ;;  %v1972_v3 = vsel %vm47_vm2, %v1969_v59, %v1971_v34  ;;  %3399 = vmatpush3.bf16.msra.mxu0 %v3398_v2  ;;  %v1940_v17 = vrot.slane %v5301_v41, 6 }
 0x5c9   :  { %3401 = vmatprep.subr.bf16.mxu0 %v3400_v27  ;;  %v3856_v25 = vpack.i.bf16 %v1972_v3, %v1970_v14  ;;  %v1833_v28 = vsel %vm29_vm3, %v4094_v18, %v1799_v61  ;;  %v1829_v29 = vmax.f32 %v1799_v61, %v1816_v19  ;;  %v3406_v40 = vpack.c.bf16 %v2869_v30, %v2868_v21 }
 0x5ca   :  { %3842 = vrot.lane.b32.xlu0 %v3841_v31, %s4026_s23  ;;  %3837 = vrot.lane.b32.xlu1 %v3836_v56, %s4028_s28  ;;  %v1915_v4 = vrot.slane %v5313_v52, 5  ;;  %v5328_v60 = vrot.slane %v5313_v52, 1  ;;  %v5332_v58 = vrot.slane %v5313_v52, 2  ;;  %v1941_v12 = vrot.slane %v5313_v52, 6 }
 0x5cb   :  { %v1876_v31 = vrot.slane %v5313_v52, 3  ;;  %v1853_v56 = vsel %vm47_vm2, %v4083_v11, %v1816_v19  ;;  %v1973_v34 = vrot.slane %v1829_v29, 2  ;;  %v1875_v49 = vrot.slane %v5301_v41, 3 }
 0x5cc   :  { %v1801_v7 = vsel %vm29_vm3, %v1799_v61, %v5328_v60  ;;  %v1916_v13 = vsel %vm153_vm1, %v1914_v55, %v1915_v4  ;;  %v1811_v20 = vmax.f32 %v5313_v52, %v5328_v60  ;;  %v1819_v53 = vsel %vm47_vm2, %v5332_v58, %v4106_v26  ;;  %3403 = vmatpush3.bf16.msra.mxu0 %v3402_v37 }
 0x5cd   :  { %v1810_v16 = vmax.f32 %v5301_v41, %v1801_v7  ;;  %v3861_v24 = vpack.i.bf16 %v1916_v13, %v1914_v55  ;;  %v1942_v15 = vsel %vm181_vm0, %v1940_v17, %v1941_v12  ;;  %v1818_v32 = vsel %vm47_vm2, %v1816_v19, %v5332_v58  ;;  %3405 = vmatprep.subr.bf16.mxu0 %v3404_v8 }
 0x5ce   :  { %3852 = vrot.lane.b32.xlu0 %v3851_v22, %s4028_s28  ;;  %3847 = vrot.lane.b32.xlu1 %v3846_v10, %s4025_s22  ;;  %v1831_v1 = vmax.f32 %v1811_v20, %v1819_v53  ;;  %v3871_v44 = vpack.i.bf16 %v1942_v15, %v1940_v17  ;;  %v3866_v45 = vpack.i.bf16 %v1801_v7, %v1833_v28 }
 0x5cf   :  { %v1830_v33 = vmax.f32 %v1810_v16, %v1818_v32  ;;  %v1917_v46 = vsel %vm153_vm1, %v1915_v4, %v4126_v35  ;;  %v3876_v59 = vpack.i.bf16 %v1818_v32, %v1853_v56  ;;  %v1877_v61 = vsel %vm112_vm4, %v1875_v49, %v1876_v31 }
 0x5d0   :  { %v1976_v51 = vrot.slane %v1831_v1, 2  ;;  %3407 = vmatpush3.bf16.msra.mxu0 %v3406_v40  ;;  %v3886_v50 = vpack.i.bf16 %v5328_v60, %v1917_v46  ;;  %v5394_v55 = vpack.c.bf16 %v2923_v42, %v2922_v48  ;;  %v3881_v9 = vpack.i.bf16 %v1877_v61, %v1875_v49 }
 0x5d1   :  { %v1974_v47 = vrot.slane %v1830_v33, 2  ;;  %v1943_v27 = vsel %vm181_vm0, %v1941_v12, %v4129_v36  ;;  %v1897_v16 = vrot.slane %v5239_v54, 4  ;;  %v1896_v12 = vrot.slane %v5224_v38, 4 }
 0x5d2   :  { %3862 = vrot.lane.b32.xlu1 %v3861_v24, %s4026_s23  ;;  %3857 = vrot.lane.b32.xlu0 %v3856_v25, %s4028_s28  ;;  %v3901_v22 = vpack.i.bf16 %v1876_v31, %v1976_v51  ;;  %v3891_v10 = vpack.i.bf16 %v5332_v58, %v1943_v27 }
 0x5d3   :  { %v1975_v2 = vsel %vm47_vm2, %v1973_v34, %v1974_v47  ;;  %v1977_v4 = vsel %vm47_vm2, %v1974_v47, %v1976_v51  ;;  %3441 = vmatprep.subr.bf16.mxu0 %v5394_v55  ;;  %v1898_v58 = vsel %vm137_vm5, %v1896_v12, %v1897_v16  ;;  %v1899_v32 = vsel %vm137_vm5, %v1897_v16, %v4311_v0 }
 0x5d4   :  { %v3896_v60 = vpack.i.bf16 %v1977_v4, %v1975_v2 }
 0x5d6   :  { %3872 = vrot.lane.b32.xlu1 %v3871_v44, %s4025_s22  ;;  %3867 = vrot.lane.b32.xlu0 %v3866_v45, %s4026_s23 }
 0x5da   :  { %3887 = vrot.lane.b32.xlu1 %v3886_v50, %s4026_s23  ;;  %3877 = vrot.lane.b32.xlu0 %v3876_v59, %s4025_s22 }
 0x5de   :  { %3897 = vrot.lane.b32.xlu1 %v3896_v60, %s4028_s28  ;;  %3882 = vrot.lane.b32.xlu0 %v3881_v9, %s4028_s28 }
 0x5e2   :  { %3902 = vrot.lane.b32.xlu1 %v3901_v22, %s4028_s28  ;;  %3892 = vrot.lane.b32.xlu0 %v3891_v10, %s4025_s22 }
 0x634   :  { %v3818_v7 = vpop.permute.xlu0 %3817  ;;  %v3823_v13 = vpop.permute.xlu1 %3822 }
 0x635   :  { %v3825_v17 = vunpack.i.h.bf16 %v3823_v13  ;;  %v3824_v19 = vunpack.i.l.bf16 %v3823_v13  ;;  %v3820_v25 = vunpack.i.h.bf16 %v3818_v7  ;;  %v3819_v15 = vunpack.i.l.bf16 %v3818_v7  ;;  %v2924_v7 = vld [vmem:[%s5787_s3 + $0x30] sm:$0xff]  ;;  %v2925_v13 = vld [vmem:[%s5787_s3 + $0x38] sm:$0xff] }
 0x637   :  { %v1997_v1 = vsel %vm243_vm6, %v5224_v38, %v3825_v17  ;;  %v1996_v37 = vsel %vm243_vm6, 0.0, %v3824_v19  ;;  %v2014_v56 = vsel %vm243_vm6, %v1896_v12, %v3819_v15  ;;  %v2015_v48 = vsel %vm243_vm6, %v1898_v58, %v3820_v25 }
 0x638   :  { %v3828_v14 = vpop.permute.xlu0 %3827  ;;  %v3833_v3 = vpop.permute.xlu1 %3832  ;;  %v1900_v12 = vrot.slane %v5301_v41, 4  ;;  %v1901_v17 = vrot.slane %v5313_v52, 4  ;;  %v3444_v58 = vpack.c.bf16 %v2925_v13, %v2924_v7 }
 0x639   :  { %v3835_v20 = vunpack.i.h.bf16 %v3833_v3  ;;  %v3834_v5 = vunpack.i.l.bf16 %v3833_v3  ;;  %v3830_v29 = vunpack.i.h.bf16 %v3828_v14  ;;  %v3829_v40 = vunpack.i.l.bf16 %v3828_v14 }
 0x63b   :  { %v2002_v44 = vsel %vm250_vm7, %v1996_v37, %v3834_v5  ;;  %v2003_v45 = vsel %vm250_vm7, %v1997_v1, %v3835_v20  ;;  %v2020_v61 = vsel %vm250_vm7, %v2014_v56, %v3829_v40  ;;  %v2021_v60 = vsel %vm250_vm7, %v2015_v48, %v3830_v29 }
 0x63c   :  { %v3843_v62 = vpop.permute.xlu0 %3842  ;;  %v3838_v6 = vpop.permute.xlu1 %3837  ;;  %v1902_v37 = vsel %vm137_vm5, %v1900_v12, %v1901_v17 }
 0x63d   :  { %v3844_v23 = vunpack.i.l.bf16 %v3843_v62  ;;  %v3840_v53 = vunpack.i.h.bf16 %v3838_v6  ;;  %v3839_v24 = vunpack.i.l.bf16 %v3838_v6  ;;  %v3845_v21 = vunpack.i.h.bf16 %v3843_v62 }
 0x63f   :  { %v2016_v46 = vsel %vm243_vm6, %v1899_v32, %v3844_v23  ;;  %v2008_v47 = vsel %vm257_vm8, %v2002_v44, %v3839_v24  ;;  %v2009_v51 = vsel %vm257_vm8, %v2003_v45, %v3840_v53  ;;  %v1998_v38 = vsel %vm243_vm6, %v5239_v54, %v3845_v21 }
 0x640   :  { %v3853_v30 = vpop.permute.xlu0 %3852  ;;  %v3848_v33 = vpop.permute.xlu1 %3847  ;;  %v2044_v9 = vrot.slane %v2008_v47, 5  ;;  %v2045_v27 = vrot.slane %v2009_v51, 5  ;;  %v1903_v44 = vsel %vm137_vm5, %v1901_v17, %v4311_v0 }
 0x641   :  { %v3850_v8 = vunpack.i.h.bf16 %v3848_v33  ;;  %v3849_v28 = vunpack.i.l.bf16 %v3848_v33  ;;  %v3854_v31 = vunpack.i.l.bf16 %v3853_v30  ;;  %v3855_v34 = vunpack.i.h.bf16 %v3853_v30 }
 0x642   :  { %v2046_v20 = vsel %vm153_vm1, %v2044_v9, %v2045_v27 }
 0x643   :  { %v2022_v49 = vsel %vm250_vm7, %v2016_v46, %v3849_v28  ;;  %v2004_v42 = vsel %vm250_vm7, %v1998_v38, %v3850_v8 }
 0x644   :  { %v3863_v50 = vpop.permute.xlu1 %3862  ;;  %v3858_v59 = vpop.permute.xlu0 %3857  ;;  %v2028_v10 = vsel %vm257_vm8, %v2022_v49, %v3854_v31  ;;  %v2010_v6 = vsel %vm257_vm8, %v2004_v42, %v3855_v34 }
 0x645   :  { %v3860_v2 = vunpack.i.h.bf16 %v3858_v59  ;;  %v3859_v4 = vunpack.i.l.bf16 %v3858_v59  ;;  %v2052_v5 = vrot.slane %v2028_v10, 5  ;;  %v3865_v23 = vunpack.i.h.bf16 %v3863_v50 }
 0x646   :  { %v3864_v53 = vunpack.i.l.bf16 %v3863_v50  ;;  %v2050_v25 = vrot.slane %v2010_v6, 5 }
 0x647   :  { %v2027_v22 = vsel %vm257_vm8, %v2021_v60, %v3860_v2  ;;  %v2026_v54 = vsel %vm257_vm8, %v2020_v61, %v3859_v4  ;;  %v2018_v29 = vsel %vm243_vm6, %v1902_v37, %v3865_v23  ;;  %v2908_v37 = vld [vmem:[%s5785_s1 + $0x5a0] sm:$0xff] }
 0x648   :  { %v3873_v14 = vpop.permute.xlu1 %3872  ;;  %v3868_v3 = vpop.permute.xlu0 %3867  ;;  %v2047_v16 = vrot.slane %v2026_v54, 5  ;;  %v2048_v62 = vrot.slane %v2027_v22, 5  ;;  %v2017_v40 = vsel %vm243_vm6, %v1900_v12, %v3864_v53  ;;  %v2051_v45 = vsel %vm153_vm1, %v2045_v27, %v2050_v25  ;;  %v2904_v25 = vld [vmem:[%s5785_s1 + $0x580] sm:$0xff] }
 0x649   :  { %v3875_v24 = vunpack.i.h.bf16 %v3873_v14  ;;  %v3874_v15 = vunpack.i.l.bf16 %v3873_v14  ;;  %v3870_v32 = vunpack.i.h.bf16 %v3868_v3  ;;  %v3869_v21 = vunpack.i.l.bf16 %v3868_v3 }
 0x64a   :  { %v2049_v19 = vsel %vm153_vm1, %v2047_v16, %v2048_v62  ;;  %v2053_v1 = vsel %vm153_vm1, %v2048_v62, %v2052_v5 }
 0x64b   :  { %2177 = vmatprep.mubr.f32.mxu0 %v2049_v19  ;;  %v2023_v46 = vsel %vm250_vm7, %v2017_v40, %v3874_v15  ;;  %v2024_v47 = vsel %vm250_vm7, %v2018_v29, %v3875_v24  ;;  %v1999_v51 = vsel %vm243_vm6, 0.0, %v3869_v21  ;;  %v2905_v15 = vld [vmem:[%s5785_s1 + $0x588] sm:$0xff] }
 0x64c   :  { %v3888_v30 = vpop.permute.xlu1 %3887  ;;  %v3878_v33 = vpop.permute.xlu0 %3877  ;;  %2178 = vmatmul.mubr.f32.vlgmr.msra.gmra.mrb[16].mxu0 %v2046_v20 }
 0x64d   :  { %2182 = vmatprep.mubr.f32.mxu0 %v2053_v1  ;;  %3443 = vmatpush3.bf16.msra.mxu0 %v5394_v55  ;;  %v3880_v8 = vunpack.i.h.bf16 %v3878_v33  ;;  %v3879_v28 = vunpack.i.l.bf16 %v3878_v33  ;;  %v2000_v55 = vsel %vm243_vm6, %v5301_v41, %v3870_v32  ;;  %v3890_v59 = vunpack.i.h.bf16 %v3888_v30  ;;  %v2890_v33 = vld [vmem:[%s5785_s1 + $0x510] sm:$0xff]  ;;  %v2891_v1 = vld [vmem:[%s5785_s1 + $0x518] sm:$0xff] }
 0x64e   :  { %3445 = vmatprep.subr.bf16.mxu0 %v3444_v58  ;;  %v3889_v48 = vunpack.i.l.bf16 %v3888_v30  ;;  %v3408_v32 = vpack.c.bf16 %v2905_v15, %v2904_v25 }
 0x64f   :  { %v2005_v42 = vsel %vm250_vm7, %v1999_v51, %v3879_v28  ;;  %v2006_v2 = vsel %vm250_vm7, %v2000_v55, %v3880_v8  ;;  %v2001_v62 = vsel %vm243_vm6, %v5313_v52, %v3890_v59  ;;  %v2909_v8 = vld [vmem:[%s5785_s1 + $0x5a8] sm:$0xff]  ;;  %v3414_v28 = vpack.c.bf16 %v2891_v1, %v2890_v33  ;;  %v2911_v59 = vld [vmem:[%s5785_s1 + $0x5b8] sm:$0xff] }
 0x650   :  { %v3898_v31 = vpop.permute.xlu1 %3897  ;;  %v3883_v56 = vpop.permute.xlu0 %3882  ;;  %2183 = vmatmul.mubr.f32.gmra.mrb[18].mxu0 %v2051_v45  ;;  %v2019_v6 = vsel %vm243_vm6, %v1903_v44, %v3889_v48  ;;  %3409 = vmatprep.subr.bf16.mxu1 %v3408_v32  ;;  %v3416_v29 = vpack.c.bf16 %v2909_v8, %v2908_v37  ;;  %v5512_v44 = vld [vmem:[%s5786_s2 + $0x4] ss:$0 sm:$0xff] }
 0x651   :  { %v3900_v38 = vunpack.i.h.bf16 %v3898_v31  ;;  %v3899_v34 = vunpack.i.l.bf16 %v3898_v31  ;;  %v3885_v49 = vunpack.i.h.bf16 %v3883_v56  ;;  %v3884_v50 = vunpack.i.l.bf16 %v3883_v56  ;;  %3447 = vmatpush3.bf16.msra.mxu0 %v3444_v58 }
 0x653   :  { %v2029_v4 = vsel %vm257_vm8, %v2023_v46, %v3899_v34  ;;  %v2030_v41 = vsel %vm257_vm8, %v2024_v47, %v3900_v38  ;;  %v2011_v61 = vsel %vm257_vm8, %v2005_v42, %v3884_v50  ;;  %v2012_v60 = vsel %vm257_vm8, %v2006_v2, %v3885_v49  ;;  %v2892_v38 = vld [vmem:[%s5785_s1 + $0x520] sm:$0xff]  ;;  %v2893_v34 = vld [vmem:[%s5785_s1 + $0x528] sm:$0xff]  ;;  %v2910_v49 = vld [vmem:[%s5785_s1 + $0x5b0] sm:$0xff] }
 0x654   :  { %v3903_v9 = vpop.permute.xlu1 %3902  ;;  %v3893_v27 = vpop.permute.xlu0 %3892  ;;  %v2057_v22 = vrot.slane %v2029_v4, 5  ;;  %v2058_v54 = vrot.slane %v2030_v41, 5  ;;  %v2054_v10 = vrot.slane %v2011_v61, 5  ;;  %v2055_v7 = vrot.slane %v2012_v60, 5  ;;  %v2894_v41 = vld [vmem:[%s5785_s1 + $0x530] sm:$0xff]  ;;  %v2895_v61 = vld [vmem:[%s5785_s1 + $0x538] sm:$0xff] }
 0x655   :  { %v3905_v13 = vunpack.i.h.bf16 %v3903_v9  ;;  %v3904_v14 = vunpack.i.l.bf16 %v3903_v9  ;;  %v3895_v3 = vunpack.i.h.bf16 %v3893_v27  ;;  %v3894_v16 = vunpack.i.l.bf16 %v3893_v27  ;;  %v2912_v60 = vld [vmem:[%s5785_s1 + $0x5c0] sm:$0xff] }
 0x656   :  { %v2059_v12 = vsel %vm153_vm1, %v2057_v22, %v2058_v54  ;;  %v2056_v17 = vsel %vm153_vm1, %v2054_v10, %v2055_v7  ;;  %v3418_v50 = vpack.c.bf16 %v2893_v34, %v2892_v38  ;;  %v3420_v42 = vpack.c.bf16 %v2911_v59, %v2910_v49  ;;  %v2913_v22 = vld [vmem:[%s5785_s1 + $0x5c8] sm:$0xff] }
 0x657   :  { %v2007_v19 = vsel %vm250_vm7, %v2001_v62, %v3895_v3  ;;  %v2025_v20 = vsel %vm250_vm7, %v2019_v6, %v3894_v16  ;;  %2187 = vmatprep.mubr.f32.mxu0 %v2059_v12  ;;  %v3422_v27 = vpack.c.bf16 %v2895_v61, %v2894_v41  ;;  %v3424_v6 = vpack.c.bf16 %v2913_v22, %v2912_v60 }
 0x658   :  { %2188 = vmatmul.mubr.f32.gmra.mrb[20].mxu0 %v2056_v17  ;;  %v2031_v5 = vsel %vm257_vm8, %v2025_v20, %v3904_v14  ;;  %v2013_v58 = vsel %vm257_vm8, %v2007_v19, %v3905_v13 }
 0x659   :  { %v2062_v23 = vrot.slane %v2031_v5, 5  ;;  %v2060_v53 = vrot.slane %v2013_v58, 5 }
 0x65b   :  { %v2063_v52 = vsel %vm153_vm1, %v2058_v54, %v2062_v23  ;;  %v2061_v24 = vsel %vm153_vm1, %v2055_v7, %v2060_v53 }
 0x65c   :  { %2192 = vmatprep.mubr.f32.mxu0 %v2063_v52 }
 0x65d   :  { %2193 = vmatmul.mubr.f32.gmra.mrb[22].mxu0 %v2061_v24 }
 0x65e   :  { %3234 = vmatprep.mubr.msk.f32.mxu0 %vm243_vm6, %v4955_v43  ;;  %v2888_v43 = vld [vmem:[%s5785_s1 + $0x500] sm:$0xff] }
 0x661   :  { %3235 = vmatmul.mubr.msk.f32.vlgmr.msra.gmra.mrb[24].mxu0 %vm243_vm6, %v4972_v57  ;;  %v2889_v57 = vld [vmem:[%s5785_s1 + $0x508] sm:$0xff] }
 0x662   :  { %3237 = vmatprep.mubr.msk.f32.mxu0 %vm243_vm6, %v5020_v39  ;;  %v2906_v39 = vld [vmem:[%s5785_s1 + $0x590] sm:$0xff]  ;;  %v3410_v21 = vpack.c.bf16 %v2889_v57, %v2888_v43 }
 0x664   :  { %3411 = vmatpush3.bf16.msra.mxu1 %v3410_v21 }
 0x665   :  { %3238 = vmatmul.mubr.msk.f32.gmra.mrb[26].mxu0 %vm243_vm6, %v5024_v63  ;;  %v2907_v63 = vld [vmem:[%s5785_s1 + $0x598] sm:$0xff] }
 0x666   :  { %v3412_v30 = vpack.c.bf16 %v2907_v63, %v2906_v39 }
 0x668   :  { %3413 = vmatprep.subr.bf16.mxu1 %v3412_v30 }
 0x669   :  { %3415 = vmatpush3.bf16.msra.mxu1 %v3414_v28 }
 0x66a   :  { %3417 = vmatprep.subr.bf16.mxu1 %v3416_v29 }
 0x66d   :  { %3419 = vmatpush3.bf16.msra.mxu1 %v3418_v50 }
 0x66e   :  { %3421 = vmatprep.subr.bf16.mxu1 %v3420_v42 }
 0x671   :  { %3423 = vmatpush3.bf16.msra.mxu1 %v3422_v27 }
 0x672   :  { %3425 = vmatprep.subr.bf16.mxu1 %v3424_v6  ;;  %v2914_v6 = vld [vmem:[%s5785_s1 + $0x5d0] sm:$0xff] }
 0x71f   :  { %v3148_v40 = vpop.f32.mrb[16].mxu0 }
 0x720   :  { %v3149_v45 = vpop.f32.mrb[17].mxu0 }
 0x721   :  { %v3150_v46 = vadd.f32 %v3149_v45, %v3148_v40 }
 0x723   :  { %v2180_v47 = vadd.f32 %v3150_v46, %v5512_v44  ;;  %v3151_v55 = vpop.f32.mrb[18].mxu0 }
 0x724   :  { %v3152_v51 = vpop.f32.mrb[19].mxu0 }
 0x725   :  { %v5515_v31 = vmax.f32 %v2180_v47, 0.0  ;;  %v3153_v56 = vadd.f32 %v3152_v51, %v3151_v55  ;;  %v2896_v47 = vld [vmem:[%s5785_s1 + $0x540] sm:$0xff]  ;;  %v2897_v55 = vld [vmem:[%s5785_s1 + $0x548] sm:$0xff] }
 0x726   :  { %v3426_v59 = vpack.c.bf16 %v2897_v55, %v2896_v47 }
 0x727   :  { %v2185_v48 = vadd.f32 %v3153_v56, %v5512_v44  ;;  %v5533_v4 = vrot.slane %v5515_v31, 1  ;;  %v2320_v9 = vrot.slane %v5515_v31, 5  ;;  %v2346_v16 = vrot.slane %v5515_v31, 6 }
 0x728   :  { %v2222_v62 = vrot.slane %v5515_v31, 2  ;;  %v2282_v43 = vrot.slane %v5515_v31, 3  ;;  %3427 = vmatpush3.bf16.msra.mxu1 %v3426_v59 }
 0x729   :  { %v5530_v2 = vmax.f32 %v2185_v48, 0.0  ;;  %v2242_v20 = vsel %vm29_vm3, %v4094_v18, %v5533_v4 }
 0x72a   :  { %v2262_v39 = vsel %vm47_vm2, %v4083_v11, %v2222_v62  ;;  %v2236_v46 = vmax.f32 %v5533_v4, %v2222_v62 }
 0x72b   :  { %v3154_v54 = vpop.f32.mrb[20].mxu0  ;;  %v2321_v10 = vrot.slane %v5530_v2, 5  ;;  %v2207_v7 = vrot.slane %v5530_v2, 1  ;;  %v2347_v13 = vrot.slane %v5530_v2, 6  ;;  %v5552_v14 = vrot.slane %v5530_v2, 2 }
 0x72c   :  { %v3155_v3 = vpop.f32.mrb[21].mxu0  ;;  %v2283_v24 = vrot.slane %v5530_v2, 3 }
 0x72d   :  { %v3156_v12 = vadd.f32 %v3155_v3, %v3154_v54  ;;  %v2322_v17 = vsel %vm153_vm1, %v2320_v9, %v2321_v10  ;;  %v2208_v19 = vsel %vm29_vm3, %v5533_v4, %v2207_v7  ;;  %v2348_v53 = vsel %vm181_vm0, %v2346_v16, %v2347_v13 }
 0x72e   :  { %v3906_v5 = vpack.i.bf16 %v2322_v17, %v2320_v9  ;;  %v3911_v58 = vpack.i.bf16 %v2208_v19, %v2242_v20  ;;  %v2218_v23 = vmax.f32 %v5515_v31, %v2208_v19  ;;  %v2224_v52 = vsel %vm47_vm2, %v2222_v62, %v5552_v14  ;;  %v2898_v19 = vld [vmem:[%s5785_s1 + $0x550] sm:$0xff]  ;;  %v2899_v20 = vld [vmem:[%s5785_s1 + $0x558] sm:$0xff] }
 0x72f   :  { %v2190_v25 = vadd.f32 %v3156_v12, %v5512_v44  ;;  %v3916_v57 = vpack.i.bf16 %v2348_v53, %v2346_v16  ;;  %v2219_v63 = vmax.f32 %v5530_v2, %v2207_v7  ;;  %v2225_v21 = vsel %vm47_vm2, %v5552_v14, %v4106_v26  ;;  %v2917_v53 = vld [vmem:[%s5785_s1 + $0x5e8] sm:$0xff] }
 0x730   :  { %v3157_v15 = vpop.f32.mrb[22].mxu0  ;;  %3907 = vrot.lane.b32.xlu0 %v3906_v5, %s4026_s23  ;;  %3912 = vrot.lane.b32.xlu1 %v3911_v58, %s4026_s23  ;;  %v3921_v33 = vpack.i.bf16 %v2224_v52, %v2262_v39  ;;  %v2237_v1 = vmax.f32 %v2218_v23, %v2224_v52  ;;  %v2323_v37 = vsel %vm153_vm1, %v2321_v10, %v4126_v35  ;;  %v2378_v4 = vrot.slane %v2236_v46, 2  ;;  %v2916_v23 = vld [vmem:[%s5785_s1 + $0x5e0] sm:$0xff] }
 0x731   :  { %v3158_v32 = vpop.f32.mrb[23].mxu0  ;;  %v2284_v8 = vsel %vm112_vm4, %v2282_v43, %v2283_v24  ;;  %v2238_v28 = vmax.f32 %v2219_v63, %v2225_v21  ;;  %v5580_v29 = vmax.f32 %v2190_v25, 0.0  ;;  %v3931_v56 = vpack.i.bf16 %v2207_v7, %v2323_v37  ;;  %v2900_v39 = vld [vmem:[%s5785_s1 + $0x560] sm:$0xff]  ;;  %v2901_v63 = vld [vmem:[%s5785_s1 + $0x568] sm:$0xff] }
 0x732   :  { %v3159_v30 = vadd.f32 %v3158_v32, %v3157_v15  ;;  %v2379_v38 = vrot.slane %v2237_v1, 2  ;;  %v3926_v34 = vpack.i.bf16 %v2284_v8, %v2282_v43  ;;  %v2349_v50 = vsel %vm181_vm0, %v2347_v13, %v4129_v36 }
 0x733   :  { %v2381_v49 = vrot.slane %v2238_v28, 2  ;;  %v2209_v41 = vrot.slane %v5580_v29, 1  ;;  %v2324_v9 = vrot.slane %v5580_v29, 5  ;;  %v3936_v54 = vpack.i.bf16 %v5552_v14, %v2349_v50  ;;  %v2915_v14 = vld [vmem:[%s5785_s1 + $0x5d8] sm:$0xff] }
 0x734   :  { %v2195_v40 = vadd.f32 %v3159_v30, %v5512_v44  ;;  %v5583_v45 = vpop.f32.mrb[24].mxu0  ;;  %3917 = vrot.lane.b32.xlu0 %v3916_v57, %s4025_s22  ;;  %3922 = vrot.lane.b32.xlu1 %v3921_v33, %s4025_s22  ;;  %v2380_v10 = vsel %vm47_vm2, %v2378_v4, %v2379_v38  ;;  %v2226_v12 = vrot.slane %v5580_v29, 2  ;;  %v2350_v5 = vrot.slane %v5580_v29, 6  ;;  %v2918_v30 = vld [vmem:[%s5785_s1 + $0x5f0] sm:$0xff]  ;;  %v2919_v33 = vld [vmem:[%s5785_s1 + $0x5f8] sm:$0xff] }
 0x735   :  { %v5594_v51 = vpop.f32.mrb[25].mxu0  ;;  %v3941_v22 = vpack.i.bf16 %v2283_v24, %v2381_v49  ;;  %v2382_v3 = vsel %vm47_vm2, %v2379_v38, %v2381_v49  ;;  %v3428_v15 = vpack.c.bf16 %v2915_v14, %v2914_v6  ;;  %v3430_v57 = vpack.c.bf16 %v2899_v20, %v2898_v19 }
 0x736   :  { %v5596_v44 = vmax.f32 %v2195_v40, 0.0  ;;  %v3946_v24 = vpack.i.bf16 %v2382_v3, %v2380_v10  ;;  %v3432_v21 = vpack.c.bf16 %v2917_v53, %v2916_v23  ;;  %v2243_v1 = vsel %vm29_vm3, %v4094_v18, %v2209_v41  ;;  %v2903_v18 = vld [vmem:[%s5785_s1 + $0x578] sm:$0xff] }
 0x737   :  { %v2239_v37 = vmax.f32 %v2209_v41, %v2226_v12  ;;  %3429 = vmatprep.subr.bf16.mxu1 %v3428_v15  ;;  %v3434_v46 = vpack.c.bf16 %v2901_v63, %v2900_v39  ;;  %v3436_v38 = vpack.c.bf16 %v2919_v33, %v2918_v30  ;;  %v2263_v49 = vsel %vm47_vm2, %v4083_v11, %v2226_v12 }
 0x738   :  { %v5600_v48 = vpop.f32.mrb[26].mxu0  ;;  %3932 = vrot.lane.b32.xlu0 %v3931_v56, %s4026_s23  ;;  %3927 = vrot.lane.b32.xlu1 %v3926_v34, %s4028_s28  ;;  %v2325_v42 = vrot.slane %v5596_v44, 5  ;;  %v5607_v61 = vrot.slane %v5596_v44, 1  ;;  %v5613_v27 = vrot.slane %v5596_v44, 2  ;;  %v2351_v16 = vrot.slane %v5596_v44, 6  ;;  %v2902_v34 = vld [vmem:[%s5785_s1 + $0x570] sm:$0xff] }
 0x739   :  { %v5609_v60 = vpop.f32.mrb[27].mxu0  ;;  %v2286_v40 = vrot.slane %v5596_v44, 3  ;;  %3431 = vmatpush3.bf16.msra.mxu1 %v3430_v57  ;;  %v2285_v50 = vrot.slane %v5580_v29, 3  ;;  %v3438_v4 = vpack.c.bf16 %v2903_v18, %v2902_v34  ;;  %v2307_v14 = vrot.slane %v5530_v2, 4 }
 0x73a   :  { %v2211_v7 = vsel %vm29_vm3, %v2209_v41, %v5607_v61  ;;  %v2326_v13 = vsel %vm153_vm1, %v2324_v9, %v2325_v42  ;;  %v2221_v17 = vmax.f32 %v5596_v44, %v5607_v61  ;;  %v2229_v58 = vsel %vm47_vm2, %v5613_v27, %v4106_v26  ;;  %3433 = vmatprep.subr.bf16.mxu1 %v3432_v21 }
 0x73b   :  { %v2220_v62 = vmax.f32 %v5580_v29, %v2211_v7  ;;  %v3951_v52 = vpack.i.bf16 %v2326_v13, %v2324_v9  ;;  %v2228_v25 = vsel %vm47_vm2, %v2226_v12, %v5613_v27  ;;  %v2352_v43 = vsel %vm181_vm0, %v2350_v5, %v2351_v16 }
 0x73c   :  { %3942 = vrot.lane.b32.xlu0 %v3941_v22, %s4028_s28  ;;  %3937 = vrot.lane.b32.xlu1 %v3936_v54, %s4025_s22  ;;  %v2241_v26 = vmax.f32 %v2221_v17, %v2229_v58  ;;  %v3961_v8 = vpack.i.bf16 %v2352_v43, %v2350_v5  ;;  %v3956_v28 = vpack.i.bf16 %v2211_v7, %v2243_v1 }
 0x73d   :  { %v2240_v32 = vmax.f32 %v2220_v62, %v2228_v25  ;;  %v2327_v47 = vsel %vm153_vm1, %v2325_v42, %v4126_v35  ;;  %v2383_v35 = vrot.slane %v2239_v37, 2  ;;  %v3966_v42 = vpack.i.bf16 %v2228_v25, %v2263_v49  ;;  %3435 = vmatpush3.bf16.msra.mxu1 %v3434_v46 }
 0x73e   :  { %v2386_v56 = vrot.slane %v2241_v26, 2  ;;  %v3976_v59 = vpack.i.bf16 %v5607_v61, %v2327_v47  ;;  %v2287_v22 = vsel %vm112_vm4, %v2285_v50, %v2286_v40  ;;  %3437 = vmatprep.subr.bf16.mxu1 %v3436_v38  ;;  %v2353_v61 = vsel %vm181_vm0, %v2351_v16, %v4129_v36 }
 0x73f   :  { %v2384_v55 = vrot.slane %v2240_v32, 2  ;;  %v3971_v54 = vpack.i.bf16 %v2287_v22, %v2285_v50  ;;  %v3986_v7 = vpack.i.bf16 %v5613_v27, %v2353_v61  ;;  %v2306_v36 = vrot.slane %v5515_v31, 4 }
 0x740   :  { %3952 = vrot.lane.b32.xlu1 %v3951_v52, %s4026_s23  ;;  %3947 = vrot.lane.b32.xlu0 %v3946_v24, %s4028_s28  ;;  %v3991_v10 = vpack.i.bf16 %v2286_v40, %v2386_v56  ;;  %v2309_v25 = vsel %vm137_vm5, %v2307_v14, %v4311_v0 }
 0x741   :  { %v2385_v41 = vsel %vm47_vm2, %v2383_v35, %v2384_v55  ;;  %v2387_v9 = vsel %vm47_vm2, %v2384_v55, %v2386_v56  ;;  %3439 = vmatpush3.bf16.msra.mxu1 %v3438_v4  ;;  %v2308_v27 = vsel %vm137_vm5, %v2306_v36, %v2307_v14 }
 0x742   :  { %v3981_v11 = vpack.i.bf16 %v2387_v9, %v2385_v41 }
 0x744   :  { %3962 = vrot.lane.b32.xlu1 %v3961_v8, %s4025_s22  ;;  %3957 = vrot.lane.b32.xlu0 %v3956_v28, %s4026_s23 }
 0x748   :  { %3977 = vrot.lane.b32.xlu1 %v3976_v59, %s4026_s23  ;;  %3967 = vrot.lane.b32.xlu0 %v3966_v42, %s4025_s22 }
 0x74c   :  { %3982 = vrot.lane.b32.xlu1 %v3981_v11, %s4028_s28  ;;  %3972 = vrot.lane.b32.xlu0 %v3971_v54, %s4028_s28 }
 0x750   :  { %3992 = vrot.lane.b32.xlu1 %v3991_v10, %s4028_s28  ;;  %3987 = vrot.lane.b32.xlu0 %v3986_v7, %s4025_s22  ;;  %v2310_v7 = vrot.slane %v5580_v29, 4 }
 0x7a2   :  { %v3908_v13 = vpop.permute.xlu0 %3907  ;;  %v3913_v3 = vpop.permute.xlu1 %3912 }
 0x7a3   :  { %v3915_v16 = vunpack.i.h.bf16 %v3913_v3  ;;  %v3914_v19 = vunpack.i.l.bf16 %v3913_v3  ;;  %v3910_v52 = vunpack.i.h.bf16 %v3908_v13  ;;  %v3909_v24 = vunpack.i.l.bf16 %v3908_v13 }
 0x7a4   :  { %v2311_v13 = vrot.slane %v5596_v44, 4 }
 0x7a5   :  { %v2407_v26 = vsel %vm243_vm6, %v5515_v31, %v3915_v16  ;;  %v2406_v57 = vsel %vm243_vm6, 0.0, %v3914_v19  ;;  %v2424_v46 = vsel %vm243_vm6, %v2306_v36, %v3909_v24  ;;  %v2425_v34 = vsel %vm243_vm6, %v2308_v27, %v3910_v52 }
 0x7a6   :  { %v3918_v62 = vpop.permute.xlu0 %3917  ;;  %v3923_v6 = vpop.permute.xlu1 %3922 }
 0x7a7   :  { %v3925_v20 = vunpack.i.h.bf16 %v3923_v6  ;;  %v3924_v5 = vunpack.i.l.bf16 %v3923_v6  ;;  %v3920_v21 = vunpack.i.h.bf16 %v3918_v62  ;;  %v3919_v30 = vunpack.i.l.bf16 %v3918_v62 }
 0x7a9   :  { %v2412_v33 = vsel %vm250_vm7, %v2406_v57, %v3924_v5  ;;  %v2413_v1 = vsel %vm250_vm7, %v2407_v26, %v3925_v20  ;;  %v2430_v50 = vsel %vm250_vm7, %v2424_v46, %v3919_v30  ;;  %v2431_v59 = vsel %vm250_vm7, %v2425_v34, %v3920_v21 }
 0x7aa   :  { %v3933_v12 = vpop.permute.xlu0 %3932  ;;  %v3928_v17 = vpop.permute.xlu1 %3927 }
 0x7ab   :  { %v3934_v58 = vunpack.i.l.bf16 %v3933_v12  ;;  %v3930_v23 = vunpack.i.h.bf16 %v3928_v17  ;;  %v3929_v53 = vunpack.i.l.bf16 %v3928_v17  ;;  %v3935_v15 = vunpack.i.h.bf16 %v3933_v12 }
 0x7ad   :  { %v2426_v37 = vsel %vm243_vm6, %v2309_v25, %v3934_v58  ;;  %v2418_v8 = vsel %vm257_vm8, %v2412_v33, %v3929_v53  ;;  %v2419_v28 = vsel %vm257_vm8, %v2413_v1, %v3930_v23  ;;  %v2408_v31 = vsel %vm243_vm6, %v5530_v2, %v3935_v15 }
 0x7ae   :  { %v3943_v43 = vpop.permute.xlu0 %3942  ;;  %v3938_v32 = vpop.permute.xlu1 %3937  ;;  %v2454_v42 = vrot.slane %v2418_v8, 5  ;;  %v2455_v4 = vrot.slane %v2419_v28, 5  ;;  %v2312_v23 = vsel %vm137_vm5, %v2310_v7, %v2311_v13  ;;  %v2313_v15 = vsel %vm137_vm5, %v2311_v13, %v4311_v0 }
 0x7af   :  { %v3940_v39 = vunpack.i.h.bf16 %v3938_v32  ;;  %v3939_v63 = vunpack.i.l.bf16 %v3938_v32  ;;  %v3944_v40 = vunpack.i.l.bf16 %v3943_v43  ;;  %v3945_v47 = vunpack.i.h.bf16 %v3943_v43 }
 0x7b0   :  { %v2456_v62 = vsel %vm153_vm1, %v2454_v42, %v2455_v4 }
 0x7b1   :  { %v2432_v55 = vsel %vm250_vm7, %v2426_v37, %v3939_v63  ;;  %v2414_v18 = vsel %vm250_vm7, %v2408_v31, %v3940_v39 }
 0x7b2   :  { %v3953_v56 = vpop.permute.xlu1 %3952  ;;  %v3948_v38 = vpop.permute.xlu0 %3947  ;;  %v2438_v9 = vsel %vm257_vm8, %v2432_v55, %v3944_v40  ;;  %v2420_v10 = vsel %vm257_vm8, %v2414_v18, %v3945_v47 }
 0x7b3   :  { %v3950_v49 = vunpack.i.h.bf16 %v3948_v38  ;;  %v3949_v35 = vunpack.i.l.bf16 %v3948_v38  ;;  %v2462_v6 = vrot.slane %v2438_v9, 5  ;;  %v3955_v14 = vunpack.i.h.bf16 %v3953_v56 }
 0x7b4   :  { %v3954_v12 = vunpack.i.l.bf16 %v3953_v56  ;;  %v2460_v36 = vrot.slane %v2420_v10, 5 }
 0x7b5   :  { %v2437_v41 = vsel %vm257_vm8, %v2431_v59, %v3950_v49  ;;  %v2436_v2 = vsel %vm257_vm8, %v2430_v50, %v3949_v35  ;;  %v2428_v24 = vsel %vm243_vm6, %v2312_v23, %v3955_v14 }
 0x7b6   :  { %v3963_v22 = vpop.permute.xlu1 %3962  ;;  %v3958_v11 = vpop.permute.xlu0 %3957  ;;  %v2457_v54 = vrot.slane %v2436_v2, 5  ;;  %v2458_v61 = vrot.slane %v2437_v41, 5  ;;  %v2427_v25 = vsel %vm243_vm6, %v2310_v7, %v3954_v12  ;;  %v2461_v43 = vsel %vm153_vm1, %v2455_v4, %v2460_v36  ;;  %v2927_v12 = vld [vmem:[%s5788_s4 + $0x1] ss:$0 sm:$0xff] }
 0x7b7   :  { %v3965_v17 = vunpack.i.h.bf16 %v3963_v22  ;;  %v3964_v16 = vunpack.i.l.bf16 %v3963_v22  ;;  %v3960_v19 = vunpack.i.h.bf16 %v3958_v11  ;;  %v3959_v20 = vunpack.i.l.bf16 %v3958_v11 }
 0x7b8   :  { %v2459_v3 = vsel %vm153_vm1, %v2457_v54, %v2458_v61  ;;  %v2463_v58 = vsel %vm153_vm1, %v2458_v61, %v2462_v6  ;;  %v2705_v23 = vadd.f32 %v5583_v45, %v2927_v12 }
 0x7b9   :  { %2587 = vmatprep.mubr.f32.mxu1 %v2459_v3  ;;  %v2433_v32 = vsel %vm250_vm7, %v2427_v25, %v3964_v16  ;;  %v2434_v26 = vsel %vm250_vm7, %v2428_v24, %v3965_v17  ;;  %v2410_v57 = vsel %vm243_vm6, %v5580_v29, %v3960_v19  ;;  %v2409_v39 = vsel %vm243_vm6, 0.0, %v3959_v20 }
 0x7ba   :  { %v3978_v5 = vpop.permute.xlu1 %3977  ;;  %v3968_v27 = vpop.permute.xlu0 %3967  ;;  %2588 = vmatmul.mubr.f32.vlgmr.msra.gmra.mrb[20].mxu1 %v2456_v62  ;;  %v2921_v62 = vld [vmem:[%s5786_s2 + $0x5] ss:$0 sm:$0xff]  ;;  %v2700_v19 = vadd.f32 %v2927_v12, %v5594_v51  ;;  %v2710_v51 = vadd.f32 %v2927_v12, %v5609_v60  ;;  %s4029_s2 = smov [#allocation2]  }
 0x7bb   :  { %2592 = vmatprep.mubr.f32.mxu1 %v2463_v58  ;;  %v3970_v53 = vunpack.i.h.bf16 %v3968_v27  ;;  %v3969_v52 = vunpack.i.l.bf16 %v3968_v27  ;;  %v3980_v8 = vunpack.i.h.bf16 %v3978_v5  ;;  %v3979_v0 = vunpack.i.l.bf16 %v3978_v5  ;;  %s2735_s4 = sshll.u32 %s4029_s2, 4  ;;  %s2736_s4 = int_to_ptr.vmem [resolvable:$true] %s2735_s4 }
 0x7bc   :  { %s4000_s16 = scalar_lea.vmem %s2736_s4, 512  ;;  %p4005_p1 = scmp.lt.s32.totalorder %s2736_s4, %s2736_s4 }
 0x7bd   :  { %v2415_v28 = vsel %vm250_vm7, %v2409_v39, %v3969_v52  ;;  %v2416_v40 = vsel %vm250_vm7, %v2410_v57, %v3970_v53  ;;  %v2411_v4 = vsel %vm243_vm6, %v5596_v44, %v3980_v8  ;;  %v2429_v41 = vsel %vm243_vm6, %v2313_v15, %v3979_v0  ;;  %p4001_p0 = scmp.ne.s32.totalorder %s2736_s4, %s4000_s16  ;;  %p4006_p2 = scmp.lt.s32.totalorder %s4000_s16, %s4000_s16 }
 0x7be   :  { %v3983_v63 = vpop.permute.xlu1 %3982  ;;  %v3973_v21 = vpop.permute.xlu0 %3972  ;;  %2593 = vmatmul.mubr.f32.gmra.mrb[22].mxu1 %v2461_v43 }
 0x7bf   :  { %v3985_v30 = vunpack.i.h.bf16 %v3983_v63  ;;  %v3984_v33 = vunpack.i.l.bf16 %v3983_v63  ;;  %v3975_v1 = vunpack.i.h.bf16 %v3973_v21  ;;  %v3974_v37 = vunpack.i.l.bf16 %v3973_v21  ;;  %p4007_p3 = por %p4006_p2, %p4005_p1 }
 0x7c1   :  { %v2439_v46 = vsel %vm257_vm8, %v2433_v32, %v3984_v33  ;;  %v2440_v31 = vsel %vm257_vm8, %v2434_v26, %v3985_v30  ;;  %v2421_v29 = vsel %vm257_vm8, %v2415_v28, %v3974_v37  ;;  %v2422_v47 = vsel %vm257_vm8, %v2416_v40, %v3975_v1  ;;  %p4008_p4 = pnand %p4007_p3, %p4001_p0 }
 0x7c2   :  { %v3993_v55 = vpop.permute.xlu1 %3992  ;;  %v3988_v56 = vpop.permute.xlu0 %3987  ;;  %v2467_v38 = vrot.slane %v2439_v46, 5  ;;  %v2468_v34 = vrot.slane %v2440_v31, 5  ;;  %v2464_v18 = vrot.slane %v2421_v29, 5  ;;  %v2465_v49 = vrot.slane %v2422_v47, 5 }
 0x7c3   :  { %v3995_v35 = vunpack.i.h.bf16 %v3993_v55  ;;  %v3994_v50 = vunpack.i.l.bf16 %v3993_v55  ;;  %v3990_v59 = vunpack.i.h.bf16 %v3988_v56  ;;  %v3989_v42 = vunpack.i.l.bf16 %v3988_v56 }
 0x7c4   :  { %v2469_v2 = vsel %vm153_vm1, %v2467_v38, %v2468_v34  ;;  %v2466_v9 = vsel %vm153_vm1, %v2464_v18, %v2465_v49  ;;  %v2715_v1 = vadd.f32 %v5600_v48, %v2927_v12 }
 0x7c5   :  { %v2417_v22 = vsel %vm250_vm7, %v2411_v4, %v3990_v59  ;;  %v2435_v11 = vsel %vm250_vm7, %v2429_v41, %v3989_v42  ;;  %2597 = vmatprep.mubr.f32.mxu1 %v2469_v2 }
 0x7c6   :  { %2598 = vmatmul.mubr.f32.gmra.mrb[24].mxu1 %v2466_v9  ;;  %v2441_v54 = vsel %vm257_vm8, %v2435_v11, %v3994_v50  ;;  %v2423_v61 = vsel %vm257_vm8, %v2417_v22, %v3995_v35 }
 0x7c7   :  { %v2472_v10 = vrot.slane %v2441_v54, 5  ;;  %v2470_v7 = vrot.slane %v2423_v61, 5 }
 0x7c9   :  { %v2473_v44 = vsel %vm153_vm1, %v2468_v34, %v2472_v10  ;;  %v2471_v13 = vsel %vm153_vm1, %v2465_v49, %v2470_v7 }
 0x7ca   :  { %2602 = vmatprep.mubr.f32.mxu1 %v2473_v44 }
 0x7cb   :  { %2603 = vmatmul.mubr.f32.gmra.mrb[26].mxu1 %v2471_v13 }
 0x88d   :  { %v3192_v3 = vpop.f32.mrb[20].mxu1 }
 0x88e   :  { %v3193_v6 = vpop.f32.mrb[21].mxu1 }
 0x88f   :  { %v3194_v14 = vadd.f32 %v3193_v6, %v3192_v3 }
 0x891   :  { %v2590_v17 = vadd.f32 %v3194_v14, %v2921_v62  ;;  %v3195_v36 = vpop.f32.mrb[22].mxu1 }
 0x892   :  { %v3196_v16 = vpop.f32.mrb[23].mxu1 }
 0x893   :  { %v2608_v20 = vmax.f32 %v2590_v17, 0.0  ;;  %v3197_v5 = vadd.f32 %v3196_v16, %v3195_v36 }
 0x895   :  { %v2718_v27 = vadd.f32 %v2700_v19, %v2608_v20  ;;  %v2595_v58 = vadd.f32 %v3197_v5, %v2921_v62 }
 0x897   :  { %v2722_v53 = vmax.f32 %v2718_v27, 0.0  ;;  %v2609_v52 = vmax.f32 %v2595_v58, 0.0 }
 0x899   :  { %2726 = vst.msk [vmem:[#allocation2] sm:$0xff] %vm243_vm6, %v2722_v53  ;;  %v2719_v24 = vadd.f32 %v2705_v23, %v2609_v52  ;;  %v3198_v25 = vpop.f32.mrb[24].mxu1 }
 0x89a   :  { %v3199_v15 = vpop.f32.mrb[25].mxu1 }
 0x89b   :  { %v2723_v43 = vmax.f32 %v2719_v24, 0.0  ;;  %v3200_v32 = vadd.f32 %v3199_v15, %v3198_v25 }
 0x89d   :  { %2727 = vst.msk [vmem:[#allocation2 + $0x8] sm:$0xff] %vm243_vm6, %v2723_v43  ;;  %v2600_v26 = vadd.f32 %v3200_v32, %v2921_v62 }
 0x89e   :  { %v3201_v57 = vpop.f32.mrb[26].mxu1 }
 0x89f   :  { %v2610_v39 = vmax.f32 %v2600_v26, 0.0  ;;  %v3202_v63 = vpop.f32.mrb[27].mxu1 }
 0x8a0   :  { %v3203_v21 = vadd.f32 %v3202_v63, %v3201_v57 }
 0x8a1   :  { %v2720_v30 = vadd.f32 %v2710_v51, %v2610_v39 }
 0x8a2   :  { %v2605_v45 = vadd.f32 %v3203_v21, %v2921_v62 }
 0x8a3   :  { %v2724_v33 = vmax.f32 %v2720_v30, 0.0 }
 0x8a4   :  { %v2611_v37 = vmax.f32 %v2605_v45, 0.0 }
 0x8a5   :  { %2728 = vst.msk [vmem:[#allocation2 + $0x10] sm:$0xff] %vm243_vm6, %v2724_v33 }
 0x8a6   :  { %v2721_v8 = vadd.f32 %v2715_v1, %v2611_v37 }
 0x8a8   :  { %v2725_v0 = vmax.f32 %v2721_v8, 0.0 }
 0x8aa   :  { %2729 = vst.msk [vmem:[#allocation2 + $0x18] sm:$0xff] %vm243_vm6, %v2725_v0 }
 0x8ab   :  { %4011 = shalt.err (!%p4008_p4)
}
 0x8ac   :  { %s4012_s18 = scalar_lea.hbm %s5789_s5, 512 }
 0x8ad   :  { %p4013_p5 = scmp.ne.s32.totalorder %s5789_s5, %s4012_s18  ;;  %p4016_p6 = scmp.lt.u32.totalorder %s4012_s18, %s5789_s5 }
 0x8af   :  { %p4018_p7 = pnand %p4016_p6, %p4013_p5 }
 0x8b1   :  { %4021 = shalt.err (!%p4018_p7)
}
 0x8b2   :  { %s4030_s24 = smov 128   ;;  %s4031_s25 = smov 8  }
 0x8b3   :  { %2741 = dma.vmem_to_hbm [thread:$0]  %s2736_s4, 512, %s5789_s5, [#allocation3], %s4030_s24, %s4030_s24, %s4031_s25  }
 0x8b4   :  { %4022 = dma.done.wait [#allocation3], 512  }
 0x8b5   :  { %4023 = vsyncadd [#allocation3], 4294966784 }
 0x8b6   :  { %2745 = vsyncpa [#allocation3], 1 }

</bundles_post_ra>
